<compile_context>
chip_gen: v6e
topology: v6e:2x2x1
jax: 0.10.0
libtpu: 0.0.40
codegen_flags: <defaults>
</compile_context>

<pallas_src>
import functools
import math

import jax
import jax.numpy as jnp
from jax.experimental import pallas as pl
from jax.experimental.pallas import tpu as pltpu


# ----------------------------------------------------------------------------
# Pallas kernel: fused (matmul + GELU)x4 + BN4 affine + LayerNorm
# ----------------------------------------------------------------------------
def _gelu(x):
    # exact erf-based GELU == torch.nn.GELU() default
    return 0.5 * x * (1.0 + jax.lax.erf(x * 0.7071067811865476))


def patch_embed_kernel(xp_ref, w1_ref, w2_ref, w3_ref, w4_ref, vec_ref, out_ref):
    ch = w1_ref.shape[1]          # embed_dim // 2
    vec = vec_ref[...]            # (8, E) f32 parameter table
    b1 = vec[0:1, :ch]
    b2 = vec[1:2, :ch]
    b3 = vec[2:3, :]
    b4 = vec[3:4, :]
    s4 = vec[4:5, :]
    t4 = vec[5:6, :]
    lnw = vec[6:7, :]
    lnb = vec[7:8, :]

    # stage 1: 3x3 stride-2 conv (im2col matmul) + GELU   (BN1 folded into w2)
    h = jnp.dot(xp_ref[...], w1_ref[...],
                preferred_element_type=jnp.float32) + b1
    h = _gelu(h)

    # stage 2: 1x1 conv + GELU                            (BN2 folded into w3)
    h = jnp.dot(h.astype(jnp.bfloat16), w2_ref[...],
                preferred_element_type=jnp.float32) + b2
    h = _gelu(h)

    # stage 3: 1x1 conv + GELU                            (BN3 folded into w4)
    h = jnp.dot(h.astype(jnp.bfloat16), w3_ref[...],
                preferred_element_type=jnp.float32) + b3
    h = _gelu(h)

    # stage 4: 1x1 conv + GELU + BN4 (cannot fold across LayerNorm)
    h = jnp.dot(h.astype(jnp.bfloat16), w4_ref[...],
                preferred_element_type=jnp.float32) + b4
    h = _gelu(h)
    h = h * s4 + t4

    # final LayerNorm over embed_dim (single-pass variance)
    mu = jnp.mean(h, axis=-1, keepdims=True)
    var = jnp.mean(h * h, axis=-1, keepdims=True) - mu * mu
    hn = (h - mu) * jax.lax.rsqrt(var + 1e-5)
    out_ref[...] = hn * lnw + lnb


# ----------------------------------------------------------------------------
# Glue: cheap NHWC im2col, parameter construction (with BN folding), wrapper
# ----------------------------------------------------------------------------
def im2col_nhwc(x, k, stride, pad, out_dtype):
    """x: [B, C, H, W] -> [B*Hp*Wp, k*k*C], feature order (kh, kw, c)."""
    B, C, H, W = x.shape
    Hp = (H + 2 * pad - k) // stride + 1
    Wp = (W + 2 * pad - k) // stride + 1
    xh = jnp.transpose(x, (0, 2, 3, 1))                       # NHWC (small)
    xh = jnp.pad(xh, ((0, 0), (pad, pad), (pad, pad), (0, 0)))
    cols = [xh[:, kh:kh + stride * Hp:stride, kw:kw + stride * Wp:stride, :]
            for kh in range(k) for kw in range(k)]            # [B,Hp,Wp,C] each
    col = jnp.concatenate(cols, axis=-1)                      # lane-dim concat
    return col.reshape(B * Hp * Wp, k * k * C).astype(out_dtype), Hp, Wp


def overlap_patch_embed(x, params, *, patch_size=3, stride=2, tm=256):
    """x: [B, in_chans, H, W] float32 -> [B, Hp*Wp, embed_dim] float32."""
    B = x.shape[0]
    xp, Hp, Wp = im2col_nhwc(x, patch_size, stride, patch_size // 2,
                             params["w1"].dtype)
    M, K1 = xp.shape
    E = params["w4"].shape[1]

    m_pad = pl.cdiv(M, tm) * tm
    xp = jnp.pad(xp, ((0, m_pad - M), (0, 0)))

    row = lambda i: (i, 0)
    rep = lambda i: (0, 0)

    out = pl.pallas_call(
        patch_embed_kernel,
        out_shape=jax.ShapeDtypeStruct((m_pad, E), jnp.float32),
        grid_spec=pltpu.PrefetchScalarGridSpec(
            num_scalar_prefetch=0,
            grid=(m_pad // tm,),
            in_specs=[
                pl.BlockSpec((tm, K1), row),
                pl.BlockSpec(params["w1"].shape, rep),
                pl.BlockSpec(params["w2"].shape, rep),
                pl.BlockSpec(params["w3"].shape, rep),
                pl.BlockSpec(params["w4"].shape, rep),
                pl.BlockSpec(params["vecs"].shape, rep),
            ],
            out_specs=pl.BlockSpec((tm, E), row),
        ),
        compiler_params=pltpu.CompilerParams(
            dimension_semantics=("parallel",)),
    )(xp, params["w1"], params["w2"], params["w3"], params["w4"],
      params["vecs"])

    return out[:M].reshape(B, Hp * Wp, E)


def make_params(key, in_chans=64, embed_dim=128, patch_size=3):
    """Deterministic init mirroring OverlapPatchEmbed._init_weights, with
    eval-mode BN affines folded into the following 1x1-conv weights."""
    c_half = embed_dim // 2
    eps = 1e-5

    def conv_w(key, out_ch, in_ch, kh, kw):
        fan_out = kh * kw * out_ch
        std = math.sqrt(2.0 / fan_out)
        return std * jax.random.normal(key, (out_ch, in_ch, kh, kw), jnp.float32)

    k1, k2, k3, k4 = jax.random.split(key, 4)

    # conv1 weight laid out as (kh, kw, in) x out to match im2col feature order
    w1 = conv_w(k1, c_half, in_chans, patch_size, patch_size)
    w1 = jnp.transpose(w1, (2, 3, 1, 0)).reshape(
        patch_size * patch_size * in_chans, c_half)
    # 1x1 convs -> plain matmuls, (in, out) layout
    w2 = conv_w(k2, c_half, c_half, 1, 1).reshape(c_half, c_half).T
    w3 = conv_w(k3, embed_dim, c_half, 1, 1).reshape(embed_dim, c_half).T
    w4 = conv_w(k4, embed_dim, embed_dim, 1, 1).reshape(embed_dim, embed_dim).T
    b1 = jnp.zeros((c_half,), jnp.float32)
    b2 = jnp.zeros((c_half,), jnp.float32)
    b3 = jnp.zeros((embed_dim,), jnp.float32)
    b4 = jnp.zeros((embed_dim,), jnp.float32)

    def bn_affine(ch):
        gamma = jnp.ones((ch,), jnp.float32)
        beta = jnp.zeros((ch,), jnp.float32)
        rmean = jnp.zeros((ch,), jnp.float32)
        rvar = jnp.ones((ch,), jnp.float32)
        scale = gamma / jnp.sqrt(rvar + eps)
        shift = beta - rmean * scale
        return scale, shift

    s1, t1 = bn_affine(c_half)
    s2, t2 = bn_affine(c_half)
    s3, t3 = bn_affine(embed_dim)
    s4, t4 = bn_affine(embed_dim)

    # Fold BN_i (i=1..3) into conv_{i+1}:  y@(diag(s)@W) + (t@W + b)
    w2f = s1[:, None] * w2
    b2f = b2 + t1 @ w2
    w3f = s2[:, None] * w3
    b3f = b3 + t2 @ w3
    w4f = s3[:, None] * w4
    b4f = b4 + t3 @ w4

    ln_w = jnp.ones((embed_dim,), jnp.float32)
    ln_b = jnp.zeros((embed_dim,), jnp.float32)

    def pad_e(v):
        return jnp.pad(v, (0, embed_dim - v.shape[0]))

    # single (8, E) f32 parameter table: b1, b2f, b3f, b4f, s4, t4, ln_w, ln_b
    vecs = jnp.stack([pad_e(b1), pad_e(b2f), b3f, b4f, s4, t4, ln_w, ln_b],
                     axis=0).astype(jnp.float32)

    return dict(
        w1=w1.astype(jnp.bfloat16),
        w2=w2f.astype(jnp.bfloat16),
        w3=w3f.astype(jnp.bfloat16),
        w4=w4f.astype(jnp.bfloat16),
        vecs=vecs,
    )


if __name__ == "__main__":
    # Module defaults: img_size=27, patch_size=3, stride=2, in_chans=64,
    # embed_dim=128  ->  H' = W' = 14, num_patches = 196.
    B, in_chans, H, W = 2, 64, 27, 27
    embed_dim, patch_size, stride = 128, 3, 2

    key = jax.random.PRNGKey(0)
    kx, kp = jax.random.split(key)
    x = jax.random.normal(kx, (B, in_chans, H, W), jnp.float32)  # NCHW
    params = make_params(kp, in_chans=in_chans, embed_dim=embed_dim,
                         patch_size=patch_size)

    fwd = jax.jit(functools.partial(overlap_patch_embed,
                                    patch_size=patch_size, stride=stride,
                                    tm=256))
    out = jax.block_until_ready(fwd(x, params))

    assert out.shape == (B, 196, embed_dim), out.shape
    assert bool(jnp.all(jnp.isfinite(out)))
    print("KERNEL_OK")
</pallas_src>

<mosaic_0001>
module attributes {stable_mosaic.version = 11 : i64} {
  func.func @patch_embed_kernel(%arg0: i32, %arg1: memref<256x576xbf16, #tpu.memory_space<vmem>>, %arg2: memref<576x64xbf16, #tpu.memory_space<vmem>>, %arg3: memref<64x64xbf16, #tpu.memory_space<vmem>>, %arg4: memref<64x128xbf16, #tpu.memory_space<vmem>>, %arg5: memref<128x128xbf16, #tpu.memory_space<vmem>>, %arg6: memref<8x128xf32, #tpu.memory_space<vmem>>, %arg7: memref<256x128xf32, #tpu.memory_space<vmem>>) attributes {dimension_semantics = [#tpu.dimension_semantics<parallel>], iteration_bounds = array<i64: 2>, scalar_prefetch = 0 : i64, scratch_operands = 0 : i64, tpu.core_type = #tpu.core_type<tc>, window_params = [{transform_indices = @transform_0, window_bounds = array<i64: 256, 576>}, {pipeline_mode = #tpu.pipeline_mode<synchronous>, transform_indices = @transform_1, window_bounds = array<i64: 576, 64>}, {pipeline_mode = #tpu.pipeline_mode<synchronous>, transform_indices = @transform_2, window_bounds = array<i64: 64, 64>}, {pipeline_mode = #tpu.pipeline_mode<synchronous>, transform_indices = @transform_3, window_bounds = array<i64: 64, 128>}, {pipeline_mode = #tpu.pipeline_mode<synchronous>, transform_indices = @transform_4, window_bounds = array<i64: 128, 128>}, {pipeline_mode = #tpu.pipeline_mode<synchronous>, transform_indices = @transform_5, window_bounds = array<i64: 8, 128>}, {transform_indices = @transform_6, window_bounds = array<i64: 256, 128>}]} {
    %c0 = arith.constant 0 : index
    %c0_0 = arith.constant 0 : index
    %0 = vector.load %arg6[%c0, %c0_0] : memref<8x128xf32, #tpu.memory_space<vmem>>, vector<8x128xf32>
    %1 = vector.extract_strided_slice %0 {offsets = [0, 0], sizes = [1, 64], strides = [1, 1]} : vector<8x128xf32> to vector<1x64xf32>
    %2 = vector.extract_strided_slice %0 {offsets = [1, 0], sizes = [1, 64], strides = [1, 1]} : vector<8x128xf32> to vector<1x64xf32>
    %3 = vector.extract_strided_slice %0 {offsets = [2, 0], sizes = [1, 128], strides = [1, 1]} : vector<8x128xf32> to vector<1x128xf32>
    %4 = vector.extract_strided_slice %0 {offsets = [3, 0], sizes = [1, 128], strides = [1, 1]} : vector<8x128xf32> to vector<1x128xf32>
    %5 = vector.extract_strided_slice %0 {offsets = [4, 0], sizes = [1, 128], strides = [1, 1]} : vector<8x128xf32> to vector<1x128xf32>
    %6 = vector.extract_strided_slice %0 {offsets = [5, 0], sizes = [1, 128], strides = [1, 1]} : vector<8x128xf32> to vector<1x128xf32>
    %7 = vector.extract_strided_slice %0 {offsets = [6, 0], sizes = [1, 128], strides = [1, 1]} : vector<8x128xf32> to vector<1x128xf32>
    %8 = vector.extract_strided_slice %0 {offsets = [7, 0], sizes = [1, 128], strides = [1, 1]} : vector<8x128xf32> to vector<1x128xf32>
    %c0_1 = arith.constant 0 : index
    %c0_2 = arith.constant 0 : index
    %9 = vector.load %arg1[%c0_1, %c0_2] : memref<256x576xbf16, #tpu.memory_space<vmem>>, vector<256x576xbf16>
    %c0_3 = arith.constant 0 : index
    %c0_4 = arith.constant 0 : index
    %10 = vector.load %arg2[%c0_3, %c0_4] : memref<576x64xbf16, #tpu.memory_space<vmem>>, vector<576x64xbf16>
    %cst = arith.constant dense<0.000000e+00> : vector<256x64xf32>
    %11 = tpu.matmul %9, %10, %cst {dimension_numbers = #tpu.dot_dimension_numbers<[1], [0], [0], [1], [0, 0, 1, 1], [], []>} : vector<256x576xbf16>, vector<576x64xbf16>, vector<256x64xf32> -> vector<256x64xf32>
    %12 = vector.broadcast %1 : vector<1x64xf32> to vector<256x64xf32>
    %13 = arith.addf %11, %12 : vector<256x64xf32>
    %cst_5 = arith.constant 5.000000e-01 : f32
    %14 = vector.broadcast %cst_5 : f32 to vector<256x64xf32>
    %15 = arith.mulf %14, %13 : vector<256x64xf32>
    %cst_6 = arith.constant 0.707106769 : f32
    %16 = vector.broadcast %cst_6 : f32 to vector<256x64xf32>
    %17 = arith.mulf %13, %16 : vector<256x64xf32>
    %18 = math.erf %17 : vector<256x64xf32>
    %cst_7 = arith.constant 1.000000e+00 : f32
    %19 = vector.broadcast %cst_7 : f32 to vector<256x64xf32>
    %20 = arith.addf %19, %18 : vector<256x64xf32>
    %21 = arith.mulf %15, %20 : vector<256x64xf32>
    %22 = arith.truncf %21 : vector<256x64xf32> to vector<256x64xbf16>
    %c0_8 = arith.constant 0 : index
    %c0_9 = arith.constant 0 : index
    %23 = vector.load %arg3[%c0_8, %c0_9] : memref<64x64xbf16, #tpu.memory_space<vmem>>, vector<64x64xbf16>
    %cst_10 = arith.constant dense<0.000000e+00> : vector<256x64xf32>
    %24 = tpu.matmul %22, %23, %cst_10 {dimension_numbers = #tpu.dot_dimension_numbers<[1], [0], [0], [1], [0, 0, 1, 1], [], []>} : vector<256x64xbf16>, vector<64x64xbf16>, vector<256x64xf32> -> vector<256x64xf32>
    %25 = vector.broadcast %2 : vector<1x64xf32> to vector<256x64xf32>
    %26 = arith.addf %24, %25 : vector<256x64xf32>
    %cst_11 = arith.constant 5.000000e-01 : f32
    %27 = vector.broadcast %cst_11 : f32 to vector<256x64xf32>
    %28 = arith.mulf %27, %26 : vector<256x64xf32>
    %cst_12 = arith.constant 0.707106769 : f32
    %29 = vector.broadcast %cst_12 : f32 to vector<256x64xf32>
    %30 = arith.mulf %26, %29 : vector<256x64xf32>
    %31 = math.erf %30 : vector<256x64xf32>
    %cst_13 = arith.constant 1.000000e+00 : f32
    %32 = vector.broadcast %cst_13 : f32 to vector<256x64xf32>
    %33 = arith.addf %32, %31 : vector<256x64xf32>
    %34 = arith.mulf %28, %33 : vector<256x64xf32>
    %35 = arith.truncf %34 : vector<256x64xf32> to vector<256x64xbf16>
    %c0_14 = arith.constant 0 : index
    %c0_15 = arith.constant 0 : index
    %36 = vector.load %arg4[%c0_14, %c0_15] : memref<64x128xbf16, #tpu.memory_space<vmem>>, vector<64x128xbf16>
    %cst_16 = arith.constant dense<0.000000e+00> : vector<256x128xf32>
    %37 = tpu.matmul %35, %36, %cst_16 {dimension_numbers = #tpu.dot_dimension_numbers<[1], [0], [0], [1], [0, 0, 1, 1], [], []>} : vector<256x64xbf16>, vector<64x128xbf16>, vector<256x128xf32> -> vector<256x128xf32>
    %38 = vector.broadcast %3 : vector<1x128xf32> to vector<256x128xf32>
    %39 = arith.addf %37, %38 : vector<256x128xf32>
    %cst_17 = arith.constant 5.000000e-01 : f32
    %40 = vector.broadcast %cst_17 : f32 to vector<256x128xf32>
    %41 = arith.mulf %40, %39 : vector<256x128xf32>
    %cst_18 = arith.constant 0.707106769 : f32
    %42 = vector.broadcast %cst_18 : f32 to vector<256x128xf32>
    %43 = arith.mulf %39, %42 : vector<256x128xf32>
    %44 = math.erf %43 : vector<256x128xf32>
    %cst_19 = arith.constant 1.000000e+00 : f32
    %45 = vector.broadcast %cst_19 : f32 to vector<256x128xf32>
    %46 = arith.addf %45, %44 : vector<256x128xf32>
    %47 = arith.mulf %41, %46 : vector<256x128xf32>
    %48 = arith.truncf %47 : vector<256x128xf32> to vector<256x128xbf16>
    %c0_20 = arith.constant 0 : index
    %c0_21 = arith.constant 0 : index
    %49 = vector.load %arg5[%c0_20, %c0_21] : memref<128x128xbf16, #tpu.memory_space<vmem>>, vector<128x128xbf16>
    %cst_22 = arith.constant dense<0.000000e+00> : vector<256x128xf32>
    %50 = tpu.matmul %48, %49, %cst_22 {dimension_numbers = #tpu.dot_dimension_numbers<[1], [0], [0], [1], [0, 0, 1, 1], [], []>} : vector<256x128xbf16>, vector<128x128xbf16>, vector<256x128xf32> -> vector<256x128xf32>
    %51 = vector.broadcast %4 : vector<1x128xf32> to vector<256x128xf32>
    %52 = arith.addf %50, %51 : vector<256x128xf32>
    %cst_23 = arith.constant 5.000000e-01 : f32
    %53 = vector.broadcast %cst_23 : f32 to vector<256x128xf32>
    %54 = arith.mulf %53, %52 : vector<256x128xf32>
    %cst_24 = arith.constant 0.707106769 : f32
    %55 = vector.broadcast %cst_24 : f32 to vector<256x128xf32>
    %56 = arith.mulf %52, %55 : vector<256x128xf32>
    %57 = math.erf %56 : vector<256x128xf32>
    %cst_25 = arith.constant 1.000000e+00 : f32
    %58 = vector.broadcast %cst_25 : f32 to vector<256x128xf32>
    %59 = arith.addf %58, %57 : vector<256x128xf32>
    %60 = arith.mulf %54, %59 : vector<256x128xf32>
    %61 = vector.broadcast %5 : vector<1x128xf32> to vector<256x128xf32>
    %62 = arith.mulf %60, %61 : vector<256x128xf32>
    %63 = vector.broadcast %6 : vector<1x128xf32> to vector<256x128xf32>
    %64 = arith.addf %62, %63 : vector<256x128xf32>
    %cst_26 = arith.constant dense<0.000000e+00> : vector<256xf32>
    %65 = vector.multi_reduction <add>, %64, %cst_26 [1] : vector<256x128xf32> to vector<256xf32>
    %66 = vector.shape_cast %65 : vector<256xf32> to vector<256x1xf32>
    %cst_27 = arith.constant 1.280000e+02 : f32
    %67 = vector.broadcast %cst_27 : f32 to vector<256x1xf32>
    %68 = arith.divf %66, %67 : vector<256x1xf32>
    %69 = arith.mulf %64, %64 : vector<256x128xf32>
    %cst_28 = arith.constant dense<0.000000e+00> : vector<256xf32>
    %70 = vector.multi_reduction <add>, %69, %cst_28 [1] : vector<256x128xf32> to vector<256xf32>
    %71 = vector.shape_cast %70 : vector<256xf32> to vector<256x1xf32>
    %cst_29 = arith.constant 1.280000e+02 : f32
    %72 = vector.broadcast %cst_29 : f32 to vector<256x1xf32>
    %73 = arith.divf %71, %72 : vector<256x1xf32>
    %74 = arith.mulf %68, %68 : vector<256x1xf32>
    %75 = arith.subf %73, %74 : vector<256x1xf32>
    %76 = vector.broadcast %68 : vector<256x1xf32> to vector<256x128xf32>
    %77 = arith.subf %64, %76 : vector<256x128xf32>
    %cst_30 = arith.constant 9.99999974E-6 : f32
    %78 = vector.broadcast %cst_30 : f32 to vector<256x1xf32>
    %79 = arith.addf %75, %78 : vector<256x1xf32>
    %80 = math.rsqrt %79 : vector<256x1xf32>
    %81 = vector.broadcast %80 : vector<256x1xf32> to vector<256x128xf32>
    %82 = arith.mulf %77, %81 : vector<256x128xf32>
    %83 = vector.broadcast %7 : vector<1x128xf32> to vector<256x128xf32>
    %84 = arith.mulf %82, %83 : vector<256x128xf32>
    %85 = vector.broadcast %8 : vector<1x128xf32> to vector<256x128xf32>
    %86 = arith.addf %84, %85 : vector<256x128xf32>
    %c0_31 = arith.constant 0 : index
    %c0_32 = arith.constant 0 : index
    %87 = vector.load %arg7[%c0_31, %c0_32] : memref<256x128xf32, #tpu.memory_space<vmem>>, vector<256x128xf32>
    tpu.vector_store %arg7[%c0_31, %c0_32], %86 {strides = array<i32>} : memref<256x128xf32, #tpu.memory_space<vmem>>, vector<256x128xf32>,
    return
  }
  func.func @transform_0(%arg0: i32) -> (i32, i32) {
    %c0_i32 = arith.constant 0 : i32
    %c0_i32_0 = arith.constant 0 : i32
    return %arg0, %c0_i32 : i32, i32
  }
  func.func @transform_1(%arg0: i32) -> (i32, i32) {
    %c0_i32 = arith.constant 0 : i32
    %c0_i32_0 = arith.constant 0 : i32
    %c0_i32_1 = arith.constant 0 : i32
    return %c0_i32, %c0_i32_0 : i32, i32
  }
  func.func @transform_2(%arg0: i32) -> (i32, i32) {
    %c0_i32 = arith.constant 0 : i32
    %c0_i32_0 = arith.constant 0 : i32
    %c0_i32_1 = arith.constant 0 : i32
    return %c0_i32, %c0_i32_0 : i32, i32
  }
  func.func @transform_3(%arg0: i32) -> (i32, i32) {
    %c0_i32 = arith.constant 0 : i32
    %c0_i32_0 = arith.constant 0 : i32
    %c0_i32_1 = arith.constant 0 : i32
    return %c0_i32, %c0_i32_0 : i32, i32
  }
  func.func @transform_4(%arg0: i32) -> (i32, i32) {
    %c0_i32 = arith.constant 0 : i32
    %c0_i32_0 = arith.constant 0 : i32
    %c0_i32_1 = arith.constant 0 : i32
    return %c0_i32, %c0_i32_0 : i32, i32
  }
  func.func @transform_5(%arg0: i32) -> (i32, i32) {
    %c0_i32 = arith.constant 0 : i32
    %c0_i32_0 = arith.constant 0 : i32
    %c0_i32_1 = arith.constant 0 : i32
    return %c0_i32, %c0_i32_0 : i32, i32
  }
  func.func @transform_6(%arg0: i32) -> (i32, i32) {
    %c0_i32 = arith.constant 0 : i32
    %c0_i32_0 = arith.constant 0 : i32
    return %arg0, %c0_i32 : i32, i32
  }
}

</mosaic_0001>

<bundles_post_ra>
// kernel: overlap_patch_embed.1
= control target key start
LH: loop header
LB: loop body
LE: loop exit
PB: predicated region body
PF: predicated region fallthrough
CT: control target
= control target key end

     0   :  { %s4841_s21 = smov 0   ;;  %s6536_s0 = inlined_call_operand.vmem [shape: bf16[512,576], index: 0, kind: input, shape index: {}]   ;;  %s6537_s1 = inlined_call_operand.vmem [shape: bf16[576,64], index: 1, kind: input, shape index: {}]   ;;  %s6538_s2 = inlined_call_operand.vmem [shape: bf16[64,64], index: 2, kind: input, shape index: {}]   ;;  %s6539_s3 = inlined_call_operand.vmem [shape: bf16[64,128], index: 3, kind: input, shape index: {}]   ;;  %s6540_s4 = inlined_call_operand.vmem [shape: bf16[128,128], index: 4, kind: input, shape index: {}]   ;;  %s6541_s5 = inlined_call_operand.vmem [shape: f32[8,128], index: 5, kind: input, shape index: {}]   ;;  %s6542_s6 = inlined_call_operand.vmem [shape: f32[512,128], index: 6, kind: output, shape index: {}]  }
   0x1 LB: > { %s3636_s22 = sadd.s32 4294967295, %s4804_s21   ;;  %p3640_p0 = scmp.ge.s32.totalorder %s4804_s21, 1  ;;  %s4804_s21 = sphi %s4841_s21, %s16_s21  }
   0x2   : > { %p214_p1 = scmp.lt.s32.totalorder %s4804_s21, 3 }
   0x4   : > { %p215_p2 = pnand %p3640_p0, %p214_p1 }
   0x6   : > { %218 = sbr.rel (%p215_p2) target bundleno = 1355 (0x54b), region = 44 }
   0xb   : > { %v4312_v0 = vld [vmem:[%s6537_s1 + $0x78] sm:$0xff]   ;;  %v4316_v4 = vld [vmem:[%s6537_s1 + $0x70] sm:$0xff]   ;;  %v4320_v8 = vld [vmem:[%s6537_s1 + $0x68] sm:$0xff]   ;;  %s3641_s29 = sshll.u32 %s3636_s22, 5  ;;  %vm1048_vm0 = vcmask 523264  }
   0xc   : > { %v4313_v1 = vld [vmem:[%s6537_s1 + $0x38] sm:$0xff]   ;;  %3827 = vmatprep.subr.bf16.mxu0 %v4312_v0  ;;  %v4317_v5 = vld [vmem:[%s6537_s1 + $0x30] sm:$0xff]   ;;  %v4321_v9 = vld [vmem:[%s6537_s1 + $0x28] sm:$0xff]   ;;  %p246_p3 = scmp.lt.s32.totalorder %s3641_s29, 63 }
   0xd   : > { %v4314_v2 = vld [vmem:[%s6537_s1 + $0xf8] sm:$0xff]   ;;  %3828 = vmatpush3.bf16.msra.mxu0 %v4313_v1  ;;  %v4318_v6 = vld [vmem:[%s6537_s1 + $0xf0] sm:$0xff]   ;;  %v4322_v10 = vld [vmem:[%s6537_s1 + $0xe8] sm:$0xff]  }
   0xe   : > { %v4315_v3 = vld [vmem:[%s6537_s1 + $0xb8] sm:$0xff]   ;;  %3939 = vmatprep.subr.bf16.mxu1 %v4314_v2  ;;  %3829 = vmatprep.subr.bf16.mxu0 %v4316_v4  ;;  %v4319_v7 = vld [vmem:[%s6537_s1 + $0xb0] sm:$0xff]   ;;  %v4323_v11 = vld [vmem:[%s6537_s1 + $0xa8] sm:$0xff]   ;;  %s6598_s29 = smov (!%p246_p3, %s3641_s29), 63 }
   0xf   : > { %3940 = vmatpush3.bf16.msra.mxu1 %v4315_v3  ;;  %v4324_v12 = vld [vmem:[%s6537_s1 + $0x60] sm:$0xff]   ;;  %v4328_v16 = vld [vmem:[%s6537_s1 + $0x58] sm:$0xff]   ;;  %v4332_v20 = vld [vmem:[%s6537_s1 + $0x50] sm:$0xff]   ;;  %s4303_s30 = smul.u32 20, %s6598_s29  ;;  %s3644_s27 = sshll.u32 %s6598_s29, 3 }
  0x10   : > { %3941 = vmatprep.subr.bf16.mxu1 %v4318_v6  ;;  %v4325_v13 = vld [vmem:[%s6537_s1 + $0x20] sm:$0xff]   ;;  %v4329_v17 = vld [vmem:[%s6537_s1 + $0x18] sm:$0xff]   ;;  %v4333_v21 = vld [vmem:[%s6537_s1 + $0x10] sm:$0xff]  }
  0x11   : > { %3830 = vmatpush3.bf16.msra.mxu0 %v4317_v5  ;;  %v4326_v14 = vld [vmem:[%s6537_s1 + $0xe0] sm:$0xff]   ;;  %v4330_v18 = vld [vmem:[%s6537_s1 + $0xd8] sm:$0xff]   ;;  %v4334_v22 = vld [vmem:[%s6537_s1 + $0xd0] sm:$0xff]   ;;  %s4944_s16 = scalar_lea.vmem %s6536_s0, %s4303_s30  ;;  %s6293_s30 = scalar_lea.vmem %s6542_s6, %s3644_s27 }
  0x12   : > { %3831 = vmatprep.subr.bf16.mxu0 %v4320_v8  ;;  %v4327_v15 = vld [vmem:[%s6537_s1 + $0xa0] sm:$0xff]   ;;  %v4331_v19 = vld [vmem:[%s6537_s1 + $0x98] sm:$0xff]   ;;  %v4335_v23 = vld [vmem:[%s6537_s1 + $0x90] sm:$0xff]  }
  0x13   : > { %3942 = vmatpush3.bf16.msra.mxu1 %v4319_v7  ;;  %v4336_v24 = vld [vmem:[%s6537_s1 + $0x48] sm:$0xff]   ;;  %v4340_v28 = vld [vmem:[%s6537_s1 + $0x40] sm:$0xff]   ;;  %v4347_v34 = vld [vmem:[%s6537_s1 + $0x118] sm:$0xff]  }
  0x14   : > { %3943 = vmatprep.subr.bf16.mxu1 %v4322_v10  ;;  %v4337_v25 = vld [vmem:[%s6537_s1 + $0x8] sm:$0xff]   ;;  %v4341_v29 = vld [vmem:[%s6537_s1] sm:$0xff]   ;;  %v4360_v42 = vld [vmem:[%s4944_s16 + $0x5c] ss:$20 sps:$4 sm:$0xff]  }
  0x15   : > { %3832 = vmatpush3.bf16.msra.mxu0 %v4321_v9  ;;  %v4338_v26 = vld [vmem:[%s6537_s1 + $0xc8] sm:$0xff]   ;;  %v4342_v30 = vld [vmem:[%s6537_s1 + $0xc0] sm:$0xff]   ;;  %v4372_v43 = vld [vmem:[%s6537_s1 + $0x110] sm:$0xff]  }
  0x16   : > { %3833 = vmatprep.subr.bf16.mxu0 %v4324_v12  ;;  %v4339_v27 = vld [vmem:[%s6537_s1 + $0x88] sm:$0xff]   ;;  %v4343_v31 = vld [vmem:[%s4944_s16] ss:$20 sps:$4 sm:$0xff]   ;;  %v4345_v32 = vld [vmem:[%s4944_s16 + $0x4] ss:$20 sps:$4 sm:$0xff]  }
  0x17   : > { %3944 = vmatpush3.bf16.msra.mxu1 %v4323_v11  ;;  %v4346_v33 = vld [vmem:[%s6537_s1 + $0x80] sm:$0xff]   ;;  %1129 = vmatprep.mubr.bf16.mxu0 %v4345_v32  ;;  %v4348_v35 = vld [vmem:[%s4944_s16 + $0x8] ss:$20 sps:$4 sm:$0xff]   ;;  %v4362_v46 = vld [vmem:[%s4944_s16 + $0x58] ss:$20 sps:$4 sm:$0xff]  }
  0x18   : > { %3945 = vmatprep.subr.bf16.mxu1 %v4326_v14  ;;  %v4350_v36 = vld [vmem:[%s4944_s16 + $0xc] ss:$20 sps:$4 sm:$0xff]   ;;  %v4354_v38 = vld [vmem:[%s4944_s16 + $0x34] ss:$20 sps:$4 sm:$0xff]   ;;  %v4356_v41 = vld [vmem:[%s4944_s16 + $0x30] ss:$20 sps:$4 sm:$0xff]  }
  0x19   : > { %3834 = vmatpush3.bf16.msra.mxu0 %v4325_v13  ;;  %v4351_v37 = vld [vmem:[%s4944_s16 + $0x2c] ss:$20 sps:$4 sm:$0xff]   ;;  %1290 = vmatprep.mubr.bf16.mxu1 %v4350_v36  ;;  %v4353_v39 = vld [vmem:[%s4944_s16 + $0x28] ss:$20 sps:$4 sm:$0xff]   ;;  %v4359_v44 = vld [vmem:[%s4944_s16 + $0x50] ss:$20 sps:$4 sm:$0xff]  }
  0x1a   : > { %3835 = vmatprep.subr.bf16.mxu0 %v4328_v16  ;;  %v4357_v40 = vld [vmem:[%s4944_s16 + $0x54] ss:$20 sps:$4 sm:$0xff]   ;;  %v4363_v45 = vld [vmem:[%s4944_s16 + $0x7c] ss:$20 sps:$4 sm:$0xff]   ;;  %v4366_v47 = vld [vmem:[%s4944_s16 + $0x84] ss:$20 sps:$4 sm:$0xff]  }
  0x1b   : > { %3946 = vmatpush3.bf16.msra.mxu1 %v4327_v15  ;;  %v4365_v48 = vld [vmem:[%s4944_s16 + $0x78] ss:$20 sps:$4 sm:$0xff]   ;;  %v4368_v51 = vld [vmem:[%s4944_s16 + $0x80] ss:$20 sps:$4 sm:$0xff]   ;;  %v4375_v55 = vld [vmem:[%s4944_s16 + $0xa8] ss:$20 sps:$4 sm:$0xff]  }
  0x1c   : > { %3947 = vmatprep.subr.bf16.mxu1 %v4330_v18  ;;  %v4369_v49 = vld [vmem:[%s4944_s16 + $0xa4] ss:$20 sps:$4 sm:$0xff]   ;;  %v4397_v50 = vld [vmem:[%s6537_s1 + $0x108] sm:$0xff]   ;;  %v4371_v53 = vld [vmem:[%s4944_s16 + $0xa0] ss:$20 sps:$4 sm:$0xff]  }
  0x1d   : > { %3836 = vmatpush3.bf16.msra.mxu0 %v4329_v17  ;;  %v4373_v52 = vld [vmem:[%s4944_s16 + $0xac] ss:$20 sps:$4 sm:$0xff]   ;;  %v4379_v56 = vld [vmem:[%s4944_s16 + $0xd4] ss:$20 sps:$4 sm:$0xff]   ;;  %v4381_v60 = vld [vmem:[%s4944_s16 + $0xd0] ss:$20 sps:$4 sm:$0xff]  }
  0x1e   : > { %3837 = vmatprep.subr.bf16.mxu0 %v4332_v20  ;;  %v4376_v54 = vld [vmem:[%s4944_s16 + $0xcc] ss:$20 sps:$4 sm:$0xff]   ;;  %v4378_v58 = vld [vmem:[%s4944_s16 + $0xc8] ss:$20 sps:$4 sm:$0xff]   ;;  %v4384_v62 = vld [vmem:[%s4944_s16 + $0xf0] ss:$20 sps:$4 sm:$0xff]  }
  0x1f   : > { %3948 = vmatpush3.bf16.msra.mxu1 %v4331_v19  ;;  %v4422_v57 = vld [vmem:[%s6537_s1 + $0x100] sm:$0xff]   ;;  %v4382_v59 = vld [vmem:[%s4944_s16 + $0xf4] ss:$20 sps:$4 sm:$0xff]   ;;  %v4385_v61 = vld [vmem:[%s4944_s16 + $0xfc] ss:$20 sps:$4 sm:$0xff]  }
  0x20   : > { %3949 = vmatprep.subr.bf16.mxu1 %v4334_v22  ;;  %v4388_v63 = vld [vmem:[%s4944_s16 + $0x11c] ss:$20 sps:$4 sm:$0xff]   ;;  %v4387_v0 = vld [vmem:[%s4944_s16 + $0xf8] ss:$20 sps:$4 sm:$0xff]   ;;  %v4393_v4 = vld [vmem:[%s4944_s16 + $0x120] ss:$20 sps:$4 sm:$0xff]  }
  0x21   : > { %3838 = vmatpush3.bf16.msra.mxu0 %v4333_v21  ;;  %v4391_v1 = vld [vmem:[%s4944_s16 + $0x124] ss:$20 sps:$4 sm:$0xff]   ;;  %v4398_v5 = vld [vmem:[%s4944_s16 + $0x14c] ss:$20 sps:$4 sm:$0xff]   ;;  %v4400_v8 = vld [vmem:[%s4944_s16 + $0x148] ss:$20 sps:$4 sm:$0xff]  }
  0x22   : > { %3839 = vmatprep.subr.bf16.mxu0 %v4336_v24  ;;  %v4390_v2 = vld [vmem:[%s4944_s16 + $0x118] ss:$20 sps:$4 sm:$0xff]   ;;  %v4396_v6 = vld [vmem:[%s4944_s16 + $0x140] ss:$20 sps:$4 sm:$0xff]   ;;  %v4403_v10 = vld [vmem:[%s4944_s16 + $0x168] ss:$20 sps:$4 sm:$0xff]  }
  0x23   : > { %3950 = vmatpush3.bf16.msra.mxu1 %v4335_v23  ;;  %v4394_v3 = vld [vmem:[%s4944_s16 + $0x144] ss:$20 sps:$4 sm:$0xff]   ;;  %v4401_v7 = vld [vmem:[%s4944_s16 + $0x16c] ss:$20 sps:$4 sm:$0xff]   ;;  %v4404_v9 = vld [vmem:[%s4944_s16 + $0x174] ss:$20 sps:$4 sm:$0xff]  }
  0x24   : > { %3951 = vmatprep.subr.bf16.mxu1 %v4338_v26  ;;  %v4407_v11 = vld [vmem:[%s4944_s16 + $0x194] ss:$20 sps:$4 sm:$0xff]   ;;  %v4406_v12 = vld [vmem:[%s4944_s16 + $0x170] ss:$20 sps:$4 sm:$0xff]   ;;  %v4412_v16 = vld [vmem:[%s4944_s16 + $0x198] ss:$20 sps:$4 sm:$0xff]  }
  0x25   : > { %3840 = vmatpush3.bf16.msra.mxu0 %v4337_v25  ;;  %v4410_v13 = vld [vmem:[%s4944_s16 + $0x19c] ss:$20 sps:$4 sm:$0xff]   ;;  %v4416_v17 = vld [vmem:[%s4944_s16 + $0x1c4] ss:$20 sps:$4 sm:$0xff]   ;;  %v4418_v20 = vld [vmem:[%s4944_s16 + $0x1c0] ss:$20 sps:$4 sm:$0xff]  }
  0x26   : > { %3841 = vmatprep.subr.bf16.mxu0 %v4340_v28  ;;  %v4409_v14 = vld [vmem:[%s4944_s16 + $0x190] ss:$20 sps:$4 sm:$0xff]   ;;  %v4415_v18 = vld [vmem:[%s4944_s16 + $0x1b8] ss:$20 sps:$4 sm:$0xff]   ;;  %v4421_v22 = vld [vmem:[%s4944_s16 + $0x1e0] ss:$20 sps:$4 sm:$0xff]  }
  0x27   : > { %3952 = vmatpush3.bf16.msra.mxu1 %v4339_v27  ;;  %v4413_v15 = vld [vmem:[%s4944_s16 + $0x1bc] ss:$20 sps:$4 sm:$0xff]   ;;  %v4419_v19 = vld [vmem:[%s4944_s16 + $0x1e4] ss:$20 sps:$4 sm:$0xff]   ;;  %v4423_v21 = vld [vmem:[%s4944_s16 + $0x1ec] ss:$20 sps:$4 sm:$0xff]  }
  0x28   : > { %3953 = vmatprep.subr.bf16.mxu1 %v4342_v30  ;;  %v4426_v23 = vld [vmem:[%s4944_s16 + $0x20c] ss:$20 sps:$4 sm:$0xff]   ;;  %v4425_v24 = vld [vmem:[%s4944_s16 + $0x1e8] ss:$20 sps:$4 sm:$0xff]   ;;  %v4444_v36 = vld [vmem:[%s4944_s16 + $0x10] ss:$20 sps:$4 sm:$0xff]  }
  0x29   : > { %3842 = vmatpush3.bf16.msra.mxu0 %v4341_v29  ;;  %v4429_v25 = vld [vmem:[%s4944_s16 + $0x214] ss:$20 sps:$4 sm:$0xff]   ;;  %v4460_v26 = vld [vmem:[%s6538_s2 + $0x18] sm:$0xff]   ;;  %v4431_v29 = vld [vmem:[%s4944_s16 + $0x210] ss:$20 sps:$4 sm:$0xff]  }
  0x2a   : > { %4135 = vmatprep.subr.bf16.mxu0 %v4347_v34  ;;  %v4428_v27 = vld [vmem:[%s4944_s16 + $0x208] ss:$20 sps:$4 sm:$0xff]  }
  0x2b   : > { %3954 = vmatpush3.bf16.msra.mxu1 %v4346_v33  ;;  %v4432_v28 = vld [vmem:[%s4944_s16 + $0x234] ss:$20 sps:$4 sm:$0xff]   ;;  %v4435_v30 = vld [vmem:[%s4944_s16 + $0x23c] ss:$20 sps:$4 sm:$0xff]   ;;  %v4437_v33 = vld [vmem:[%s4944_s16 + $0x238] ss:$20 sps:$4 sm:$0xff]  }
  0x2c   : > { %1130 = vmatmul.mubr.bf16.vlgmr.msra.gmra.mxu0 %v4343_v31  ;;  %4175 = vmatprep.subr.bf16.mxu1 %v4460_v26  ;;  %v4434_v31 = vld [vmem:[%s4944_s16 + $0x230] ss:$20 sps:$4 sm:$0xff]  }
  0x2d   : > { %4136 = vmatpush3.bf16.msra.mxu0 %v4347_v34  ;;  %1137 = vmatprep.mubr.bf16.mxu0 %v4351_v37  ;;  %v4438_v32 = vld [vmem:[%s4944_s16 + $0x25c] ss:$20 sps:$4 sm:$0xff]   ;;  %v4441_v34 = vld [vmem:[%s4944_s16 + $0x264] ss:$20 sps:$4 sm:$0xff]   ;;  %v4443_v37 = vld [vmem:[%s4944_s16 + $0x260] ss:$20 sps:$4 sm:$0xff]  }
  0x2e   : > { %1291 = vmatmul.mubr.bf16.vlgmr.msra.gmra.mxu1 %v4348_v35  ;;  %4137 = vmatprep.subr.bf16.mxu0 %v4372_v43  ;;  %v4440_v35 = vld [vmem:[%s4944_s16 + $0x258] ss:$20 sps:$4 sm:$0xff]  }
  0x2f   : > { %1298 = vmatprep.mubr.bf16.mxu1 %v4354_v38  ;;  %4176 = vmatpush3.bf16.msra.mxu1 %v4460_v26  ;;  %v4445_v38 = vld [vmem:[%s4944_s16 + $0x38] ss:$20 sps:$4 sm:$0xff]  }
  0x31   : > { %4138 = vmatpush3.bf16.msra.mxu0 %v4372_v43  ;;  %v4449_v43 = vld [vmem:[%s4944_s16 + $0xd8] ss:$20 sps:$4 sm:$0xff]  }
  0x32   : > { %4139 = vmatprep.subr.bf16.mxu0 %v4397_v50 }
  0x34   : > { %1138 = vmatmul.mubr.bf16.gmra.mxu0 %v4353_v39  ;;  %v4446_v39 = vld [vmem:[%s4944_s16 + $0x60] ss:$20 sps:$4 sm:$0xff]  }
  0x35   : > { %1145 = vmatprep.mubr.bf16.mxu0 %v4357_v40  ;;  %4140 = vmatpush3.bf16.msra.mxu0 %v4397_v50  ;;  %v4461_v40 = vld [vmem:[%s6538_s2 + $0x10] sm:$0xff]   ;;  %v4455_v50 = vld [vmem:[%s4944_s16 + $0x1c8] ss:$20 sps:$4 sm:$0xff]  }
  0x36   : > { %1299 = vmatmul.mubr.bf16.gmra.mxu1 %v4356_v41  ;;  %4141 = vmatprep.subr.bf16.mxu0 %v4422_v57  ;;  %v4447_v41 = vld [vmem:[%s4944_s16 + $0x88] ss:$20 sps:$4 sm:$0xff]  }
  0x37   : > { %1306 = vmatprep.mubr.bf16.mxu1 %v4360_v42  ;;  %4177 = vmatprep.subr.bf16.mxu1 %v4461_v40  ;;  %v4448_v42 = vld [vmem:[%s4944_s16 + $0xb0] ss:$20 sps:$4 sm:$0xff]  }
  0x38   : > { %4178 = vmatpush3.bf16.msra.mxu1 %v4461_v40 }
  0x39   : > { %4142 = vmatpush3.bf16.msra.mxu0 %v4422_v57 }
  0x3c   : > { %1146 = vmatmul.mubr.bf16.gmra.mxu0 %v4359_v44  ;;  %v4450_v44 = vld [vmem:[%s4944_s16 + $0x100] ss:$20 sps:$4 sm:$0xff]  }
  0x3d   : > { %1153 = vmatprep.mubr.bf16.mxu0 %v4363_v45  ;;  %v4451_v45 = vld [vmem:[%s4944_s16 + $0x128] ss:$20 sps:$4 sm:$0xff]  }
  0x3e   : > { %1307 = vmatmul.mubr.bf16.gmra.mxu1 %v4362_v46  ;;  %v4452_v46 = vld [vmem:[%s4944_s16 + $0x150] ss:$20 sps:$4 sm:$0xff]  }
  0x3f   : > { %1314 = vmatprep.mubr.bf16.mxu1 %v4366_v47  ;;  %v4453_v47 = vld [vmem:[%s4944_s16 + $0x178] ss:$20 sps:$4 sm:$0xff]  }
  0x44   : > { %1154 = vmatmul.mubr.bf16.gmra.mxu0 %v4365_v48  ;;  %v4454_v48 = vld [vmem:[%s4944_s16 + $0x1a0] ss:$20 sps:$4 sm:$0xff]  }
  0x45   : > { %1161 = vmatprep.mubr.bf16.mxu0 %v4369_v49  ;;  %v4462_v49 = vld [vmem:[%s6538_s2 + $0x8] sm:$0xff]  }
  0x46   : > { %1315 = vmatmul.mubr.bf16.gmra.mxu1 %v4368_v51  ;;  %4179 = vmatprep.subr.bf16.mxu1 %v4462_v49  ;;  %v4456_v51 = vld [vmem:[%s4944_s16 + $0x1f0] ss:$20 sps:$4 sm:$0xff]  }
  0x47   : > { %1322 = vmatprep.mubr.bf16.mxu1 %v4373_v52  ;;  %4180 = vmatpush3.bf16.msra.mxu1 %v4462_v49  ;;  %v4457_v52 = vld [vmem:[%s4944_s16 + $0x218] ss:$20 sps:$4 sm:$0xff]  }
  0x4c   : > { %1162 = vmatmul.mubr.bf16.gmra.mxu0 %v4371_v53  ;;  %v4458_v53 = vld [vmem:[%s4944_s16 + $0x240] ss:$20 sps:$4 sm:$0xff]  }
  0x4d   : > { %1169 = vmatprep.mubr.bf16.mxu0 %v4376_v54  ;;  %v4459_v54 = vld [vmem:[%s4944_s16 + $0x268] ss:$20 sps:$4 sm:$0xff]  }
  0x4e   : > { %1323 = vmatmul.mubr.bf16.gmra.mxu1 %v4375_v55  ;;  %v428_v55 = vlaneseq }
  0x4f   : > { %1330 = vmatprep.mubr.bf16.mxu1 %v4379_v56 }
  0x50   : > { %v5072_v56 = vshrl.u32 %v428_v55, 7 }
  0x52   : > { %6545 = vst [vmem:[#allocation2_spill] sm:$0xff] %v5072_v56  ;;  %v430_v57 = vsub.s32 0, %v5072_v56 }
  0x54   : > { %1170 = vmatmul.mubr.bf16.gmra.mxu0 %v4378_v58  ;;  %v259_v58 = vld [vmem:[%s6541_s5] sm:$0xff] }
  0x55   : > { %1177 = vmatprep.mubr.bf16.mxu0 %v4382_v59 }
  0x56   : > { %1331 = vmatmul.mubr.bf16.gmra.mxu1 %v4381_v60  ;;  %v5078_v60 = vrot.slane %v259_v58, %v430_v57 }
  0x57   : > { %1338 = vmatprep.mubr.bf16.mxu1 %v4385_v61 }
  0x5c   : > { %1178 = vmatmul.mubr.bf16.gmra.mxu0 %v4384_v62 }
  0x5d   : > { %1185 = vmatprep.mubr.bf16.mxu0 %v4388_v63 }
  0x5e   : > { %1339 = vmatmul.mubr.bf16.gmra.mxu1 %v4387_v0 }
  0x5f   : > { %1346 = vmatprep.mubr.bf16.mxu1 %v4391_v1 }
  0x64   : > { %1186 = vmatmul.mubr.bf16.gmra.mxu0 %v4390_v2 }
  0x65   : > { %1193 = vmatprep.mubr.bf16.mxu0 %v4394_v3 }
  0x66   : > { %1347 = vmatmul.mubr.bf16.gmra.mxu1 %v4393_v4 }
  0x67   : > { %1354 = vmatprep.mubr.bf16.mxu1 %v4398_v5 }
  0x6c   : > { %1194 = vmatmul.mubr.bf16.gmra.mxu0 %v4396_v6 }
  0x6d   : > { %1201 = vmatprep.mubr.bf16.mxu0 %v4401_v7 }
  0x6e   : > { %1355 = vmatmul.mubr.bf16.gmra.mxu1 %v4400_v8 }
  0x6f   : > { %1362 = vmatprep.mubr.bf16.mxu1 %v4404_v9 }
  0x74   : > { %1202 = vmatmul.mubr.bf16.gmra.mxu0 %v4403_v10 }
  0x75   : > { %1209 = vmatprep.mubr.bf16.mxu0 %v4407_v11 }
  0x76   : > { %1363 = vmatmul.mubr.bf16.gmra.mxu1 %v4406_v12 }
  0x77   : > { %1370 = vmatprep.mubr.bf16.mxu1 %v4410_v13 }
  0x7c   : > { %1210 = vmatmul.mubr.bf16.gmra.mxu0 %v4409_v14 }
  0x7d   : > { %1217 = vmatprep.mubr.bf16.mxu0 %v4413_v15 }
  0x7e   : > { %1371 = vmatmul.mubr.bf16.gmra.mxu1 %v4412_v16 }
  0x7f   : > { %1378 = vmatprep.mubr.bf16.mxu1 %v4416_v17 }
  0x84   : > { %1218 = vmatmul.mubr.bf16.gmra.mxu0 %v4415_v18 }
  0x85   : > { %1225 = vmatprep.mubr.bf16.mxu0 %v4419_v19 }
  0x86   : > { %1379 = vmatmul.mubr.bf16.gmra.mxu1 %v4418_v20 }
  0x87   : > { %1386 = vmatprep.mubr.bf16.mxu1 %v4423_v21 }
  0x8c   : > { %1226 = vmatmul.mubr.bf16.gmra.mxu0 %v4421_v22 }
  0x8d   : > { %1233 = vmatprep.mubr.bf16.mxu0 %v4426_v23 }
  0x8e   : > { %1387 = vmatmul.mubr.bf16.gmra.mxu1 %v4425_v24 }
  0x8f   : > { %1394 = vmatprep.mubr.bf16.mxu1 %v4429_v25 }
  0x94   : > { %1234 = vmatmul.mubr.bf16.gmra.mxu0 %v4428_v27  ;;  %v4463_v27 = vld [vmem:[%s6538_s2] sm:$0xff]  }
  0x95   : > { %1241 = vmatprep.mubr.bf16.mxu0 %v4432_v28  ;;  %4181 = vmatprep.subr.bf16.mxu1 %v4463_v27 }
  0x96   : > { %1395 = vmatmul.mubr.bf16.gmra.mxu1 %v4431_v29 }
  0x97   : > { %1402 = vmatprep.mubr.bf16.mxu1 %v4435_v30  ;;  %4182 = vmatpush3.bf16.msra.mxu1 %v4463_v27 }
  0x9c   : > { %1242 = vmatmul.mubr.bf16.gmra.mxu0 %v4434_v31 }
  0x9d   : > { %1249 = vmatprep.mubr.bf16.mxu0 %v4438_v32 }
  0x9e   : > { %1403 = vmatmul.mubr.bf16.gmra.mxu1 %v4437_v33 }
  0x9f   : > { %1410 = vmatprep.mubr.bf16.mxu1 %v4441_v34 }
  0xa4   : > { %1250 = vmatmul.mubr.bf16.gmra.mxu0 %v4440_v35 }
  0xa5   : > { %4143 = vmatprep.mubr.msk.bf16.mxu0 %vm1048_vm0, %v4444_v36 }
  0xa6   : > { %1411 = vmatmul.mubr.bf16.gmra.mxu1 %v4443_v37 }
  0xac   : > { %4144 = vmatmul.mubr.msk.bf16.vlgmr.msra.gmra.mxu0 %vm1048_vm0, %v4445_v38 }
  0xad   : > { %4147 = vmatprep.mubr.msk.bf16.mxu0 %vm1048_vm0, %v4446_v39 }
  0xb4   : > { %4148 = vmatmul.mubr.msk.bf16.gmra.mxu0 %vm1048_vm0, %v4447_v41 }
  0xb5   : > { %4151 = vmatprep.mubr.msk.bf16.mxu0 %vm1048_vm0, %v4448_v42 }
  0xbc   : > { %4152 = vmatmul.mubr.msk.bf16.gmra.mxu0 %vm1048_vm0, %v4449_v43 }
  0xbd   : > { %4155 = vmatprep.mubr.msk.bf16.mxu0 %vm1048_vm0, %v4450_v44 }
  0xc4   : > { %4156 = vmatmul.mubr.msk.bf16.gmra.mxu0 %vm1048_vm0, %v4451_v45 }
  0xc5   : > { %4159 = vmatprep.mubr.msk.bf16.mxu0 %vm1048_vm0, %v4452_v46 }
  0xcc   : > { %4160 = vmatmul.mubr.msk.bf16.gmra.mxu0 %vm1048_vm0, %v4453_v47 }
  0xcd   : > { %4163 = vmatprep.mubr.msk.bf16.mxu0 %vm1048_vm0, %v4454_v48 }
  0xd4   : > { %4164 = vmatmul.mubr.msk.bf16.gmra.mxu0 %vm1048_vm0, %v4455_v50 }
  0xd5   : > { %4167 = vmatprep.mubr.msk.bf16.mxu0 %vm1048_vm0, %v4456_v51 }
  0xdc   : > { %4168 = vmatmul.mubr.msk.bf16.gmra.mxu0 %vm1048_vm0, %v4457_v52 }
  0xdd   : > { %4171 = vmatprep.mubr.msk.bf16.mxu0 %vm1048_vm0, %v4458_v53 }
  0xe4   : > { %4172 = vmatmul.mubr.msk.bf16.gmra.mxu0 %vm1048_vm0, %v4459_v54 }
  0xec   : > { %v3843_v59 = vpop.f32.mrf.mxu0 }
  0xee   : > { %v3844_v61 = vpop.f32.mrf.mxu0  ;;  %v3955_v63 = vpop.f32.mrf.mxu1 }
  0xef   : > { %v3845_v62 = vadd.f32 %v3844_v61, %v3843_v59 }
  0xf0   : > { %v3846_v0 = vpop.f32.mrf.mxu0  ;;  %v3956_v2 = vpop.f32.mrf.mxu1 }
  0xf1   : > { %v1132_v1 = vadd.f32 %v3845_v62, %v5078_v60  ;;  %v3957_v3 = vadd.f32 %v3956_v2, %v3955_v63 }
  0xf2   : > { %v3847_v4 = vpop.f32.mrf.mxu0  ;;  %v3958_v6 = vpop.f32.mrf.mxu1 }
  0xf3   : > { %v3848_v5 = vadd.f32 %v3847_v4, %v3846_v0  ;;  %v5081_v8 = vadd.f32 %v3957_v3, %v1132_v1 }
  0xf4   : > { %v3849_v7 = vpop.f32.mrf.mxu0  ;;  %v3959_v10 = vpop.f32.mrf.mxu1 }
  0xf5   : > { %v1135_v9 = vadd.f32 %v3848_v5, %v5078_v60  ;;  %v3960_v11 = vadd.f32 %v3959_v10, %v3958_v6 }
  0xf6   : > { %v3850_v12 = vpop.f32.mrf.mxu0  ;;  %v5086_v14 = vpop.f32.mrf.mxu1 }
  0xf7   : > { %v5084_v13 = vadd.f32 %v3850_v12, %v3849_v7  ;;  %v5090_v16 = vadd.f32 %v3960_v11, %v1135_v9 }
  0xf8   : > { %v5088_v15 = vpop.f32.mrf.mxu0  ;;  %v5092_v17 = vpop.f32.mrf.mxu1 }
  0xfa   : > { %v5094_v18 = vpop.f32.mrf.mxu0  ;;  %v5096_v19 = vpop.f32.mrf.mxu1 }
  0xfc   : > { %v3855_v20 = vpop.f32.mrf.mxu0  ;;  %v5098_v21 = vpop.f32.mrf.mxu1 }
  0xfe   : > { %v3856_v22 = vpop.f32.mrf.mxu0  ;;  %v5102_v24 = vpop.f32.mrf.mxu1 }
  0xff   : > { %v5100_v23 = vadd.f32 %v3856_v22, %v3855_v20 }
 0x100   : > { %v5104_v25 = vpop.f32.mrf.mxu0  ;;  %v5106_v26 = vpop.f32.mrf.mxu1 }
 0x102   : > { %v5111_v28 = vpop.f32.mrf.mxu0  ;;  %v5113_v29 = vpop.f32.mrf.mxu1 }
 0x104   : > { %v3861_v30 = vpop.f32.mrf.mxu0  ;;  %v5115_v31 = vpop.f32.mrf.mxu1 }
 0x106   : > { %v3862_v32 = vpop.f32.mrf.mxu0  ;;  %v5119_v34 = vpop.f32.mrf.mxu1 }
 0x107   : > { %v5117_v33 = vadd.f32 %v3862_v32, %v3861_v30 }
 0x108   : > { %v5121_v35 = vpop.f32.mrf.mxu0  ;;  %v5123_v36 = vpop.f32.mrf.mxu1 }
 0x10a   : > { %v5125_v37 = vpop.f32.mrf.mxu0  ;;  %v5127_v38 = vpop.f32.mrf.mxu1 }
 0x10c   : > { %v3867_v39 = vpop.f32.mrf.mxu0  ;;  %v5129_v40 = vpop.f32.mrf.mxu1 }
 0x10e   : > { %v3868_v41 = vpop.f32.mrf.mxu0  ;;  %v5133_v43 = vpop.f32.mrf.mxu1 }
 0x10f   : > { %v5131_v42 = vadd.f32 %v3868_v41, %v3867_v39 }
 0x110   : > { %v3870_v44 = vpop.f32.mrf.mxu0  ;;  %v5135_v45 = vpop.f32.mrf.mxu1 }
 0x112   : > { %v3871_v46 = vpop.f32.mrf.mxu0  ;;  %v5139_v48 = vpop.f32.mrf.mxu1 }
 0x113   : > { %v5137_v47 = vadd.f32 %v3871_v46, %v3870_v44 }
 0x114   : > { %v3873_v49 = vpop.f32.mrf.mxu0  ;;  %v5141_v50 = vpop.f32.mrf.mxu1 }
 0x116   : > { %v3874_v51 = vpop.f32.mrf.mxu0  ;;  %v5145_v53 = vpop.f32.mrf.mxu1 }
 0x117   : > { %v5143_v52 = vadd.f32 %v3874_v51, %v3873_v49 }
 0x118   : > { %v3876_v54 = vpop.f32.mrf.mxu0  ;;  %v5147_v55 = vpop.f32.mrf.mxu1 }
 0x11a   : > { %v3877_v57 = vpop.f32.mrf.mxu0  ;;  %v5151_v59 = vpop.f32.mrf.mxu1 }
 0x11b   : > { %v5149_v58 = vadd.f32 %v3877_v57, %v3876_v54 }
 0x11c   : > { %v3879_v61 = vpop.f32.mrf.mxu0  ;;  %v5153_v62 = vpop.f32.mrf.mxu1 }
 0x11e   : > { %v3880_v63 = vpop.f32.mrf.mxu0  ;;  %v5157_v1 = vpop.f32.mrf.mxu1 }
 0x11f   : > { %v5155_v0 = vadd.f32 %v3880_v63, %v3879_v61 }
 0x120   : > { %v3882_v2 = vpop.f32.mrf.mxu0  ;;  %v5159_v3 = vpop.f32.mrf.mxu1 }
 0x122   : > { %v3883_v4 = vpop.f32.mrf.mxu0  ;;  %v5163_v6 = vpop.f32.mrf.mxu1 }
 0x123   : > { %v5161_v5 = vadd.f32 %v3883_v4, %v3882_v2 }
 0x124   : > { %v3885_v7 = vpop.f32.mrf.mxu0  ;;  %v5165_v9 = vpop.f32.mrf.mxu1 }
 0x126   : > { %v3886_v10 = vpop.f32.mrf.mxu0  ;;  %v5169_v12 = vpop.f32.mrf.mxu1 }
 0x127   : > { %v5167_v11 = vadd.f32 %v3886_v10, %v3885_v7 }
 0x128   : > { %v3888_v20 = vpop.f32.mrf.mxu0  ;;  %v5171_v22 = vpop.f32.mrf.mxu1 }
 0x12a   : > { %v3889_v27 = vpop.f32.mrf.mxu0  ;;  %v5175_v32 = vpop.f32.mrf.mxu1 }
 0x12b   : > { %v5173_v30 = vadd.f32 %v3889_v27, %v3888_v20 }
 0x12c   : > { %v3891_v39 = vpop.f32.mrf.mxu0  ;;  %v5177_v41 = vpop.f32.mrf.mxu1 }
 0x12e   : > { %v3892_v44 = vpop.f32.mrf.mxu0  ;;  %v5181_v49 = vpop.f32.mrf.mxu1 }
 0x12f   : > { %v5179_v46 = vadd.f32 %v3892_v44, %v3891_v39  ;;  %6547 = vst [vmem:[#allocation4_spill] sm:$0xff] %v5181_v49 }
 0x130   : > { %v3894_v51 = vpop.f32.mrf.mxu0  ;;  %v5183_v54 = vpop.f32.mrf.mxu1 }
 0x131   : > { %6546 = vst [vmem:[#allocation3_spill] sm:$0xff] %v5179_v46  ;;  %6548 = vst [vmem:[#allocation5_spill] sm:$0xff] %v5183_v54 }
 0x132   : > { %v3895_v57 = vpop.f32.mrf.mxu0  ;;  %v5187_v63 = vpop.f32.mrf.mxu1 }
 0x133   : > { %v5185_v61 = vadd.f32 %v3895_v57, %v3894_v51  ;;  %6550 = vst [vmem:[#allocation7_spill] sm:$0xff] %v5187_v63 }
 0x134   : > { %v3897_v2 = vpop.f32.mrf.mxu0  ;;  %v5189_v4 = vpop.f32.mrf.mxu1 }
 0x135   : > { %6549 = vst [vmem:[#allocation6_spill] sm:$0xff] %v5185_v61  ;;  %6551 = vst [vmem:[#allocation8_spill] sm:$0xff] %v5189_v4 }
 0x136   : > { %v3898_v7 = vpop.f32.mrf.mxu0  ;;  %v5193_v20 = vpop.f32.mrf.mxu1 }
 0x137   : > { %v5191_v10 = vadd.f32 %v3898_v7, %v3897_v2  ;;  %6553 = vst [vmem:[#allocation10_spill] sm:$0xff] %v5193_v20 }
 0x138   : > { %v3900_v27 = vpop.f32.mrf.mxu0  ;;  %v5195_v39 = vpop.f32.mrf.mxu1 }
 0x139   : > { %6552 = vst [vmem:[#allocation9_spill] sm:$0xff] %v5191_v10  ;;  %6554 = vst [vmem:[#allocation11_spill] sm:$0xff] %v5195_v39 }
 0x13a   : > { %v3901_v44 = vpop.f32.mrf.mxu0  ;;  %v5199_v54 = vpop.f32.mrf.mxu1 }
 0x13b   : > { %v5197_v56 = vadd.f32 %v3901_v44, %v3900_v27  ;;  %6556 = vst [vmem:[#allocation13_spill] sm:$0xff] %v5199_v54  ;;  %v4464_v27 = vld [vmem:[%s6539_s3 + $0x18] sm:$0xff]   ;;  %v4465_v44 = vld [vmem:[%s6539_s3 + $0x10] sm:$0xff]  }
 0x13c   : > { %v3903_v51 = vpop.f32.mrf.mxu0  ;;  %v5201_v61 = vpop.f32.mrf.mxu1  ;;  %4215 = vmatprep.subr.bf16.mxu0 %v4464_v27 }
 0x13d   : > { %6555 = vst [vmem:[#allocation12_spill] sm:$0xff] %v5197_v56  ;;  %6557 = vst [vmem:[#allocation14_spill] sm:$0xff] %v5201_v61  ;;  %4216 = vmatpush3.bf16.msra.mxu0 %v4464_v27 }
 0x13e   : > { %v3904_v57 = vpop.f32.mrf.mxu0  ;;  %v5205_v2 = vpop.f32.mrf.mxu1  ;;  %4217 = vmatprep.subr.bf16.mxu0 %v4465_v44 }
 0x13f   : > { %v5203_v63 = vadd.f32 %v3904_v57, %v3903_v51  ;;  %6559 = vst [vmem:[#allocation16_spill] sm:$0xff] %v5205_v2 }
 0x140   : > { %v3906_v4 = vpop.f32.mrf.mxu0  ;;  %v5215_v56 = vpop.f32.mrf.mxu1 }
 0x141   : > { %6558 = vst [vmem:[#allocation15_spill] sm:$0xff] %v5203_v63  ;;  %6561 = vst [vmem:[#allocation18_spill] sm:$0xff] %v5215_v56  ;;  %4218 = vmatpush3.bf16.msra.mxu0 %v4465_v44 }
 0x142   : > { %v3907_v49 = vpop.f32.mrf.mxu0 }
 0x143   : > { %v5207_v7 = vadd.f32 %v3907_v49, %v3906_v4  ;;  %v5219_v4 = vpop.f32.mrf.mxu1 }
 0x144   : > { %v3909_v20 = vpop.f32.mrf.mxu0  ;;  %6563 = vst [vmem:[#allocation20_spill] sm:$0xff] %v5219_v4 }
 0x145   : > { %6560 = vst [vmem:[#allocation17_spill] sm:$0xff] %v5207_v7  ;;  %v5223_v61 = vpop.f32.mrf.mxu1 }
 0x146   : > { %v3910_v54 = vpop.f32.mrf.mxu0  ;;  %6565 = vst [vmem:[#allocation22_spill] sm:$0xff] %v5223_v61 }
 0x147   : > { %v5217_v51 = vadd.f32 %v3910_v54, %v3909_v20  ;;  %v5227_v54 = vpop.f32.mrf.mxu1 }
 0x148   : > { %v3912_v57 = vpop.f32.mrf.mxu0  ;;  %6567 = vst [vmem:[#allocation24_spill] sm:$0xff] %v5227_v54 }
 0x149   : > { %6562 = vst [vmem:[#allocation19_spill] sm:$0xff] %v5217_v51  ;;  %v5231_v46 = vpop.f32.mrf.mxu1 }
 0x14a   : > { %v3913_v49 = vpop.f32.mrf.mxu0 }
 0x14b   : > { %v5221_v7 = vadd.f32 %v3913_v49, %v3912_v57  ;;  %v5235_v44 = vpop.f32.mrf.mxu1 }
 0x14c   : > { %v3915_v2 = vpop.f32.mrf.mxu0 }
 0x14d   : > { %6564 = vst [vmem:[#allocation21_spill] sm:$0xff] %v5221_v7 }
 0x14e   : > { %v3916_v63 = vpop.f32.mrf.mxu0 }
 0x14f   : > { %v5225_v39 = vadd.f32 %v3916_v63, %v3915_v2 }
 0x150   : > { %v3918_v10 = vpop.f32.mrf.mxu0 }
 0x151   : > { %6566 = vst [vmem:[#allocation23_spill] sm:$0xff] %v5225_v39  ;;  %v5239_v39 = vpop.f32.mrf.mxu1 }
 0x152   : > { %v3919_v56 = vpop.f32.mrf.mxu0 }
 0x153   : > { %v5229_v20 = vadd.f32 %v3919_v56, %v3918_v10 }
 0x154   : > { %v3921_v27 = vpop.f32.mrf.mxu0 }
 0x155   : > { %6568 = vst [vmem:[#allocation25_spill] sm:$0xff] %v5229_v20  ;;  %v5243_v20 = vpop.f32.mrf.mxu1 }
 0x156   : > { %v3922_v51 = vpop.f32.mrf.mxu0 }
 0x157   : > { %v5233_v4 = vadd.f32 %v3922_v51, %v3921_v27  ;;  %v3854_v51 = vadd.f32 %v5094_v18, %v5088_v15  ;;  %v3860_v15 = vadd.f32 %v5111_v28, %v5104_v25  ;;  %v3972_v25 = vadd.f32 %v5115_v31, %v5113_v29 }
 0x158   : > { %v3924_v57 = vpop.f32.mrf.mxu0  ;;  %v1156_v28 = vadd.f32 %v5117_v33, %v5078_v60  ;;  %v3981_v29 = vadd.f32 %v5135_v45, %v5133_v43  ;;  %v1167_v31 = vadd.f32 %v5137_v47, %v5078_v60  ;;  %v3990_v45 = vadd.f32 %v5153_v62, %v5151_v59 }
 0x159   : > { %6569 = vst [vmem:[#allocation26_spill] sm:$0xff] %v5233_v4 }
 0x15a   : > { %v3925_v49 = vpop.f32.mrf.mxu0 }
 0x15b   : > { %v5237_v7 = vadd.f32 %v3925_v49, %v3924_v57  ;;  %v1140_v57 = vadd.f32 %v5084_v13, %v5078_v60  ;;  %v3963_v49 = vadd.f32 %v5092_v17, %v5086_v14  ;;  %v3866_v13 = vadd.f32 %v5125_v37, %v5121_v35 }
 0x15c   : > { %v3927_v63 = vpop.f32.mrf.mxu0  ;;  %v3975_v37 = vadd.f32 %v5123_v36, %v5119_v34  ;;  %v3984_v36 = vadd.f32 %v5141_v50, %v5139_v48  ;;  %v1180_v48 = vadd.f32 %v5155_v0, %v5078_v60  ;;  %v3993_v50 = vadd.f32 %v5159_v3, %v5157_v1 }
 0x15d   : > { %6570 = vst [vmem:[#allocation27_spill] sm:$0xff] %v5237_v7  ;;  %v5253_v7 = vpop.f32.mrf.mxu1  ;;  %v1301_v17 = vadd.f32 %v3963_v49, %v1140_v57 }
 0x15e   : > { %v3928_v2 = vpop.f32.mrf.mxu0 }
 0x15f   : > { %v5241_v61 = vadd.f32 %v3928_v2, %v3927_v63  ;;  %v1143_v2 = vadd.f32 %v3854_v51, %v5078_v60  ;;  %v5268_v14 = vpop.f32.mrf.mxu1  ;;  %v3969_v51 = vadd.f32 %v5106_v26, %v5102_v24  ;;  %v3978_v24 = vadd.f32 %v5129_v40, %v5127_v38 }
 0x160   : > { %v3930_v56 = vpop.f32.mrf.mxu0  ;;  %v1164_v26 = vadd.f32 %v5131_v42, %v5078_v60  ;;  %v1172_v38 = vadd.f32 %v5143_v52, %v5078_v60  ;;  %v3987_v40 = vadd.f32 %v5147_v55, %v5145_v53  ;;  %v1175_v42 = vadd.f32 %v5149_v58, %v5078_v60 }
 0x161   : > { %v5292_v33 = vpop.f32.mrf.mxu1  ;;  %v1183_v52 = vadd.f32 %v5161_v5, %v5078_v60  ;;  %v3996_v53 = vadd.f32 %v5165_v9, %v5163_v6  ;;  %v5328_v6 = vadd.f32 %v3984_v36, %v1167_v31 }
 0x162   : > { %v3931_v10 = vpop.f32.mrf.mxu0  ;;  %v1325_v3 = vadd.f32 %v3981_v29, %v1164_v26  ;;  %v6573_v29 = vld [vmem:[#allocation5_spill] sm:$0xff] }
 0x163   : > { %v5245_v54 = vadd.f32 %v3931_v10, %v3930_v56  ;;  %v3966_v56 = vadd.f32 %v5098_v21, %v5096_v19  ;;  %v5319_v58 = vpop.f32.mrf.mxu1 }
 0x164   : > { %v3933_v27 = vpop.f32.mrf.mxu0 }
 0x165   : > { %v1304_v21 = vadd.f32 %v3966_v56, %v1143_v2  ;;  %v1317_v2 = vadd.f32 %v3975_v37, %v1156_v28  ;;  %v3999_v28 = vadd.f32 %v5171_v22, %v5169_v12  ;;  %v1191_v37 = vadd.f32 %v5173_v30, %v5078_v60  ;;  %v6574_v12 = vld [vmem:[#allocation6_spill] sm:$0xff]  ;;  %v6576_v30 = vld [vmem:[#allocation8_spill] sm:$0xff] }
 0x166   : > { %v3934_v4 = vpop.f32.mrf.mxu0  ;;  %v1199_v22 = vadd.f32 %v6574_v12, %v5078_v60  ;;  %v6588_v12 = vld [vmem:[#allocation22_spill] sm:$0xff] }
 0x167   : > { %v5255_v63 = vadd.f32 %v3934_v4, %v3933_v27  ;;  %v1148_v4 = vadd.f32 %v5100_v23, %v5078_v60  ;;  %v1151_v27 = vadd.f32 %v3860_v15, %v5078_v60  ;;  %v1159_v23 = vadd.f32 %v3866_v13, %v5078_v60 }
 0x168   : > { %v5260_v10 = vpop.f32.mrf.mxu0 }
 0x169   : > { %v1309_v56 = vadd.f32 %v3969_v51, %v1148_v4  ;;  %v1320_v15 = vadd.f32 %v3978_v24, %v1159_v23  ;;  %v1312_v1 = vadd.f32 %v3972_v25, %v1151_v27  ;;  %v1188_v4 = vadd.f32 %v5167_v11, %v5078_v60  ;;  %v5336_v51 = vpop.f32.mrf.mxu1  ;;  %v6571_v24 = vld [vmem:[#allocation3_spill] sm:$0xff] }
 0x16a   : > { %v5266_v18 = vpop.f32.mrf.mxu0  ;;  %v4002_v23 = vadd.f32 %v5177_v41, %v5175_v32  ;;  %v1196_v26 = vadd.f32 %v6571_v24, %v5078_v60  ;;  %v6577_v32 = vld [vmem:[#allocation9_spill] sm:$0xff] }
 0x16b   : > { %v1204_v41 = vadd.f32 %v6577_v32, %v5078_v60  ;;  %v6586_v24 = vld [vmem:[#allocation17_spill] sm:$0xff]  ;;  %v6589_v32 = vld [vmem:[#allocation19_spill] sm:$0xff] }
 0x16c   : > { %v4145_v19 = vpop.f32.mrf.mxu0 }
 0x16d   : > { %v5279_v35 = vadd.f32 %v4145_v19, %v1301_v17  ;;  %v1333_v17 = vadd.f32 %v3987_v40, %v1172_v38  ;;  %v1336_v19 = vadd.f32 %v3990_v45, %v1175_v42  ;;  %v6575_v38 = vld [vmem:[#allocation7_spill] sm:$0xff]  ;;  %v6578_v42 = vld [vmem:[#allocation10_spill] sm:$0xff] }
 0x16e   : > { %v1453_v57 = vpop.f32.mrf.mxu0  ;;  %v4008_v40 = vadd.f32 %v6576_v30, %v6575_v38 }
 0x16f   : > { %v1614_v49 = vmul.f32 0.70710677, %v5279_v35  ;;  %v5296_v34 = vadd.f32 %v1453_v57, %v5081_v8  ;;  %v6572_v57 = vld [vmem:[#allocation4_spill] sm:$0xff] }
 0x170   : > { %v4146_v43 = vpop.f32.mrf.mxu0  ;;  %v4005_v31 = vadd.f32 %v6573_v29, %v6572_v57  ;;  %v6587_v29 = vld [vmem:[#allocation20_spill] sm:$0xff] }
 0x171   : > { %4476 = verf.f32 %v1614_v49  ;;  %v1612_v8 = vmul.f32 0.70710677, %v5296_v34  ;;  %v5309_v47 = vadd.f32 %v4146_v43, %v1304_v21  ;;  %v5330_v21 = vadd.f32 %v3993_v50, %v1180_v48  ;;  %v6579_v43 = vld [vmem:[#allocation11_spill] sm:$0xff]  ;;  %v6580_v48 = vld [vmem:[#allocation12_spill] sm:$0xff] }
 0x172   : > { %v1456_v55 = vpop.f32.mrf.mxu0  ;;  %v4011_v45 = vadd.f32 %v6579_v43, %v6578_v42  ;;  %v1207_v50 = vadd.f32 %v6580_v48, %v5078_v60  ;;  %v1220_v42 = vadd.f32 %v6589_v32, %v5078_v60  ;;  %v6590_v43 = vld [vmem:[#allocation24_spill] sm:$0xff] }
 0x173   : > { %4478 = verf.f32 %v1612_v8  ;;  %v1615_v59 = vmul.f32 0.70710677, %v5309_v47  ;;  %v5323_v62 = vadd.f32 %v1456_v55, %v5090_v16  ;;  %v5332_v16 = vadd.f32 %v3996_v53, %v1183_v52  ;;  %v5364_v52 = vpop.f32.mrf.mxu1 }
 0x174   : > { %v4149_v0 = vpop.f32.mrf.mxu0 }
 0x175   : > { %4480 = verf.f32 %v1615_v59  ;;  %v1613_v5 = vmul.f32 0.70710677, %v5323_v62  ;;  %v5326_v13 = vadd.f32 %v4149_v0, %v1317_v2  ;;  %v6581_v59 = vld [vmem:[#allocation13_spill] sm:$0xff]  ;;  %v6582_v2 = vld [vmem:[#allocation14_spill] sm:$0xff] }
 0x176   : > { %v1469_v9 = vpop.f32.mrf.mxu0  ;;  %v4014_v0 = vadd.f32 %v6582_v2, %v6581_v59  ;;  %v1349_v59 = vadd.f32 %v3999_v28, %v1188_v4  ;;  %v1352_v2 = vadd.f32 %v4002_v23, %v1191_v37 }
 0x177   : > { %4482 = verf.f32 %v1613_v5  ;;  %v1618_v27 = vmul.f32 0.70710677, %v5326_v13  ;;  %v5339_v25 = vadd.f32 %v1469_v9, %v1309_v56  ;;  %v6583_v56 = vld [vmem:[#allocation15_spill] sm:$0xff]  ;;  %v6584_v5 = vld [vmem:[#allocation16_spill] sm:$0xff]  ;;  %v6585_v9 = vld [vmem:[#allocation18_spill] sm:$0xff] }
 0x178   : > { %v4150_v11 = vpop.f32.mrf.mxu0 }
 0x179   : > { %4484 = verf.f32 %v1618_v27  ;;  %v1616_v49 = vmul.f32 0.70710677, %v5339_v25  ;;  %v5352_v36 = vadd.f32 %v4150_v11, %v1320_v15  ;;  %v1212_v15 = vadd.f32 %v6583_v56, %v5078_v60  ;;  %v5386_v56 = vpop.f32.mrf.mxu1 }
 0x17a   : > { %v1472_v8 = vpop.f32.mrf.mxu0  ;;  %v4017_v27 = vadd.f32 %v6585_v9, %v6584_v5  ;;  %v1215_v11 = vadd.f32 %v6586_v24, %v5078_v60  ;;  %v5391_v9 = vadd.f32 %v4008_v40, %v1199_v22 }
 0x17b   : > { %4486 = verf.f32 %v1616_v49  ;;  %v1619_v53 = vmul.f32 0.70710677, %v5352_v36  ;;  %v5367_v55 = vadd.f32 %v1472_v8, %v1312_v1  ;;  %v4020_v49 = vadd.f32 %v6588_v12, %v6587_v29 }
 0x17c   : > { %v4153_v57 = vpop.f32.mrf.mxu0  ;;  %v4023_v8 = vadd.f32 %v5231_v46, %v6590_v43  ;;  %v5395_v12 = vadd.f32 %v4011_v45, %v1204_v41  ;;  %v5397_v46 = vadd.f32 %v4014_v0, %v1207_v50  ;;  %v5401_v28 = vadd.f32 %v4017_v27, %v1212_v15  ;;  %v5410_v41 = vpop.f32.mrf.mxu1 }
 0x17d   : > { %4488 = verf.f32 %v1619_v53  ;;  %v1617_v1 = vmul.f32 0.70710677, %v5367_v55  ;;  %v5380_v38 = vadd.f32 %v4153_v57, %v1333_v17  ;;  %v5389_v53 = vadd.f32 %v4005_v31, %v1196_v26 }
 0x17e   : > { %v4477_v30 = vpop.eup %4476  ;;  %v1485_v48 = vpop.f32.mrf.mxu0  ;;  %v5403_v37 = vadd.f32 %v4020_v49, %v1215_v11  ;;  %v1582_v26 = vmul.f32 0.5, %v5279_v35  ;;  %v1580_v31 = vmul.f32 0.5, %v5296_v34  ;;  %v5408_v40 = vadd.f32 %v4023_v8, %v1220_v42  ;;  %v6592_v8 = vld [vmem:[#allocation23_spill] sm:$0xff] }
 0x17f   : > { %4490 = verf.f32 %v1617_v1  ;;  %v1622_v5 = vmul.f32 0.70710677, %v5380_v38  ;;  %v1678_v24 = vadd.f32 1.0, %v4477_v30  ;;  %v5393_v57 = vadd.f32 %v1485_v48, %v1325_v3 }
 0x180   : > { %v4479_v17 = vpop.eup %4478  ;;  %v4154_v29 = vpop.f32.mrf.mxu0  ;;  %v1581_v11 = vmul.f32 0.5, %v5323_v62  ;;  %v4026_v43 = vadd.f32 %v5239_v39, %v5235_v44  ;;  %v1228_v62 = vadd.f32 %v6592_v8, %v5078_v60 }
 0x181   : > { %4492 = verf.f32 %v1622_v5  ;;  %v5399_v4 = vadd.f32 %v4154_v29, %v1336_v19  ;;  %v1620_v3 = vmul.f32 0.70710677, %v5393_v57  ;;  %v1676_v45 = vadd.f32 1.0, %v4479_v17  ;;  %v5429_v17 = vpop.f32.mrf.mxu1 }
 0x182   : > { %v4481_v23 = vpop.eup %4480  ;;  %v1488_v22 = vpop.f32.mrf.mxu0  ;;  %v1583_v19 = vmul.f32 0.5, %v5309_v47  ;;  %v1710_v27 = vmul.f32 %v1678_v24, %v1582_v26  ;;  %v6591_v47 = vld [vmem:[#allocation21_spill] sm:$0xff]  ;;  %v4029_v5 = vadd.f32 %v5253_v7, %v5243_v20  ;;  %v4032_v7 = vadd.f32 %v5292_v33, %v5268_v14 }
 0x183   : > { %v1679_v50 = vadd.f32 1.0, %v4481_v23  ;;  %v1623_v0 = vmul.f32 0.70710677, %v5399_v4  ;;  %4494 = verf.f32 %v1620_v3  ;;  %v5416_v35 = vadd.f32 %v1488_v22, %v5328_v6  ;;  %v6593_v22 = vld [vmem:[#allocation25_spill] sm:$0xff] }
 0x184   : > { %v4483_v15 = vpop.eup %4482  ;;  %v4157_v34 = vpop.f32.mrf.mxu0  ;;  %v1223_v42 = vadd.f32 %v6591_v47, %v5078_v60 }
 0x185   : > { %v1711_v49 = vmul.f32 %v1679_v50, %v1583_v19  ;;  %v1677_v1 = vadd.f32 1.0, %v4483_v15  ;;  %4496 = verf.f32 %v1623_v0  ;;  %v5418_v30 = vadd.f32 %v4157_v34, %v1349_v59 }
 0x186   : > { %v4485_v32 = vpop.eup %4484  ;;  %v1621_v48 = vmul.f32 0.70710677, %v5416_v35  ;;  %v1501_v6 = vpop.f32.mrf.mxu0  ;;  %v1708_v59 = vmul.f32 %v1676_v45, %v1580_v31  ;;  %v1231_v19 = vadd.f32 %v6593_v22, %v5078_v60  ;;  %v1586_v45 = vmul.f32 0.5, %v5326_v13 }
 0x187   : > { %v1741_v24 = vpack.c.bf16 %v1711_v49, %v1710_v27  ;;  %v1709_v29 = vmul.f32 %v1677_v1, %v1581_v11  ;;  %v1682_v26 = vadd.f32 1.0, %v4485_v32  ;;  %v1626_v3 = vmul.f32 0.70710677, %v5418_v30  ;;  %v5444_v27 = vpop.f32.mrf.mxu1 }
 0x188   : > { %v4487_v23 = vpop.eup %4486  ;;  %4498 = verf.f32 %v1621_v48  ;;  %v5433_v39 = vadd.f32 %v1501_v6, %v5330_v21  ;;  %v4158_v44 = vpop.f32.mrf.mxu0  ;;  %v1584_v0 = vmul.f32 0.5, %v5339_v25  ;;  %v1587_v34 = vmul.f32 0.5, %v5352_v36 }
 0x189   : > { %v1740_v20 = vpack.c.bf16 %v1709_v29, %v1708_v59  ;;  %v5439_v50 = vadd.f32 %v4158_v44, %v1352_v2  ;;  %4500 = verf.f32 %v1626_v3  ;;  %v1680_v11 = vadd.f32 1.0, %v4487_v23 }
 0x18a   : > { %v4489_v31 = vpop.eup %4488  ;;  %v1624_v15 = vmul.f32 0.70710677, %v5433_v39  ;;  %v1504_v21 = vpop.f32.mrf.mxu0  ;;  %v1714_v2 = vmul.f32 %v1682_v26, %v1586_v45  ;;  %v1585_v13 = vmul.f32 0.5, %v5367_v55  ;;  %v1384_v59 = vadd.f32 %v4026_v43, %v1223_v42 }
 0x18b   : > { %v1683_v49 = vadd.f32 1.0, %v4489_v31  ;;  %v1627_v14 = vmul.f32 0.70710677, %v5439_v50  ;;  %4183 = vmatprep.mubr.msk.bf16.mxu1 %vm1048_vm0, %v1740_v20  ;;  %v5451_v25 = vadd.f32 %v1504_v21, %v5332_v16  ;;  %v5458_v29 = vadd.f32 %v4029_v5, %v1228_v62  ;;  %v6594_v16 = vld [vmem:[#allocation26_spill] sm:$0xff]  ;;  %v5464_v26 = vpop.f32.mrf.mxu1  ;;  %v6595_v5 = vld [vmem:[#allocation27_spill] sm:$0xff] }
 0x18c   : > { %v4491_v33 = vpop.eup %4490  ;;  %4502 = verf.f32 %v1624_v15  ;;  %v4161_v1 = vpop.f32.mrf.mxu0  ;;  %4184 = vmatmul.mubr.msk.bf16.vlgmr.msra.gmra.mxu1 %vm1048_vm0, %v1741_v24  ;;  %v5460_v55 = vadd.f32 %v4032_v7, %v1231_v19  ;;  %v1236_v23 = vadd.f32 %v6594_v16, %v5078_v60  ;;  %v1712_v24 = vmul.f32 %v1680_v11, %v1584_v0 }
 0x18d   : > { %v1715_v32 = vmul.f32 %v1683_v49, %v1587_v34  ;;  %v1681_v47 = vadd.f32 1.0, %v4491_v33  ;;  %4504 = verf.f32 %v1627_v14  ;;  %v5455_v36 = vadd.f32 %v4161_v1, %v5395_v12  ;;  %v4045_v15 = vpop.f32.mrf.mxu1 }
 0x18e   : > { %v4493_v8 = vpop.eup %4492  ;;  %v1625_v48 = vmul.f32 0.70710677, %v5451_v25  ;;  %v1517_v6 = vpop.f32.mrf.mxu0  ;;  %v4035_v12 = vadd.f32 %v5336_v51, %v5319_v58  ;;  %v1239_v19 = vadd.f32 %v6595_v5, %v5078_v60  ;;  %v4038_v58 = vadd.f32 %v5386_v56, %v5364_v52 }
 0x18f   : > { %v1743_v3 = vpack.c.bf16 %v1715_v32, %v1714_v2  ;;  %v1713_v44 = vmul.f32 %v1681_v47, %v1585_v13  ;;  %v1630_v22 = vmul.f32 0.70710677, %v5455_v36  ;;  %v5470_v42 = vadd.f32 %v1517_v6, %v5389_v53  ;;  %v4046_v32 = vpop.f32.mrf.mxu1 }
 0x190   : > { %4506 = verf.f32 %v1625_v48  ;;  %v4162_v43 = vpop.f32.mrf.mxu0  ;;  %v4495_v62 = vpop.eup %4494  ;;  %v1686_v20 = vadd.f32 1.0, %v4493_v8  ;;  %v1590_v51 = vmul.f32 0.5, %v5380_v38  ;;  %v1591_v21 = vmul.f32 0.5, %v5399_v4 }
 0x191   : > { %v1742_v7 = vpack.c.bf16 %v1713_v44, %v1712_v24  ;;  %v5475_v31 = vadd.f32 %v4162_v43, %v5397_v46  ;;  %4508 = verf.f32 %v1630_v22  ;;  %v1628_v53 = vmul.f32 0.70710677, %v5470_v42 }
 0x192   : > { %v4497_v45 = vpop.eup %4496  ;;  %v1520_v0 = vpop.f32.mrf.mxu0  ;;  %v1244_v52 = vadd.f32 %v5241_v61, %v5078_v60  ;;  %v4041_v38 = vadd.f32 %v5429_v17, %v5410_v41  ;;  %v1684_v56 = vadd.f32 1.0, %v4495_v62  ;;  %v1718_v14 = vmul.f32 %v1686_v20, %v1590_v51 }
 0x193   : > { %v1687_v11 = vadd.f32 1.0, %v4497_v45  ;;  %v1631_v34 = vmul.f32 0.70710677, %v5475_v31  ;;  %v5484_v49 = vadd.f32 %v1520_v0, %v5391_v9  ;;  %4187 = vmatprep.mubr.msk.bf16.mxu1 %vm1048_vm0, %v1742_v7  ;;  %4510 = verf.f32 %v1628_v53  ;;  %v4048_v7 = vpop.f32.mrf.mxu1 }
 0x194   : > { %v4165_v46 = vpop.f32.mrf.mxu0  ;;  %4188 = vmatmul.mubr.msk.bf16.gmra.mxu1 %vm1048_vm0, %v1743_v3  ;;  %v1588_v2 = vmul.f32 0.5, %v5393_v57  ;;  %v1589_v13 = vmul.f32 0.5, %v5416_v35  ;;  %v1397_v48 = vadd.f32 %v4035_v12, %v1236_v23  ;;  %v1400_v3 = vadd.f32 %v4038_v58, %v1239_v19 }
 0x195   : > { %v4499_v4 = vpop.eup %4498  ;;  %v1719_v33 = vmul.f32 %v1687_v11, %v1591_v21  ;;  %4512 = verf.f32 %v1631_v34  ;;  %v1629_v9 = vmul.f32 0.70710677, %v5484_v49  ;;  %v5496_v61 = vadd.f32 %v4165_v46, %v5408_v40 }
 0x196   : > { %v1685_v1 = vadd.f32 1.0, %v4499_v4  ;;  %v1533_v41 = vpop.f32.mrf.mxu0  ;;  %v4501_v17 = vpop.eup %4500  ;;  %v1716_v6 = vmul.f32 %v1684_v56, %v1588_v2  ;;  %v5505_v43 = vadd.f32 %v4041_v38, %v1244_v52  ;;  %v4047_v5 = vadd.f32 %v4046_v32, %v4045_v15 }
 0x197   : > { %v1745_v47 = vpack.c.bf16 %v1719_v33, %v1718_v14  ;;  %4514 = verf.f32 %v1629_v9  ;;  %v5499_v8 = vadd.f32 %v1533_v41, %v5401_v28  ;;  %v1634_v24 = vmul.f32 0.70710677, %v5496_v61  ;;  %v4049_v52 = vpop.f32.mrf.mxu1 }
 0x198   : > { %v1717_v16 = vmul.f32 %v1685_v1, %v1589_v13  ;;  %v4166_v57 = vpop.f32.mrf.mxu0  ;;  %v1690_v44 = vadd.f32 1.0, %v4501_v17  ;;  %v1252_v28 = vadd.f32 %v5255_v63, %v5078_v60  ;;  %v1594_v20 = vmul.f32 0.5, %v5418_v30 }
 0x199   : > { %v4503_v35 = vpop.eup %4502  ;;  %v1632_v40 = vmul.f32 0.70710677, %v5499_v8  ;;  %v5503_v22 = vadd.f32 %v4166_v57, %v1384_v59  ;;  %4516 = verf.f32 %v1634_v24  ;;  %v1595_v19 = vmul.f32 0.5, %v5439_v50 }
 0x19a   : > { %v4505_v62 = vpop.eup %4504  ;;  %v1744_v23 = vpack.c.bf16 %v1717_v16, %v1716_v6  ;;  %v1536_v12 = vpop.f32.mrf.mxu0  ;;  %v3938_v59 = vadd.f32 %v5266_v18, %v5260_v10  ;;  %v1688_v51 = vadd.f32 1.0, %v4503_v35  ;;  %v1722_v15 = vmul.f32 %v1690_v44, %v1594_v20 }
 0x19b   : > { %v1691_v45 = vadd.f32 1.0, %v4505_v62  ;;  %v1635_v58 = vmul.f32 0.70710677, %v5503_v22  ;;  %4518 = verf.f32 %v1632_v40  ;;  %v5515_v53 = vadd.f32 %v1536_v12, %v5403_v37 }
 0x19c   : > { %4191 = vmatprep.mubr.msk.bf16.mxu1 %vm1048_vm0, %v1744_v23  ;;  %v4169_v63 = vpop.f32.mrf.mxu0  ;;  %v1592_v50 = vmul.f32 0.5, %v5433_v39  ;;  %v1593_v10 = vmul.f32 0.5, %v5451_v25  ;;  %v1413_v4 = vadd.f32 %v4047_v5, %v1252_v28  ;;  %v1255_v25 = vadd.f32 %v3938_v59, %v5078_v60 }
 0x19d   : > { %v4507_v0 = vpop.eup %4506  ;;  %v1723_v21 = vmul.f32 %v1691_v45, %v1595_v19  ;;  %4520 = verf.f32 %v1635_v58  ;;  %v5518_v30 = vadd.f32 %v4169_v63, %v1397_v48  ;;  %4192 = vmatmul.mubr.msk.bf16.gmra.mxu1 %vm1048_vm0, %v1745_v47  ;;  %v1633_v11 = vmul.f32 0.70710677, %v5515_v53 }
 0x19e   : > { %v1689_v18 = vadd.f32 1.0, %v4507_v0  ;;  %v1549_v37 = vpop.f32.mrf.mxu0  ;;  %v4509_v34 = vpop.eup %4508  ;;  %v1720_v14 = vmul.f32 %v1688_v51, %v1592_v50  ;;  %v4050_v17 = vadd.f32 %v4049_v52, %v4048_v7  ;;  %v1596_v47 = vmul.f32 0.5, %v5470_v42 }
 0x19f   : > { %v1747_v38 = vpack.c.bf16 %v1723_v21, %v1722_v15  ;;  %v1638_v56 = vmul.f32 0.70710677, %v5518_v30  ;;  %v5526_v46 = vadd.f32 %v1549_v37, %v5458_v29  ;;  %v1694_v9 = vadd.f32 1.0, %v4509_v34 }
 0x1a0   : > { %v1721_v33 = vmul.f32 %v1689_v18, %v1593_v10  ;;  %4522 = verf.f32 %v1633_v11  ;;  %v4170_v39 = vpop.f32.mrf.mxu0  ;;  %v4511_v2 = vpop.eup %4510  ;;  %v1598_v29 = vmul.f32 0.5, %v5455_v36  ;;  %v1599_v16 = vmul.f32 0.5, %v5475_v31 }
 0x1a1   : > { %4524 = verf.f32 %v1638_v56  ;;  %v1636_v13 = vmul.f32 0.70710677, %v5526_v46  ;;  %v5530_v1 = vadd.f32 %v4170_v39, %v1400_v3  ;;  %v1692_v6 = vadd.f32 1.0, %v4511_v2 }
 0x1a2   : > { %v4513_v41 = vpop.eup %4512  ;;  %v1746_v32 = vpack.c.bf16 %v1721_v33, %v1720_v14  ;;  %v1552_v48 = vpop.f32.mrf.mxu0  ;;  %v1726_v44 = vmul.f32 %v1694_v9, %v1598_v29  ;;  %v1597_v40 = vmul.f32 0.5, %v5484_v49  ;;  %v1247_v31 = vadd.f32 %v5245_v54, %v5078_v60 }
 0x1a3   : > { %v1695_v24 = vadd.f32 1.0, %v4513_v41  ;;  %v1639_v57 = vmul.f32 0.70710677, %v5530_v1  ;;  %4526 = verf.f32 %v1636_v13  ;;  %v5538_v3 = vadd.f32 %v1552_v48, %v5460_v55 }
 0x1a4   : > { %v4515_v35 = vpop.eup %4514  ;;  %4195 = vmatprep.mubr.msk.bf16.mxu1 %vm1048_vm0, %v1746_v32  ;;  %v4173_v36 = vpop.f32.mrf.mxu0  ;;  %v4044_v49 = vadd.f32 %v5464_v26, %v5444_v27  ;;  %v1416_v23 = vadd.f32 %v4050_v17, %v1255_v25  ;;  %v1724_v7 = vmul.f32 %v1692_v6, %v1596_v47  ;;  %v1602_v26 = vmul.f32 0.5, %v5496_v61 }
 0x1a5   : > { %v1727_v62 = vmul.f32 %v1695_v24, %v1599_v16  ;;  %v1693_v42 = vadd.f32 1.0, %v4515_v35  ;;  %4528 = verf.f32 %v1639_v57  ;;  %v5541_v28 = vadd.f32 %v4173_v36, %v1413_v4  ;;  %4196 = vmatmul.mubr.msk.bf16.gmra.mxu1 %vm1048_vm0, %v1747_v38 }
 0x1a6   : > { %v1637_v5 = vmul.f32 0.70710677, %v5538_v3  ;;  %v1565_v55 = vpop.f32.mrf.mxu0  ;;  %v4517_v12 = vpop.eup %4516  ;;  %v1408_v15 = vadd.f32 %v4044_v49, %v1247_v31  ;;  %v1603_v50 = vmul.f32 0.5, %v5503_v22  ;;  %v1600_v38 = vmul.f32 0.5, %v5499_v8 }
 0x1a7   : > { %v1749_v20 = vpack.c.bf16 %v1727_v62, %v1726_v44  ;;  %v1725_v19 = vmul.f32 %v1693_v42, %v1597_v40  ;;  %v1642_v45 = vmul.f32 0.70710677, %v5541_v28  ;;  %v5551_v58 = vadd.f32 %v1565_v55, %v5505_v43 }
 0x1a8   : > { %4530 = verf.f32 %v1637_v5  ;;  %v4174_v59 = vpop.f32.mrf.mxu0  ;;  %v4519_v51 = vpop.eup %4518  ;;  %v1698_v54 = vadd.f32 1.0, %v4517_v12  ;;  %v1601_v56 = vmul.f32 0.5, %v5515_v53  ;;  %v1606_v41 = vmul.f32 0.5, %v5518_v30 }
 0x1a9   : > { %v1748_v60 = vpack.c.bf16 %v1725_v19, %v1724_v7  ;;  %v1577_v63 = vadd.f32 %v4174_v59, %v1416_v23  ;;  %v1640_v0 = vmul.f32 0.70710677, %v5551_v58  ;;  %4532 = verf.f32 %v1642_v45  ;;  %v4466_v59 = vld [vmem:[%s6539_s3 + $0x8] sm:$0xff]  }
 0x1aa   : > { %v4521_v27 = vpop.eup %4520  ;;  %v1568_v21 = vpop.f32.mrf.mxu0  ;;  %v1696_v43 = vadd.f32 1.0, %v4519_v51  ;;  %v1730_v34 = vmul.f32 %v1698_v54, %v1602_v26  ;;  %v1607_v17 = vmul.f32 0.5, %v5530_v1  ;;  %v1604_v48 = vmul.f32 0.5, %v5526_v46  ;;  %4219 = vmatprep.subr.bf16.mxu0 %v4466_v59  ;;  %v4469_v51 = vld [vmem:[%s6540_s4 + $0x30] sm:$0xff]   ;;  %v4471_v54 = vld [vmem:[%s6540_s4 + $0x20] sm:$0xff]  }
 0x1ab   : > { %v1699_v10 = vadd.f32 1.0, %v4521_v27  ;;  %v1643_v18 = vmul.f32 0.70710677, %v1577_v63  ;;  %4199 = vmatprep.mubr.msk.bf16.mxu1 %vm1048_vm0, %v1748_v60  ;;  %4534 = verf.f32 %v1640_v0  ;;  %v1569_v11 = vadd.f32 %v1568_v21, %v1408_v15  ;;  %4220 = vmatpush3.bf16.msra.mxu0 %v4466_v59  ;;  %v4470_v60 = vld [vmem:[%s6540_s4 + $0x28] sm:$0xff]   ;;  %v5594_v26 = vld [vmem:[%s6541_s5] sm:$0xff] }
 0x1ac   : > { %v1728_v33 = vmul.f32 %v1696_v43, %v1600_v38  ;;  %v1605_v6 = vmul.f32 0.5, %v5538_v3  ;;  %v1611_v49 = vmul.f32 0.5, %v1577_v63  ;;  %v1608_v46 = vmul.f32 0.5, %v5551_v58  ;;  %v4468_v58 = vld [vmem:[%s6540_s4 + $0x38] sm:$0xff]   ;;  %v6596_v63 = vld [vmem:[#allocation2_spill] sm:$0xff] }
 0x1ad   : > { %v4523_v37 = vpop.eup %4522  ;;  %v1731_v52 = vmul.f32 %v1699_v10, %v1603_v50  ;;  %4536 = verf.f32 %v1643_v18  ;;  %4200 = vmatmul.mubr.msk.bf16.gmra.mxu1 %vm1048_vm0, %v1749_v20  ;;  %v1641_v4 = vmul.f32 0.70710677, %v1569_v11  ;;  %v1609_v3 = vmul.f32 0.5, %v1569_v11  ;;  %4255 = vmatprep.subr.bf16.mxu1 %v4468_v58 }
 0x1ae   : > { %v4525_v61 = vpop.eup %4524  ;;  %v1697_v22 = vadd.f32 1.0, %v4523_v37  ;;  %v1610_v55 = vmul.f32 0.5, %v5541_v28  ;;  %v4467_v28 = vld [vmem:[%s6539_s3] sm:$0xff]   ;;  %4256 = vmatpush3.bf16.msra.mxu1 %v4468_v58  ;;  %v1766_v27 = vsub.s32 1, %v6596_v63 }
 0x1af   : > { %v1751_v14 = vpack.c.bf16 %v1731_v52, %v1730_v34  ;;  %4538 = verf.f32 %v1641_v4  ;;  %v1702_v2 = vadd.f32 1.0, %v4525_v61  ;;  %4221 = vmatprep.subr.bf16.mxu0 %v4467_v28  ;;  %4257 = vmatprep.subr.bf16.mxu1 %v4469_v51 }
 0x1b0   : > { %v1729_v9 = vmul.f32 %v1697_v22, %v1601_v56  ;;  %v4527_v39 = vpop.eup %4526  ;;  %4222 = vmatpush3.bf16.msra.mxu0 %v4467_v28  ;;  %v5597_v0 = vrot.slane %v5594_v26, %v1766_v27 }
 0x1b1   : > { %v1700_v29 = vadd.f32 1.0, %v4527_v39  ;;  %v1734_v53 = vmul.f32 %v1702_v2, %v1606_v41 }
 0x1b2   : > { %v4529_v25 = vpop.eup %4528  ;;  %v1750_v13 = vpack.c.bf16 %v1729_v9, %v1728_v33  ;;  %4258 = vmatpush3.bf16.msra.mxu1 %v4469_v51 }
 0x1b3   : > { %v1703_v32 = vadd.f32 1.0, %v4529_v25  ;;  %v1732_v35 = vmul.f32 %v1700_v29, %v1604_v48  ;;  %4259 = vmatprep.subr.bf16.mxu1 %v4470_v60 }
 0x1b4   : > { %4203 = vmatprep.mubr.msk.bf16.mxu1 %vm1048_vm0, %v1750_v13 }
 0x1b5   : > { %v4531_v8 = vpop.eup %4530  ;;  %v1735_v47 = vmul.f32 %v1703_v32, %v1607_v17  ;;  %4204 = vmatmul.mubr.msk.bf16.gmra.mxu1 %vm1048_vm0, %v1751_v14 }
 0x1b6   : > { %v1701_v16 = vadd.f32 1.0, %v4531_v8  ;;  %v4533_v57 = vpop.eup %4532  ;;  %4260 = vmatpush3.bf16.msra.mxu1 %v4470_v60 }
 0x1b7   : > { %v1753_v24 = vpack.c.bf16 %v1735_v47, %v1734_v53  ;;  %v1706_v31 = vadd.f32 1.0, %v4533_v57  ;;  %4261 = vmatprep.subr.bf16.mxu1 %v4471_v54 }
 0x1b8   : > { %v1733_v30 = vmul.f32 %v1701_v16, %v1605_v6  ;;  %v4535_v44 = vpop.eup %4534 }
 0x1b9   : > { %v1704_v62 = vadd.f32 1.0, %v4535_v44  ;;  %v1738_v20 = vmul.f32 %v1706_v31, %v1610_v55 }
 0x1ba   : > { %v4537_v1 = vpop.eup %4536  ;;  %v1752_v40 = vpack.c.bf16 %v1733_v30, %v1732_v35  ;;  %4262 = vmatpush3.bf16.msra.mxu1 %v4471_v54 }
 0x1bb   : > { %v1707_v36 = vadd.f32 1.0, %v4537_v1  ;;  %v1736_v12 = vmul.f32 %v1704_v62, %v1608_v46 }
 0x1bc   : > { %4207 = vmatprep.mubr.msk.bf16.mxu1 %vm1048_vm0, %v1752_v40  ;;  %v4539_v42 = vpop.eup %4538 }
 0x1bd   : > { %4208 = vmatmul.mubr.msk.bf16.gmra.mxu1 %vm1048_vm0, %v1753_v24  ;;  %v1705_v5 = vadd.f32 1.0, %v4539_v42  ;;  %v1739_v23 = vmul.f32 %v1707_v36, %v1611_v49 }
 0x1bf   : > { %v1737_v7 = vmul.f32 %v1705_v5, %v1609_v3  ;;  %v1755_v45 = vpack.c.bf16 %v1739_v23, %v1738_v20 }
 0x1c1   : > { %v1754_v19 = vpack.c.bf16 %v1737_v7, %v1736_v12 }
 0x1c3   : > { %4211 = vmatprep.mubr.msk.bf16.mxu1 %vm1048_vm0, %v1754_v19 }
 0x1c5   : > { %4212 = vmatmul.mubr.msk.bf16.gmra.mxu1 %vm1048_vm0, %v1755_v45 }
 0x24c   : > { %v4185_v15 = vpop.f32.mrf.mxu1 }
 0x24d   : > { %v1883_v21 = vadd.f32 %v4185_v15, %v5597_v0 }
 0x24e   : > { %v1874_v50 = vpop.f32.mrf.mxu1 }
 0x24f   : > { %v1875_v10 = vadd.f32 %v1874_v50, %v5597_v0  ;;  %v2035_v18 = vmul.f32 0.70710677, %v1883_v21  ;;  %v2003_v30 = vmul.f32 0.5, %v1883_v21 }
 0x250   : > { %v4186_v43 = vpop.f32.mrf.mxu1 }
 0x251   : > { %v2033_v11 = vmul.f32 0.70710677, %v1875_v10  ;;  %v1886_v37 = vadd.f32 %v4186_v43, %v5597_v0  ;;  %v2001_v46 = vmul.f32 0.5, %v1875_v10 }
 0x252   : > { %v1877_v34 = vpop.f32.mrf.mxu1 }
 0x253   : > { %4540 = verf.f32 %v2033_v11  ;;  %v2036_v52 = vmul.f32 0.70710677, %v1886_v37  ;;  %v1878_v61 = vadd.f32 %v1877_v34, %v5597_v0  ;;  %v2004_v1 = vmul.f32 0.5, %v1886_v37 }
 0x254   : > { %4542 = verf.f32 %v2035_v18  ;;  %v4189_v38 = vpop.f32.mrf.mxu1 }
 0x255   : > { %4544 = verf.f32 %v2036_v52  ;;  %v2034_v56 = vmul.f32 0.70710677, %v1878_v61  ;;  %v1899_v22 = vadd.f32 %v4189_v38, %v5597_v0  ;;  %v2002_v3 = vmul.f32 0.5, %v1878_v61 }
 0x256   : > { %v1890_v4 = vpop.f32.mrf.mxu1 }
 0x257   : > { %4546 = verf.f32 %v2034_v56  ;;  %v5605_v14 = vadd.f32 %v1890_v4, %v5597_v0  ;;  %v2039_v33 = vmul.f32 0.70710677, %v1899_v22  ;;  %v2007_v18 = vmul.f32 0.5, %v1899_v22 }
 0x258   : > { %v4190_v9 = vpop.f32.mrf.mxu1 }
 0x259   : > { %v2037_v39 = vmul.f32 0.70710677, %v5605_v14  ;;  %v1902_v2 = vadd.f32 %v4190_v9, %v5597_v0  ;;  %v2005_v4 = vmul.f32 0.5, %v5605_v14 }
 0x25a   : > { %v1893_v25 = vpop.f32.mrf.mxu1 }
 0x25b   : > { %4548 = verf.f32 %v2037_v39  ;;  %v2040_v13 = vmul.f32 0.70710677, %v1902_v2  ;;  %v1894_v41 = vadd.f32 %v1893_v25, %v5597_v0  ;;  %v2008_v11 = vmul.f32 0.5, %v1902_v2 }
 0x25c   : > { %4550 = verf.f32 %v2039_v33 }
 0x25d   : > { %4552 = verf.f32 %v2040_v13  ;;  %v2038_v17 = vmul.f32 0.70710677, %v1894_v41  ;;  %v4193_v32 = vpop.f32.mrf.mxu1  ;;  %v2006_v33 = vmul.f32 0.5, %v1894_v41 }
 0x25e   : > { %v5611_v29 = vadd.f32 %v4193_v32, %v5597_v0 }
 0x25f   : > { %4554 = verf.f32 %v2038_v17  ;;  %v1906_v8 = vpop.f32.mrf.mxu1 }
 0x260   : > { %v4541_v53 = vpop.eup %4540  ;;  %v5614_v47 = vadd.f32 %v1906_v8, %v5597_v0  ;;  %v2043_v6 = vmul.f32 0.70710677, %v5611_v29 }
 0x261   : > { %v4543_v48 = vpop.eup %4542  ;;  %v4194_v16 = vpop.f32.mrf.mxu1  ;;  %v2097_v44 = vadd.f32 1.0, %v4541_v53 }
 0x262   : > { %v4545_v24 = vpop.eup %4544  ;;  %v2041_v57 = vmul.f32 0.70710677, %v5614_v47  ;;  %v5619_v35 = vadd.f32 %v4194_v16, %v5597_v0  ;;  %v2099_v42 = vadd.f32 1.0, %v4543_v48 }
 0x263   : > { %v2100_v40 = vadd.f32 1.0, %v4545_v24  ;;  %v1909_v36 = vpop.f32.mrf.mxu1  ;;  %v2129_v20 = vmul.f32 %v2097_v44, %v2001_v46  ;;  %v2009_v44 = vmul.f32 0.5, %v5614_v47 }
 0x264   : > { %v4547_v62 = vpop.eup %4546  ;;  %4556 = verf.f32 %v2041_v57  ;;  %v2044_v31 = vmul.f32 0.70710677, %v5619_v35  ;;  %v5623_v49 = vadd.f32 %v1909_v36, %v5597_v0  ;;  %v2131_v28 = vmul.f32 %v2099_v42, %v2003_v30 }
 0x265   : > { %v2098_v5 = vadd.f32 1.0, %v4547_v62  ;;  %4558 = verf.f32 %v2043_v6  ;;  %v4197_v55 = vpop.f32.mrf.mxu1  ;;  %v2132_v23 = vmul.f32 %v2100_v40, %v2004_v1 }
 0x266   : > { %4560 = verf.f32 %v2044_v31  ;;  %v2042_v12 = vmul.f32 0.70710677, %v5623_v49  ;;  %v5627_v7 = vadd.f32 %v4197_v55, %v5597_v0  ;;  %v2010_v55 = vmul.f32 0.5, %v5623_v49 }
 0x267   : > { %v2130_v19 = vmul.f32 %v2098_v5, %v2002_v3  ;;  %v1922_v45 = vpop.f32.mrf.mxu1  ;;  %v2162_v21 = vpack.c.bf16 %v2132_v23, %v2131_v28  ;;  %v2012_v3 = vmul.f32 0.5, %v5619_v35 }
 0x268   : > { %v4549_v59 = vpop.eup %4548  ;;  %4562 = verf.f32 %v2042_v12  ;;  %v5630_v58 = vadd.f32 %v1922_v45, %v5597_v0  ;;  %v2047_v54 = vmul.f32 0.70710677, %v5627_v7 }
 0x269   : > { %v4551_v51 = vpop.eup %4550  ;;  %v2161_v60 = vpack.c.bf16 %v2130_v19, %v2129_v20  ;;  %v4198_v27 = vpop.f32.mrf.mxu1  ;;  %v2101_v43 = vadd.f32 1.0, %v4549_v59  ;;  %v2011_v20 = vmul.f32 0.5, %v5611_v29 }
 0x26a   : > { %v4553_v15 = vpop.eup %4552  ;;  %v2045_v50 = vmul.f32 0.70710677, %v5630_v58  ;;  %v5635_v10 = vadd.f32 %v4198_v27, %v5597_v0  ;;  %v2103_v61 = vadd.f32 1.0, %v4551_v51 }
 0x26b   : > { %v2104_v37 = vadd.f32 1.0, %v4553_v15  ;;  %v1925_v34 = vpop.f32.mrf.mxu1  ;;  %4223 = vmatprep.mubr.msk.bf16.mxu0 %vm1048_vm0, %v2161_v60  ;;  %v2133_v13 = vmul.f32 %v2101_v43, %v2005_v4  ;;  %v2013_v43 = vmul.f32 0.5, %v5630_v58 }
 0x26c   : > { %v4555_v52 = vpop.eup %4554  ;;  %4564 = verf.f32 %v2045_v50  ;;  %v2048_v38 = vmul.f32 0.70710677, %v5635_v10  ;;  %v5640_v56 = vadd.f32 %v1925_v34, %v5597_v0  ;;  %4224 = vmatmul.mubr.msk.bf16.vlgmr.msra.gmra.mxu0 %vm1048_vm0, %v2162_v21  ;;  %v2135_v8 = vmul.f32 %v2103_v61, %v2007_v18 }
 0x26d   : > { %v2102_v22 = vadd.f32 1.0, %v4555_v52  ;;  %4566 = verf.f32 %v2047_v54  ;;  %v4201_v9 = vpop.f32.mrf.mxu1  ;;  %v2136_v39 = vmul.f32 %v2104_v37, %v2008_v11 }
 0x26e   : > { %4568 = verf.f32 %v2048_v38  ;;  %v2046_v2 = vmul.f32 0.70710677, %v5640_v56  ;;  %v5646_v25 = vadd.f32 %v4201_v9, %v5597_v0  ;;  %v2014_v58 = vmul.f32 0.5, %v5640_v56 }
 0x26f   : > { %v2134_v17 = vmul.f32 %v2102_v22, %v2006_v33  ;;  %v1938_v32 = vpop.f32.mrf.mxu1  ;;  %v2164_v24 = vpack.c.bf16 %v2136_v39, %v2135_v8  ;;  %v2016_v33 = vmul.f32 0.5, %v5635_v10 }
 0x270   : > { %4570 = verf.f32 %v2046_v2  ;;  %v2051_v53 = vmul.f32 0.70710677, %v5646_v25  ;;  %v5650_v41 = vadd.f32 %v1938_v32, %v5597_v0 }
 0x271   : > { %v4557_v48 = vpop.eup %4556  ;;  %v2163_v14 = vpack.c.bf16 %v2134_v17, %v2133_v13  ;;  %v4202_v6 = vpop.f32.mrf.mxu1  ;;  %v2015_v13 = vmul.f32 0.5, %v5627_v7 }
 0x272   : > { %v4559_v16 = vpop.eup %4558  ;;  %v5653_v57 = vadd.f32 %v4202_v6, %v5597_v0  ;;  %v2049_v1 = vmul.f32 0.70710677, %v5650_v41  ;;  %v2105_v36 = vadd.f32 1.0, %v4557_v48  ;;  %4572 = verf.f32 %v2051_v53 }
 0x273   : > { %v4561_v30 = vpop.eup %4560  ;;  %v1941_v40 = vpop.f32.mrf.mxu1  ;;  %4227 = vmatprep.mubr.msk.bf16.mxu0 %vm1048_vm0, %v2163_v14  ;;  %v2107_v46 = vadd.f32 1.0, %v4559_v16 }
 0x274   : > { %v2108_v62 = vadd.f32 1.0, %v4561_v30  ;;  %v2052_v42 = vmul.f32 0.70710677, %v5653_v57  ;;  %4228 = vmatmul.mubr.msk.bf16.gmra.mxu0 %vm1048_vm0, %v2164_v24  ;;  %4574 = verf.f32 %v2049_v1  ;;  %v5662_v5 = vadd.f32 %v1941_v40, %v5597_v0 }
 0x275   : > { %v4563_v31 = vpop.eup %4562  ;;  %v4205_v47 = vpop.f32.mrf.mxu1  ;;  %v2137_v28 = vmul.f32 %v2105_v36, %v2009_v44  ;;  %v2139_v60 = vmul.f32 %v2107_v46, %v2011_v20 }
 0x276   : > { %v2106_v23 = vadd.f32 1.0, %v4563_v31  ;;  %4576 = verf.f32 %v2052_v42  ;;  %v5666_v12 = vadd.f32 %v4205_v47, %v5597_v0  ;;  %v2140_v19 = vmul.f32 %v2108_v62, %v2012_v3 }
 0x277   : > { %v2050_v45 = vmul.f32 0.70710677, %v5662_v5  ;;  %v1954_v59 = vpop.f32.mrf.mxu1 }
 0x278   : > { %v2138_v35 = vmul.f32 %v2106_v23, %v2010_v55  ;;  %v2055_v54 = vmul.f32 0.70710677, %v5666_v12  ;;  %v5672_v49 = vadd.f32 %v1954_v59, %v5597_v0  ;;  %v2166_v18 = vpack.c.bf16 %v2140_v19, %v2139_v60 }
 0x279   : > { %v4565_v51 = vpop.eup %4564  ;;  %4578 = verf.f32 %v2050_v45  ;;  %v4206_v27 = vpop.f32.mrf.mxu1  ;;  %v2020_v23 = vmul.f32 0.5, %v5653_v57  ;;  %v2017_v19 = vmul.f32 0.5, %v5650_v41  ;;  %v2018_v45 = vmul.f32 0.5, %v5662_v5 }
 0x27a   : > { %v4567_v15 = vpop.eup %4566  ;;  %v2165_v21 = vpack.c.bf16 %v2138_v35, %v2137_v28  ;;  %v5675_v50 = vadd.f32 %v4206_v27, %v5597_v0  ;;  %v2053_v11 = vmul.f32 0.70710677, %v5672_v49  ;;  %v2109_v34 = vadd.f32 1.0, %v4565_v51 }
 0x27b   : > { %v4569_v29 = vpop.eup %4568  ;;  %v1957_v37 = vpop.f32.mrf.mxu1  ;;  %4580 = verf.f32 %v2055_v54  ;;  %v2111_v4 = vadd.f32 1.0, %v4567_v15  ;;  %v2019_v51 = vmul.f32 0.5, %v5646_v25 }
 0x27c   : > { %v2112_v52 = vadd.f32 1.0, %v4569_v29  ;;  %v2056_v61 = vmul.f32 0.70710677, %v5675_v50  ;;  %4231 = vmatprep.mubr.msk.bf16.mxu0 %vm1048_vm0, %v2165_v21  ;;  %4582 = verf.f32 %v2053_v11  ;;  %v5683_v22 = vadd.f32 %v1957_v37, %v5597_v0 }
 0x27d   : > { %v4571_v38 = vpop.eup %4570  ;;  %v4209_v9 = vpop.f32.mrf.mxu1  ;;  %4232 = vmatmul.mubr.msk.bf16.gmra.mxu0 %vm1048_vm0, %v2166_v18  ;;  %v2141_v8 = vmul.f32 %v2109_v34, %v2013_v43  ;;  %v2143_v14 = vmul.f32 %v2111_v4, %v2015_v13 }
 0x27e   : > { %v2110_v39 = vadd.f32 1.0, %v4571_v38  ;;  %4584 = verf.f32 %v2056_v61  ;;  %v5688_v2 = vadd.f32 %v4209_v9, %v5597_v0  ;;  %v2144_v17 = vmul.f32 %v2112_v52, %v2016_v33 }
 0x27f   : > { %v2054_v32 = vmul.f32 0.70710677, %v5683_v22  ;;  %v1970_v10 = vpop.f32.mrf.mxu1  ;;  %v4573_v48 = vpop.eup %4572  ;;  %v2022_v13 = vmul.f32 0.5, %v5683_v22 }
 0x280   : > { %v2142_v53 = vmul.f32 %v2110_v39, %v2014_v58  ;;  %v2059_v6 = vmul.f32 0.70710677, %v5688_v2  ;;  %v5694_v56 = vadd.f32 %v1970_v10, %v5597_v0  ;;  %v2168_v1 = vpack.c.bf16 %v2144_v17, %v2143_v14 }
 0x281   : > { %4586 = verf.f32 %v2054_v32  ;;  %v4210_v16 = vpop.f32.mrf.mxu1  ;;  %v4575_v24 = vpop.eup %4574  ;;  %v2115_v55 = vadd.f32 1.0, %v4573_v48  ;;  %v2024_v58 = vmul.f32 0.5, %v5675_v50  ;;  %v2021_v39 = vmul.f32 0.5, %v5672_v49 }
 0x282   : > { %v2167_v30 = vpack.c.bf16 %v2142_v53, %v2141_v8  ;;  %v5697_v44 = vadd.f32 %v4210_v16, %v5597_v0  ;;  %v2057_v40 = vmul.f32 0.70710677, %v5694_v56  ;;  %4588 = verf.f32 %v2059_v6 }
 0x283   : > { %v4577_v7 = vpop.eup %4576  ;;  %v1973_v36 = vpop.f32.mrf.mxu1  ;;  %v2113_v46 = vadd.f32 1.0, %v4575_v24  ;;  %v2147_v5 = vmul.f32 %v2115_v55, %v2019_v51  ;;  %v2023_v10 = vmul.f32 0.5, %v5666_v12  ;;  %v2025_v49 = vmul.f32 0.5, %v5694_v56 }
 0x284   : > { %v2116_v62 = vadd.f32 1.0, %v4577_v7  ;;  %v2060_v42 = vmul.f32 0.70710677, %v5697_v44  ;;  %v5702_v31 = vadd.f32 %v1973_v36, %v5597_v0  ;;  %4235 = vmatprep.mubr.msk.bf16.mxu0 %vm1048_vm0, %v2167_v30  ;;  %4590 = verf.f32 %v2057_v40 }
 0x285   : > { %v4213_v3 = vpop.f32.mrf.mxu1  ;;  %4236 = vmatmul.mubr.msk.bf16.gmra.mxu0 %vm1048_vm0, %v2168_v1  ;;  %v2145_v27 = vmul.f32 %v2113_v46, %v2017_v19  ;;  %v2028_v12 = vmul.f32 0.5, %v5697_v44 }
 0x286   : > { %v4579_v47 = vpop.eup %4578  ;;  %4592 = verf.f32 %v2060_v42  ;;  %v2058_v20 = vmul.f32 0.70710677, %v5702_v31  ;;  %v5711_v28 = vadd.f32 %v4213_v3, %v5597_v0  ;;  %v2148_v60 = vmul.f32 %v2116_v62, %v2020_v23 }
 0x287   : > { %v2114_v59 = vadd.f32 1.0, %v4579_v47  ;;  %v1986_v35 = vpop.f32.mrf.mxu1  ;;  %v2026_v40 = vmul.f32 0.5, %v5702_v31  ;;  %v2027_v62 = vmul.f32 0.5, %v5688_v2 }
 0x288   : > { %4594 = verf.f32 %v2058_v20  ;;  %v5715_v54 = vadd.f32 %v1986_v35, %v5597_v0  ;;  %v4581_v57 = vpop.eup %4580  ;;  %v2063_v21 = vmul.f32 0.70710677, %v5711_v28  ;;  %v2170_v34 = vpack.c.bf16 %v2148_v60, %v2147_v5 }
 0x289   : > { %v2146_v15 = vmul.f32 %v2114_v59, %v2018_v45  ;;  %v4214_v41 = vpop.f32.mrf.mxu1  ;;  %v4583_v29 = vpop.eup %4582  ;;  %v2119_v9 = vadd.f32 1.0, %v4581_v57  ;;  %v2031_v57 = vmul.f32 0.5, %v5711_v28  ;;  %v4473_v28 = vld [vmem:[%s6540_s4 + $0x10] sm:$0xff]  }
 0x28a   : > { %v2061_v18 = vmul.f32 0.70710677, %v5715_v54  ;;  %v1998_v43 = vadd.f32 %v4214_v41, %v5597_v0  ;;  %4596 = verf.f32 %v2063_v21  ;;  %v2117_v38 = vadd.f32 1.0, %v4583_v29 }
 0x28b   : > { %v4585_v11 = vpop.eup %4584  ;;  %v2169_v37 = vpack.c.bf16 %v2146_v15, %v2145_v27  ;;  %v1989_v25 = vpop.f32.mrf.mxu1  ;;  %v2151_v6 = vmul.f32 %v2119_v9, %v2023_v10  ;;  %v2029_v2 = vmul.f32 0.5, %v5715_v54  ;;  %v4474_v54 = vld [vmem:[%s6540_s4 + $0x8] sm:$0xff]  }
 0x28c   : > { %v2120_v52 = vadd.f32 1.0, %v4585_v11  ;;  %v2064_v61 = vmul.f32 0.70710677, %v1998_v43  ;;  %4598 = verf.f32 %v2061_v18  ;;  %v1990_v4 = vadd.f32 %v1989_v25, %v5597_v0  ;;  %v4472_v18 = vld [vmem:[%s6540_s4 + $0x18] sm:$0xff]  }
 0x28d   : > { %4239 = vmatprep.mubr.msk.bf16.mxu0 %vm1048_vm0, %v2169_v37  ;;  %v2149_v0 = vmul.f32 %v2117_v38, %v2021_v39  ;;  %v2032_v35 = vmul.f32 0.5, %v1998_v43  ;;  %4263 = vmatprep.subr.bf16.mxu1 %v4472_v18  ;;  %v4475_v43 = vld [vmem:[%s6540_s4] sm:$0xff]   ;;  %v2187_v11 = vsub.s32 2, %v6596_v63 }
 0x28e   : > { %v4587_v33 = vpop.eup %4586  ;;  %4600 = verf.f32 %v2064_v61  ;;  %4240 = vmatmul.mubr.msk.bf16.gmra.mxu0 %vm1048_vm0, %v2170_v34  ;;  %v2062_v32 = vmul.f32 0.70710677, %v1990_v4  ;;  %v2152_v8 = vmul.f32 %v2120_v52, %v2024_v58  ;;  %v2030_v51 = vmul.f32 0.5, %v1990_v4  ;;  %4264 = vmatpush3.bf16.msra.mxu1 %v4472_v18 }
 0x28f   : > { %v2118_v17 = vadd.f32 1.0, %v4587_v33  ;;  %v4589_v53 = vpop.eup %4588  ;;  %4265 = vmatprep.subr.bf16.mxu1 %v4473_v28  ;;  %v5753_v37 = vrot.slane %v5594_v26, %v2187_v11 }
 0x290   : > { %4602 = verf.f32 %v2062_v32  ;;  %v2172_v24 = vpack.c.bf16 %v2152_v8, %v2151_v6  ;;  %v2123_v22 = vadd.f32 1.0, %v4589_v53 }
 0x291   : > { %v2150_v48 = vmul.f32 %v2118_v17, %v2022_v13  ;;  %v4591_v14 = vpop.eup %4590 }
 0x292   : > { %v2121_v30 = vadd.f32 1.0, %v4591_v14  ;;  %v2155_v23 = vmul.f32 %v2123_v22, %v2027_v62  ;;  %4266 = vmatpush3.bf16.msra.mxu1 %v4473_v28 }
 0x293   : > { %v4593_v16 = vpop.eup %4592  ;;  %v2171_v50 = vpack.c.bf16 %v2150_v48, %v2149_v0  ;;  %4267 = vmatprep.subr.bf16.mxu1 %v4474_v54 }
 0x294   : > { %v2124_v7 = vadd.f32 1.0, %v4593_v16  ;;  %v2153_v42 = vmul.f32 %v2121_v30, %v2025_v49 }
 0x295   : > { %v4595_v1 = vpop.eup %4594  ;;  %4243 = vmatprep.mubr.msk.bf16.mxu0 %vm1048_vm0, %v2171_v50 }
 0x296   : > { %v2122_v36 = vadd.f32 1.0, %v4595_v1  ;;  %4244 = vmatmul.mubr.msk.bf16.gmra.mxu0 %vm1048_vm0, %v2172_v24  ;;  %v2156_v46 = vmul.f32 %v2124_v7, %v2028_v12  ;;  %4268 = vmatpush3.bf16.msra.mxu1 %v4474_v54 }
 0x297   : > { %v4597_v47 = vpop.eup %4596  ;;  %4269 = vmatprep.subr.bf16.mxu1 %v4475_v43 }
 0x298   : > { %v2154_v3 = vmul.f32 %v2122_v36, %v2026_v40  ;;  %v2174_v19 = vpack.c.bf16 %v2156_v46, %v2155_v23  ;;  %v2127_v31 = vadd.f32 1.0, %v4597_v47 }
 0x299   : > { %v4599_v55 = vpop.eup %4598 }
 0x29a   : > { %v2173_v20 = vpack.c.bf16 %v2154_v3, %v2153_v42  ;;  %v2125_v44 = vadd.f32 1.0, %v4599_v55  ;;  %v2159_v41 = vmul.f32 %v2127_v31, %v2031_v57  ;;  %4270 = vmatpush3.bf16.msra.mxu1 %v4475_v43 }
 0x29b   : > { %v4601_v56 = vpop.eup %4600 }
 0x29c   : > { %v2128_v45 = vadd.f32 1.0, %v4601_v56  ;;  %4247 = vmatprep.mubr.msk.bf16.mxu0 %vm1048_vm0, %v2173_v20  ;;  %v2157_v15 = vmul.f32 %v2125_v44, %v2029_v2 }
 0x29d   : > { %v4603_v59 = vpop.eup %4602 }
 0x29e   : > { %4248 = vmatmul.mubr.msk.bf16.gmra.mxu0 %vm1048_vm0, %v2174_v19  ;;  %v2126_v60 = vadd.f32 1.0, %v4603_v59  ;;  %v2160_v27 = vmul.f32 %v2128_v45, %v2032_v35 }
 0x2a0   : > { %v2158_v21 = vmul.f32 %v2126_v60, %v2030_v51  ;;  %v2176_v5 = vpack.c.bf16 %v2160_v27, %v2159_v41 }
 0x2a2   : > { %v2175_v29 = vpack.c.bf16 %v2158_v21, %v2157_v15 }
 0x2a4   : > { %4251 = vmatprep.mubr.msk.bf16.mxu0 %vm1048_vm0, %v2175_v29 }
 0x2a6   : > { %4252 = vmatmul.mubr.msk.bf16.gmra.mxu0 %vm1048_vm0, %v2176_v5 }
 0x32c   : > { %v4225_v25 = vpop.f32.mrf.mxu0 }
 0x32d   : > { %v2304_v34 = vadd.f32 %v4225_v25, %v5753_v37 }
 0x32e   : > { %v2295_v52 = vpop.f32.mrf.mxu0 }
 0x32f   : > { %v2296_v61 = vadd.f32 %v2295_v52, %v5753_v37  ;;  %v2456_v38 = vmul.f32 0.70710677, %v2304_v34  ;;  %v2424_v3 = vmul.f32 0.5, %v2304_v34 }
 0x330   : > { %v4226_v4 = vpop.f32.mrf.mxu0 }
 0x331   : > { %v2454_v33 = vmul.f32 0.70710677, %v2296_v61  ;;  %v2307_v9 = vadd.f32 %v4226_v4, %v5753_v37  ;;  %v2422_v59 = vmul.f32 0.5, %v2296_v61 }
 0x332   : > { %v2298_v58 = vpop.f32.mrf.mxu0 }
 0x333   : > { %4604 = verf.f32 %v2454_v33  ;;  %v2457_v39 = vmul.f32 0.70710677, %v2307_v9  ;;  %v2299_v13 = vadd.f32 %v2298_v58, %v5753_v37  ;;  %v2425_v55 = vmul.f32 0.5, %v2307_v9 }
 0x334   : > { %4606 = verf.f32 %v2456_v38  ;;  %v4229_v17 = vpop.f32.mrf.mxu0 }
 0x335   : > { %4608 = verf.f32 %v2457_v39  ;;  %v2455_v26 = vmul.f32 0.70710677, %v2299_v13  ;;  %v5760_v32 = vadd.f32 %v4229_v17, %v5753_v37  ;;  %v2423_v31 = vmul.f32 0.5, %v2299_v13 }
 0x336   : > { %v2311_v10 = vpop.f32.mrf.mxu0 }
 0x337   : > { %4610 = verf.f32 %v2455_v26  ;;  %v5763_v8 = vadd.f32 %v2311_v10, %v5753_v37  ;;  %v2460_v53 = vmul.f32 0.70710677, %v5760_v32 }
 0x338   : > { %v4230_v0 = vpop.f32.mrf.mxu0 }
 0x339   : > { %v2458_v48 = vmul.f32 0.70710677, %v5763_v8  ;;  %v2323_v14 = vadd.f32 %v4230_v0, %v5753_v37  ;;  %v2426_v17 = vmul.f32 0.5, %v5763_v8 }
 0x33a   : > { %v2314_v6 = vpop.f32.mrf.mxu0 }
 0x33b   : > { %4612 = verf.f32 %v2458_v48  ;;  %v2461_v16 = vmul.f32 0.70710677, %v2323_v14  ;;  %v2315_v50 = vadd.f32 %v2314_v6, %v5753_v37  ;;  %v2429_v38 = vmul.f32 0.5, %v2323_v14 }
 0x33c   : > { %4614 = verf.f32 %v2460_v53  ;;  %v2428_v53 = vmul.f32 0.5, %v5760_v32 }
 0x33d   : > { %4616 = verf.f32 %v2461_v16  ;;  %v2459_v24 = vmul.f32 0.70710677, %v2315_v50  ;;  %v4233_v30 = vpop.f32.mrf.mxu0  ;;  %v2427_v26 = vmul.f32 0.5, %v2315_v50 }
 0x33e   : > { %v5770_v7 = vadd.f32 %v4233_v30, %v5753_v37 }
 0x33f   : > { %4618 = verf.f32 %v2459_v24  ;;  %v2327_v1 = vpop.f32.mrf.mxu0 }
 0x340   : > { %v4605_v49 = vpop.eup %4604  ;;  %v5773_v22 = vadd.f32 %v2327_v1, %v5753_v37  ;;  %v2464_v40 = vmul.f32 0.70710677, %v5770_v7 }
 0x341   : > { %v4607_v12 = vpop.eup %4606  ;;  %v4234_v36 = vpop.f32.mrf.mxu0  ;;  %v2518_v47 = vadd.f32 1.0, %v4605_v49 }
 0x342   : > { %v4609_v62 = vpop.eup %4608  ;;  %v2462_v42 = vmul.f32 0.70710677, %v5773_v22  ;;  %v5778_v46 = vadd.f32 %v4234_v36, %v5753_v37  ;;  %v2520_v19 = vadd.f32 1.0, %v4607_v12 }
 0x343   : > { %v2521_v23 = vadd.f32 1.0, %v4609_v62  ;;  %v2330_v20 = vpop.f32.mrf.mxu0  ;;  %v2550_v27 = vmul.f32 %v2518_v47, %v2422_v59  ;;  %v2432_v47 = vmul.f32 0.5, %v5770_v7 }
 0x344   : > { %v4611_v56 = vpop.eup %4610  ;;  %4620 = verf.f32 %v2462_v42  ;;  %v2465_v45 = vmul.f32 0.70710677, %v5778_v46  ;;  %v5782_v44 = vadd.f32 %v2330_v20, %v5753_v37  ;;  %v2552_v29 = vmul.f32 %v2520_v19, %v2424_v3 }
 0x345   : > { %v2519_v35 = vadd.f32 1.0, %v4611_v56  ;;  %4622 = verf.f32 %v2464_v40  ;;  %v4237_v2 = vpop.f32.mrf.mxu0  ;;  %v2553_v51 = vmul.f32 %v2521_v23, %v2425_v55  ;;  %v2433_v23 = vmul.f32 0.5, %v5778_v46 }
 0x346   : > { %4624 = verf.f32 %v2465_v45  ;;  %v2463_v60 = vmul.f32 0.70710677, %v5782_v44  ;;  %v5786_v57 = vadd.f32 %v4237_v2, %v5753_v37  ;;  %v2431_v2 = vmul.f32 0.5, %v5782_v44 }
 0x347   : > { %v2551_v15 = vmul.f32 %v2519_v35, %v2423_v31  ;;  %v2343_v21 = vpop.f32.mrf.mxu0  ;;  %v2583_v25 = vpack.c.bf16 %v2553_v51, %v2552_v29  ;;  %v2430_v35 = vmul.f32 0.5, %v5773_v22 }
 0x348   : > { %v4613_v41 = vpop.eup %4612  ;;  %4626 = verf.f32 %v2463_v60  ;;  %v5789_v5 = vadd.f32 %v2343_v21, %v5753_v37  ;;  %v2468_v28 = vmul.f32 0.70710677, %v5786_v57 }
 0x349   : > { %v4615_v18 = vpop.eup %4614  ;;  %v4238_v54 = vpop.f32.mrf.mxu0  ;;  %v2582_v43 = vpack.c.bf16 %v2551_v15, %v2550_v27  ;;  %v2522_v61 = vadd.f32 1.0, %v4613_v41 }
 0x34a   : > { %v4617_v11 = vpop.eup %4616  ;;  %v2466_v34 = vmul.f32 0.70710677, %v5789_v5  ;;  %v5794_v52 = vadd.f32 %v4238_v54, %v5753_v37  ;;  %v2524_v58 = vadd.f32 1.0, %v4615_v18 }
 0x34b   : > { %v2525_v4 = vadd.f32 1.0, %v4617_v11  ;;  %v2346_v33 = vpop.f32.mrf.mxu0  ;;  %4271 = vmatprep.mubr.bf16.mxu1 %v2582_v43  ;;  %v2554_v6 = vmul.f32 %v2522_v61, %v2426_v17 }
 0x34c   : > { %v4619_v9 = vpop.eup %4618  ;;  %4628 = verf.f32 %v2466_v34  ;;  %v2469_v39 = vmul.f32 0.70710677, %v5794_v52  ;;  %v5798_v13 = vadd.f32 %v2346_v33, %v5753_v37  ;;  %4272 = vmatmul.mubr.bf16.vlgmr.msra.gmra.mxu1 %v2583_v25  ;;  %v2556_v30 = vmul.f32 %v2524_v58, %v2428_v53 }
 0x34d   : > { %v2523_v10 = vadd.f32 1.0, %v4619_v9  ;;  %4630 = verf.f32 %v2468_v28  ;;  %v2557_v0 = vmul.f32 %v2525_v4, %v2429_v38  ;;  %v2436_v38 = vmul.f32 0.5, %v5786_v57 }
 0x34e   : > { %4632 = verf.f32 %v2469_v39  ;;  %v2467_v48 = vmul.f32 0.70710677, %v5798_v13  ;;  %v4241_v14 = vpop.f32.mrf.mxu0  ;;  %v2437_v33 = vmul.f32 0.5, %v5794_v52  ;;  %v2434_v53 = vmul.f32 0.5, %v5789_v5 }
 0x34f   : > { %v2555_v16 = vmul.f32 %v2523_v10, %v2427_v26  ;;  %v5804_v24 = vadd.f32 %v4241_v14, %v5753_v37  ;;  %v2585_v36 = vpack.c.bf16 %v2557_v0, %v2556_v30  ;;  %v2435_v0 = vmul.f32 0.5, %v5798_v13 }
 0x350   : > { %4634 = verf.f32 %v2467_v48  ;;  %v2359_v1 = vpop.f32.mrf.mxu0 }
 0x351   : > { %v4621_v49 = vpop.eup %4620  ;;  %v5807_v8 = vadd.f32 %v2359_v1, %v5753_v37  ;;  %v2584_v50 = vpack.c.bf16 %v2555_v16, %v2554_v6  ;;  %v2472_v32 = vmul.f32 0.70710677, %v5804_v24 }
 0x352   : > { %v4623_v12 = vpop.eup %4622  ;;  %v4242_v40 = vpop.f32.mrf.mxu0  ;;  %v2526_v55 = vadd.f32 1.0, %v4621_v49 }
 0x353   : > { %v4625_v62 = vpop.eup %4624  ;;  %v2470_v42 = vmul.f32 0.70710677, %v5807_v8  ;;  %v5812_v3 = vadd.f32 %v4242_v40, %v5753_v37  ;;  %4275 = vmatprep.mubr.bf16.mxu1 %v2584_v50  ;;  %v2528_v45 = vadd.f32 1.0, %v4623_v12 }
 0x354   : > { %v2529_v20 = vadd.f32 1.0, %v4625_v62  ;;  %v2362_v56 = vpop.f32.mrf.mxu0  ;;  %4276 = vmatmul.mubr.bf16.gmra.mxu1 %v2585_v36  ;;  %v2558_v15 = vmul.f32 %v2526_v55, %v2430_v35 }
 0x355   : > { %v4627_v19 = vpop.eup %4626  ;;  %4636 = verf.f32 %v2470_v42  ;;  %v2473_v59 = vmul.f32 0.70710677, %v5812_v3  ;;  %v5818_v31 = vadd.f32 %v2362_v56, %v5753_v37  ;;  %v2560_v18 = vmul.f32 %v2528_v45, %v2432_v47 }
 0x356   : > { %v2527_v51 = vadd.f32 1.0, %v4627_v19  ;;  %4638 = verf.f32 %v2472_v32  ;;  %v4245_v7 = vpop.f32.mrf.mxu0  ;;  %v2561_v60 = vmul.f32 %v2529_v20, %v2433_v23  ;;  %v2438_v47 = vmul.f32 0.5, %v5807_v8 }
 0x357   : > { %4640 = verf.f32 %v2473_v59  ;;  %v2471_v46 = vmul.f32 0.70710677, %v5818_v31  ;;  %v5824_v27 = vadd.f32 %v4245_v7, %v5753_v37  ;;  %v2441_v35 = vmul.f32 0.5, %v5812_v3 }
 0x358   : > { %v2559_v21 = vmul.f32 %v2527_v51, %v2431_v2  ;;  %v2375_v41 = vpop.f32.mrf.mxu0  ;;  %v2587_v61 = vpack.c.bf16 %v2561_v60, %v2560_v18  ;;  %v2439_v8 = vmul.f32 0.5, %v5818_v31 }
 0x359   : > { %v4629_v29 = vpop.eup %4628  ;;  %4642 = verf.f32 %v2471_v46  ;;  %v5827_v22 = vadd.f32 %v2375_v41, %v5753_v37  ;;  %v2476_v28 = vmul.f32 0.70710677, %v5824_v27  ;;  %v2440_v46 = vmul.f32 0.5, %v5804_v24 }
 0x35a   : > { %v4631_v44 = vpop.eup %4630  ;;  %v4246_v54 = vpop.f32.mrf.mxu0  ;;  %v2586_v43 = vpack.c.bf16 %v2559_v21, %v2558_v15  ;;  %v2530_v4 = vadd.f32 1.0, %v4629_v29 }
 0x35b   : > { %v4633_v11 = vpop.eup %4632  ;;  %v2474_v25 = vmul.f32 0.70710677, %v5827_v22  ;;  %v5832_v34 = vadd.f32 %v4246_v54, %v5753_v37  ;;  %v2532_v17 = vadd.f32 1.0, %v4631_v44 }
 0x35c   : > { %v2533_v9 = vadd.f32 1.0, %v4633_v11  ;;  %v2378_v58 = vpop.f32.mrf.mxu0  ;;  %4279 = vmatprep.mubr.bf16.mxu1 %v2586_v43  ;;  %v2562_v16 = vmul.f32 %v2530_v4, %v2434_v53 }
 0x35d   : > { %v4635_v39 = vpop.eup %4634  ;;  %4644 = verf.f32 %v2474_v25  ;;  %v2477_v26 = vmul.f32 0.70710677, %v5832_v34  ;;  %v5838_v10 = vadd.f32 %v2378_v58, %v5753_v37  ;;  %4280 = vmatmul.mubr.bf16.gmra.mxu1 %v2587_v61  ;;  %v2564_v49 = vmul.f32 %v2532_v17, %v2436_v38 }
 0x35e   : > { %v2531_v57 = vadd.f32 1.0, %v4635_v39  ;;  %4646 = verf.f32 %v2476_v28  ;;  %v4249_v48 = vpop.f32.mrf.mxu0  ;;  %v2565_v52 = vmul.f32 %v2533_v9, %v2437_v33 }
 0x35f   : > { %4648 = verf.f32 %v2477_v26  ;;  %v2475_v14 = vmul.f32 0.70710677, %v5838_v10  ;;  %v5844_v6 = vadd.f32 %v4249_v48, %v5753_v37  ;;  %v2445_v26 = vmul.f32 0.5, %v5832_v34 }
 0x360   : > { %v2563_v30 = vmul.f32 %v2531_v57, %v2435_v0  ;;  %v2391_v1 = vpop.f32.mrf.mxu0  ;;  %v2589_v62 = vpack.c.bf16 %v2565_v52, %v2564_v49  ;;  %v2442_v0 = vmul.f32 0.5, %v5827_v22  ;;  %v2443_v57 = vmul.f32 0.5, %v5838_v10 }
 0x361   : > { %4650 = verf.f32 %v2475_v14  ;;  %v2480_v50 = vmul.f32 0.70710677, %v5844_v6  ;;  %v5848_v13 = vadd.f32 %v2391_v1, %v5753_v37  ;;  %v2444_v52 = vmul.f32 0.5, %v5824_v27 }
 0x362   : > { %v4637_v5 = vpop.eup %4636  ;;  %v4250_v12 = vpop.f32.mrf.mxu0  ;;  %v2588_v32 = vpack.c.bf16 %v2563_v30, %v2562_v16 }
 0x363   : > { %v4639_v40 = vpop.eup %4638  ;;  %v5851_v36 = vadd.f32 %v4250_v12, %v5753_v37  ;;  %v2478_v55 = vmul.f32 0.70710677, %v5848_v13  ;;  %v2534_v20 = vadd.f32 1.0, %v4637_v5  ;;  %4652 = verf.f32 %v2480_v50 }
 0x364   : > { %v4641_v42 = vpop.eup %4640  ;;  %v2394_v23 = vpop.f32.mrf.mxu0  ;;  %4283 = vmatprep.mubr.bf16.mxu1 %v2588_v32  ;;  %v2536_v59 = vadd.f32 1.0, %v4639_v40  ;;  %v2446_v27 = vmul.f32 0.5, %v5848_v13 }
 0x365   : > { %v2537_v56 = vadd.f32 1.0, %v4641_v42  ;;  %v2481_v19 = vmul.f32 0.70710677, %v5851_v36  ;;  %4284 = vmatmul.mubr.bf16.gmra.mxu1 %v2589_v62  ;;  %4654 = verf.f32 %v2478_v55  ;;  %v2395_v2 = vadd.f32 %v2394_v23, %v5753_v37 }
 0x366   : > { %v4643_v45 = vpop.eup %4642  ;;  %v4253_v51 = vpop.f32.mrf.mxu0  ;;  %v2566_v29 = vmul.f32 %v2534_v20, %v2438_v47  ;;  %v2568_v3 = vmul.f32 %v2536_v59, %v2440_v46  ;;  %v2449_v62 = vmul.f32 0.5, %v5851_v36  ;;  %v2448_v55 = vmul.f32 0.5, %v5844_v6 }
 0x367   : > { %v2535_v7 = vadd.f32 1.0, %v4643_v45  ;;  %4656 = verf.f32 %v2481_v19  ;;  %v5860_v60 = vadd.f32 %v4253_v51, %v5753_v37  ;;  %v2569_v15 = vmul.f32 %v2537_v56, %v2441_v35 }
 0x368   : > { %v2479_v21 = vmul.f32 0.70710677, %v2395_v2  ;;  %v2407_v41 = vpop.f32.mrf.mxu0  ;;  %v2447_v42 = vmul.f32 0.5, %v2395_v2 }
 0x369   : > { %v2567_v18 = vmul.f32 %v2535_v7, %v2439_v8  ;;  %v2484_v28 = vmul.f32 0.70710677, %v5860_v60  ;;  %v2408_v54 = vadd.f32 %v2407_v41, %v5753_v37  ;;  %v2591_v38 = vpack.c.bf16 %v2569_v15, %v2568_v3 }
 0x36a   : > { %v4645_v44 = vpop.eup %4644  ;;  %4658 = verf.f32 %v2479_v21  ;;  %v4254_v31 = vpop.f32.mrf.mxu0  ;;  %v2452_v6 = vmul.f32 0.5, %v5860_v60 }
 0x36b   : > { %v4647_v43 = vpop.eup %4646  ;;  %v2419_v11 = vadd.f32 %v4254_v31, %v5753_v37  ;;  %v2590_v25 = vpack.c.bf16 %v2567_v18, %v2566_v29  ;;  %v2482_v24 = vmul.f32 0.70710677, %v2408_v54  ;;  %v2538_v33 = vadd.f32 1.0, %v4645_v44 }
 0x36c   : > { %v4649_v61 = vpop.eup %4648  ;;  %v2410_v4 = vpop.f32.mrf.mxu0  ;;  %4660 = verf.f32 %v2484_v28  ;;  %v2540_v17 = vadd.f32 1.0, %v4647_v43  ;;  %v2450_v13 = vmul.f32 0.5, %v2408_v54  ;;  %v2616_v43 = vsub.s32 3, %v6596_v63 }
 0x36d   : > { %v2541_v9 = vadd.f32 1.0, %v4649_v61  ;;  %v2485_v58 = vmul.f32 0.70710677, %v2419_v11  ;;  %4287 = vmatprep.mubr.bf16.mxu1 %v2590_v25  ;;  %4662 = verf.f32 %v2482_v24  ;;  %v2411_v53 = vadd.f32 %v2410_v4, %v5753_v37 }
 0x36e   : > { %v4651_v39 = vpop.eup %4650  ;;  %4288 = vmatmul.mubr.bf16.gmra.mxu1 %v2591_v38  ;;  %v2570_v30 = vmul.f32 %v2538_v33, %v2442_v0  ;;  %v2572_v50 = vmul.f32 %v2540_v17, %v2444_v52  ;;  %v2453_v21 = vmul.f32 0.5, %v2419_v11  ;;  %v5879_v11 = vld [vmem:[%s6541_s5] sm:$0xff] }
 0x36f   : > { %v2539_v48 = vadd.f32 1.0, %v4651_v39  ;;  %4664 = verf.f32 %v2485_v58  ;;  %v2573_v14 = vmul.f32 %v2541_v9, %v2445_v26  ;;  %v2483_v16 = vmul.f32 0.70710677, %v2411_v53 }
 0x370   : > { %v4653_v49 = vpop.eup %4652  ;;  %v2451_v2 = vmul.f32 0.5, %v2411_v53  ;;  %v5882_v54 = vrot.slane %v5879_v11, %v2616_v43 }
 0x371   : > { %v2571_v1 = vmul.f32 %v2539_v48, %v2443_v57  ;;  %4666 = verf.f32 %v2483_v16  ;;  %v2593_v37 = vpack.c.bf16 %v2573_v14, %v2572_v50  ;;  %v2544_v40 = vadd.f32 1.0, %v4653_v49 }
 0x372   : > { %v4655_v34 = vpop.eup %4654  ;;  %v2989_v49 = vsub.s32 4, %v6596_v63 }
 0x373   : > { %v2592_v5 = vpack.c.bf16 %v2571_v1, %v2570_v30  ;;  %v2542_v22 = vadd.f32 1.0, %v4655_v34  ;;  %v2576_v59 = vmul.f32 %v2544_v40, %v2448_v55 }
 0x374   : > { %v4657_v12 = vpop.eup %4656  ;;  %v5904_v40 = vrot.slane %v5879_v11, %v2989_v49 }
 0x375   : > { %v2545_v32 = vadd.f32 1.0, %v4657_v12  ;;  %4291 = vmatprep.mubr.bf16.mxu1 %v2592_v5  ;;  %v2574_v56 = vmul.f32 %v2542_v22, %v2446_v27 }
 0x376   : > { %4292 = vmatmul.mubr.bf16.gmra.mxu1 %v2593_v37  ;;  %v3025_v37 = vsub.s32 5, %v6596_v63 }
 0x377   : > { %v4659_v10 = vpop.eup %4658  ;;  %v2577_v23 = vmul.f32 %v2545_v32, %v2449_v62 }
 0x378   : > { %v2543_v47 = vadd.f32 1.0, %v4659_v10 }
 0x379   : > { %v4661_v20 = vpop.eup %4660  ;;  %v2595_v8 = vpack.c.bf16 %v2577_v23, %v2576_v59 }
 0x37a   : > { %v2575_v19 = vmul.f32 %v2543_v47, %v2447_v42  ;;  %v4663_v45 = vpop.eup %4662  ;;  %v2548_v36 = vadd.f32 1.0, %v4661_v20  ;;  %v5907_v20 = vrot.slane %v5879_v11, %v3025_v37 }
 0x37b   : > { %v2546_v46 = vadd.f32 1.0, %v4663_v45 }
 0x37c   : > { %v4665_v35 = vpop.eup %4664  ;;  %v2594_v51 = vpack.c.bf16 %v2575_v19, %v2574_v56  ;;  %v2580_v3 = vmul.f32 %v2548_v36, %v2452_v6 }
 0x37d   : > { %v2549_v7 = vadd.f32 1.0, %v4665_v35  ;;  %v2578_v18 = vmul.f32 %v2546_v46, %v2450_v13 }
 0x37e   : > { %4295 = vmatprep.mubr.bf16.mxu1 %v2594_v51  ;;  %v4667_v15 = vpop.eup %4666 }
 0x37f   : > { %4296 = vmatmul.mubr.bf16.gmra.mxu1 %v2595_v8  ;;  %v2547_v41 = vadd.f32 1.0, %v4667_v15  ;;  %v2581_v29 = vmul.f32 %v2549_v7, %v2453_v21 }
 0x381   : > { %v2579_v44 = vmul.f32 %v2547_v41, %v2451_v2  ;;  %v2597_v31 = vpack.c.bf16 %v2581_v29, %v2580_v3 }
 0x383   : > { %v2596_v28 = vpack.c.bf16 %v2579_v44, %v2578_v18 }
 0x385   : > { %4299 = vmatprep.mubr.bf16.mxu1 %v2596_v28 }
 0x387   : > { %4300 = vmatmul.mubr.bf16.gmra.mxu1 %v2597_v31 }
 0x40c   : > { %v4273_v25 = vpop.f32.mrf.mxu1 }
 0x40d   : > { %v2709_v60 = vadd.f32 %v4273_v25, %v5882_v54 }
 0x40e   : > { %v2700_v61 = vpop.f32.mrf.mxu1 }
 0x40f   : > { %v2861_v38 = vmul.f32 0.70710677, %v2709_v60  ;;  %v2701_v24 = vadd.f32 %v2700_v61, %v5882_v54  ;;  %v2829_v22 = vmul.f32 0.5, %v2709_v60 }
 0x410   : > { %v4274_v4 = vpop.f32.mrf.mxu1 }
 0x411   : > { %4668 = verf.f32 %v2861_v38  ;;  %v2859_v33 = vmul.f32 0.70710677, %v2701_v24  ;;  %v2712_v9 = vadd.f32 %v4274_v4, %v5882_v54  ;;  %v2827_v47 = vmul.f32 0.5, %v2701_v24 }
 0x412   : > { %v2703_v58 = vpop.f32.mrf.mxu1 }
 0x413   : > { %4670 = verf.f32 %v2859_v33  ;;  %v2862_v39 = vmul.f32 0.70710677, %v2712_v9  ;;  %v2704_v17 = vadd.f32 %v2703_v58, %v5882_v54  ;;  %v2830_v35 = vmul.f32 0.5, %v2712_v9 }
 0x414   : > { %v4277_v26 = vpop.f32.mrf.mxu1 }
 0x415   : > { %4672 = verf.f32 %v2862_v39  ;;  %v2860_v53 = vmul.f32 0.70710677, %v2704_v17  ;;  %v5889_v0 = vadd.f32 %v4277_v26, %v5882_v54  ;;  %v2828_v15 = vmul.f32 0.5, %v2704_v17 }
 0x416   : > { %v2716_v57 = vpop.f32.mrf.mxu1 }
 0x417   : > { %4674 = verf.f32 %v2860_v53  ;;  %v2865_v48 = vmul.f32 0.70710677, %v5889_v0  ;;  %v5893_v52 = vadd.f32 %v2716_v57, %v5882_v54  ;;  %v2833_v53 = vmul.f32 0.5, %v5889_v0 }
 0x418   : > { %v4278_v14 = vpop.f32.mrf.mxu1 }
 0x419   : > { %v2728_v16 = vadd.f32 %v4278_v14, %v5882_v54  ;;  %v2863_v30 = vmul.f32 0.70710677, %v5893_v52  ;;  %4676 = verf.f32 %v2865_v48 }
 0x41a   : > { %v2719_v1 = vpop.f32.mrf.mxu1 }
 0x41b   : > { %v2866_v50 = vmul.f32 0.70710677, %v2728_v16  ;;  %v5899_v34 = vadd.f32 %v2719_v1, %v5882_v54  ;;  %v2834_v24 = vmul.f32 0.5, %v2728_v16 }
 0x41d   : > { %4678 = verf.f32 %v2866_v50  ;;  %v2864_v5 = vmul.f32 0.70710677, %v5899_v34  ;;  %v4281_v12 = vpop.f32.mrf.mxu1 }
 0x41e   : > { %v4669_v32 = vpop.eup %4668  ;;  %4680 = verf.f32 %v2863_v30  ;;  %v5910_v19 = vadd.f32 %v4281_v12, %v5882_v54  ;;  %v2832_v30 = vmul.f32 0.5, %v5899_v34 }
 0x41f   : > { %v2925_v10 = vadd.f32 1.0, %v4669_v32  ;;  %4682 = verf.f32 %v2864_v5  ;;  %v2732_v62 = vpop.f32.mrf.mxu1  ;;  %v2831_v5 = vmul.f32 0.5, %v5893_v52 }
 0x420   : > { %v4671_v27 = vpop.eup %4670  ;;  %v2869_v29 = vmul.f32 0.70710677, %v5910_v19  ;;  %v5926_v3 = vadd.f32 %v2732_v62, %v5882_v54 }
 0x421   : > { %v2957_v42 = vmul.f32 %v2925_v10, %v2829_v22  ;;  %v2923_v55 = vadd.f32 1.0, %v4671_v27  ;;  %v4282_v23 = vpop.f32.mrf.mxu1 }
 0x422   : > { %v4673_v56 = vpop.eup %4672  ;;  %v5913_v45 = vadd.f32 %v4282_v23, %v5882_v54  ;;  %v2867_v39 = vmul.f32 0.70710677, %v5926_v3 }
 0x423   : > { %v2955_v59 = vmul.f32 %v2923_v55, %v2827_v47  ;;  %v2926_v51 = vadd.f32 1.0, %v4673_v56  ;;  %v2735_v8 = vpop.f32.mrf.mxu1  ;;  %v2993_v7 = vmul.f32 %v5904_v40, %v2957_v42 }
 0x424   : > { %v4675_v46 = vpop.eup %4674  ;;  %v2870_v36 = vmul.f32 0.70710677, %v5913_v45  ;;  %v5918_v21 = vadd.f32 %v2735_v8, %v5882_v54 }
 0x425   : > { %v2958_v13 = vmul.f32 %v2926_v51, %v2830_v35  ;;  %v2924_v2 = vadd.f32 1.0, %v4675_v46  ;;  %v5921_v41 = vadd.f32 %v5907_v20, %v2993_v7  ;;  %v2991_v6 = vmul.f32 %v5904_v40, %v2955_v59  ;;  %v4285_v18 = vpop.f32.mrf.mxu1 }
 0x426   : > { %v4677_v43 = vpop.eup %4676  ;;  %v2868_v25 = vmul.f32 0.70710677, %v5918_v21  ;;  %4684 = verf.f32 %v2870_v36  ;;  %v5960_v62 = vadd.f32 %v4285_v18, %v5882_v54 }
 0x427   : > { %v2956_v44 = vmul.f32 %v2924_v2, %v2828_v15  ;;  %3063 = vadd.xlane.f32.xlu1 %v5921_v41  ;;  %v5930_v28 = vadd.f32 %v5907_v20, %v2991_v6  ;;  %v2994_v31 = vmul.f32 %v5904_v40, %v2958_v13  ;;  %4686 = verf.f32 %v2869_v29  ;;  %v2748_v4 = vpop.f32.mrf.mxu1 }
 0x428   : > { %v2929_v9 = vadd.f32 1.0, %v4677_v43  ;;  %v3158_v17 = vmul.f32 %v5921_v41, %v5921_v41  ;;  %4688 = verf.f32 %v2868_v25  ;;  %v2873_v35 = vmul.f32 0.70710677, %v5960_v62 }
 0x429   : > { %v2992_v60 = vmul.f32 %v5904_v40, %v2956_v44  ;;  %3059 = vadd.xlane.f32.xlu0 %v5930_v28  ;;  %v5937_v61 = vadd.f32 %v5907_v20, %v2994_v31  ;;  %v4286_v1 = vpop.f32.mrf.mxu1  ;;  %4690 = verf.f32 %v2867_v39  ;;  %v3156_v0 = vmul.f32 %v5930_v28, %v5930_v28 }
 0x42a   : > { %v4679_v38 = vpop.eup %4678  ;;  %v2961_v49 = vmul.f32 %v2929_v9, %v2833_v53  ;;  %v5954_v37 = vadd.f32 %v4286_v1, %v5882_v54  ;;  %v5974_v51 = vadd.f32 %v2748_v4, %v5882_v54  ;;  %v2838_v2 = vmul.f32 0.5, %v5913_v45 }
 0x42b   : > { %v4681_v33 = vpop.eup %4680  ;;  %v2930_v58 = vadd.f32 1.0, %v4679_v38  ;;  %3065 = vadd.xlane.f32.xlu1 %v5937_v61  ;;  %v3159_v14 = vmul.f32 %v5937_v61, %v5937_v61  ;;  %v5947_v16 = vadd.f32 %v5907_v20, %v2992_v60  ;;  %v2751_v22 = vpop.f32.mrf.mxu1  ;;  %v2837_v43 = vmul.f32 0.5, %v5910_v19 }
 0x42c   : > { %v4683_v26 = vpop.eup %4682  ;;  %v2927_v50 = vadd.f32 1.0, %v4681_v33  ;;  %v2997_v27 = vmul.f32 %v5904_v40, %v2961_v49  ;;  %v2874_v52 = vmul.f32 0.70710677, %v5954_v37  ;;  %v5965_v42 = vadd.f32 %v2751_v22, %v5882_v54 }
 0x42d   : > { %v2962_v57 = vmul.f32 %v2930_v58, %v2834_v24  ;;  %v2928_v48 = vadd.f32 1.0, %v4683_v26  ;;  %3192 = vadd.xlane.f32.xlu0 %v3158_v17  ;;  %v3157_v32 = vmul.f32 %v5947_v16, %v5947_v16  ;;  %v2871_v18 = vmul.f32 0.70710677, %v5974_v51 }
 0x42e   : > { %v2959_v10 = vmul.f32 %v2927_v50, %v2831_v5  ;;  %v4289_v56 = vpop.f32.mrf.mxu1  ;;  %v5978_v8 = vadd.f32 %v5907_v20, %v2997_v27  ;;  %4692 = verf.f32 %v2874_v52  ;;  %v2872_v36 = vmul.f32 0.70710677, %v5965_v42 }
 0x42f   : > { %3194 = vadd.xlane.f32.xlu1 %v3159_v14  ;;  %v2960_v12 = vmul.f32 %v2928_v48, %v2832_v30  ;;  %v2998_v34 = vmul.f32 %v5904_v40, %v2962_v57  ;;  %4694 = verf.f32 %v2873_v35  ;;  %v2836_v38 = vmul.f32 0.5, %v5918_v21 }
 0x430   : > { %v2995_v7 = vmul.f32 %v5904_v40, %v2959_v10  ;;  %v2764_v6 = vpop.f32.mrf.mxu1  ;;  %4696 = verf.f32 %v2872_v36  ;;  %v3162_v9 = vmul.f32 %v5978_v8, %v5978_v8  ;;  %v2835_v19 = vmul.f32 0.5, %v5926_v3 }
 0x431   : > { %3188 = vadd.xlane.f32.xlu0 %v3156_v0  ;;  %v5969_v47 = vadd.f32 %v5907_v20, %v2998_v34  ;;  %v2996_v55 = vmul.f32 %v5904_v40, %v2960_v12  ;;  %4698 = verf.f32 %v2871_v18  ;;  %v6007_v57 = vadd.f32 %v4289_v56, %v5882_v54 }
 0x432   : > { %v5990_v44 = vadd.f32 %v5907_v20, %v2995_v7  ;;  %v4290_v24 = vpop.f32.mrf.mxu1  ;;  %v6022_v12 = vadd.f32 %v2764_v6, %v5882_v54  ;;  %v2840_v6 = vmul.f32 0.5, %v5965_v42 }
 0x433   : > { %3190 = vadd.xlane.f32.xlu1 %v3157_v32  ;;  %v4685_v23 = vpop.eup %4684  ;;  %v5984_v13 = vadd.f32 %v5907_v20, %v2996_v55  ;;  %v3163_v45 = vmul.f32 %v5969_v47, %v5969_v47  ;;  %v6001_v39 = vadd.f32 %v4290_v24, %v5882_v54  ;;  %v2877_v5 = vmul.f32 0.70710677, %v6007_v57 }
 0x434   : > { %v4687_v59 = vpop.eup %4686  ;;  %v2934_v15 = vadd.f32 1.0, %v4685_v23  ;;  %v2767_v26 = vpop.f32.mrf.mxu1  ;;  %v3160_v48 = vmul.f32 %v5990_v44, %v5990_v44  ;;  %v2842_v23 = vmul.f32 0.5, %v5954_v37  ;;  %v2875_v35 = vmul.f32 0.70710677, %v6022_v12 }
 0x435   : > { %3061 = vadd.xlane.f32.xlu0 %v5947_v16  ;;  %v4689_v46 = vpop.eup %4688  ;;  %v2933_v29 = vadd.f32 1.0, %v4687_v59  ;;  %v3161_v17 = vmul.f32 %v5984_v13, %v5984_v13  ;;  %v2878_v14 = vmul.f32 0.70710677, %v6001_v39  ;;  %v6014_v30 = vadd.f32 %v2767_v26, %v5882_v54 }
 0x436   : > { %v4691_v31 = vpop.eup %4690  ;;  %v2966_v25 = vmul.f32 %v2934_v15, %v2838_v2  ;;  %v2932_v60 = vadd.f32 1.0, %v4689_v46  ;;  %v4293_v0 = vpop.f32.mrf.mxu1  ;;  %v2841_v15 = vmul.f32 0.5, %v5960_v62  ;;  %v2839_v62 = vmul.f32 0.5, %v5974_v51 }
 0x437   : > { %3073 = vadd.xlane.f32.xlu1 %v5969_v47  ;;  %v2965_v4 = vmul.f32 %v2933_v29, %v2837_v43  ;;  %v2931_v33 = vadd.f32 1.0, %v4691_v31  ;;  %4700 = verf.f32 %v2878_v14  ;;  %v2876_v27 = vmul.f32 0.70710677, %v6014_v30 }
 0x438   : > { %v2964_v58 = vmul.f32 %v2932_v60, %v2836_v38  ;;  %v3002_v21 = vmul.f32 %v5904_v40, %v2966_v25  ;;  %v2780_v56 = vpop.f32.mrf.mxu1  ;;  %4702 = verf.f32 %v2877_v5 }
 0x439   : > { %3071 = vadd.xlane.f32.xlu0 %v5978_v8  ;;  %v2963_v53 = vmul.f32 %v2931_v33, %v2835_v19  ;;  %v3001_v3 = vmul.f32 %v5904_v40, %v2965_v4  ;;  %4704 = verf.f32 %v2876_v27  ;;  %v6055_v4 = vadd.f32 %v4293_v0, %v5882_v54 }
 0x43a   : > { %v6017_v1 = vadd.f32 %v5907_v20, %v3002_v21  ;;  %v3000_v49 = vmul.f32 %v5904_v40, %v2964_v58  ;;  %v4294_v29 = vpop.f32.mrf.mxu1  ;;  %4706 = verf.f32 %v2875_v35 }
 0x43b   : > { %3069 = vadd.xlane.f32.xlu1 %v5984_v13  ;;  %v4693_v50 = vpop.eup %4692  ;;  %v6026_v32 = vadd.f32 %v5907_v20, %v3001_v3  ;;  %v2999_v34 = vmul.f32 %v5904_v40, %v2963_v53  ;;  %v6049_v60 = vadd.f32 %v4294_v29, %v5882_v54  ;;  %v2881_v53 = vmul.f32 0.70710677, %v6055_v4 }
 0x43c   : > { %v4695_v22 = vpop.eup %4694  ;;  %v2938_v10 = vadd.f32 1.0, %v4693_v50  ;;  %v6032_v52 = vadd.f32 %v5907_v20, %v3000_v49  ;;  %v3167_v37 = vmul.f32 %v6017_v1, %v6017_v1  ;;  %v2783_v38 = vpop.f32.mrf.mxu1 }
 0x43d   : > { %3067 = vadd.xlane.f32.xlu0 %v5990_v44  ;;  %v4697_v55 = vpop.eup %4696  ;;  %v2937_v59 = vadd.f32 1.0, %v4695_v22  ;;  %v6038_v7 = vadd.f32 %v5907_v20, %v2999_v34  ;;  %v3166_v43 = vmul.f32 %v6026_v32, %v6026_v32  ;;  %v6062_v19 = vadd.f32 %v2783_v38, %v5882_v54 }
 0x43e   : > { %v4699_v46 = vpop.eup %4698  ;;  %v2970_v36 = vmul.f32 %v2938_v10, %v2842_v23  ;;  %v2936_v2 = vadd.f32 1.0, %v4697_v55  ;;  %v2846_v22 = vmul.f32 0.5, %v6001_v39 }
 0x43f   : > { %3202 = vadd.xlane.f32.xlu1 %v3163_v45  ;;  %v2969_v18 = vmul.f32 %v2937_v59, %v2841_v15  ;;  %v2935_v31 = vadd.f32 1.0, %v4699_v46  ;;  %v3165_v45 = vmul.f32 %v6032_v52, %v6032_v52  ;;  %v3164_v33 = vmul.f32 %v6038_v7, %v6038_v7  ;;  %v4297_v26 = vpop.f32.mrf.mxu1 }
 0x440   : > { %v2968_v25 = vmul.f32 %v2936_v2, %v2840_v6  ;;  %v3006_v42 = vmul.f32 %v5904_v40, %v2970_v36  ;;  %v2880_v0 = vmul.f32 0.70710677, %v6062_v19  ;;  %v2845_v59 = vmul.f32 0.5, %v6007_v57 }
 0x441   : > { %3200 = vadd.xlane.f32.xlu0 %v3162_v9  ;;  %v2967_v24 = vmul.f32 %v2935_v31, %v2839_v62  ;;  %v3005_v51 = vmul.f32 %v5904_v40, %v2969_v18  ;;  %v2882_v9 = vmul.f32 0.70710677, %v6049_v60  ;;  %v2796_v10 = vpop.f32.mrf.mxu1  ;;  %v2844_v15 = vmul.f32 0.5, %v6014_v30 }
 0x442   : > { %v6065_v58 = vadd.f32 %v5907_v20, %v3006_v42  ;;  %v2843_v57 = vmul.f32 0.5, %v6022_v12 }
 0x443   : > { %3198 = vadd.xlane.f32.xlu1 %v3161_v17  ;;  %v3004_v17 = vmul.f32 %v5904_v40, %v2968_v25  ;;  %v6074_v3 = vadd.f32 %v5907_v20, %v3005_v51  ;;  %v3003_v14 = vmul.f32 %v5904_v40, %v2967_v24  ;;  %4708 = verf.f32 %v2882_v9  ;;  %v4298_v36 = vpop.f32.mrf.mxu1 }
 0x444   : > { %v4701_v21 = vpop.eup %4700  ;;  %4710 = verf.f32 %v2881_v53  ;;  %v3171_v39 = vmul.f32 %v6065_v58, %v6065_v58  ;;  %v6097_v18 = vadd.f32 %v4298_v36, %v5882_v54  ;;  %v6103_v25 = vadd.f32 %v4297_v26, %v5882_v54 }
 0x445   : > { %3196 = vadd.xlane.f32.xlu0 %v3160_v48  ;;  %v6070_v48 = vadd.f32 %v2780_v56, %v5882_v54  ;;  %v4703_v49 = vpop.eup %4702  ;;  %v2942_v50 = vadd.f32 1.0, %v4701_v21  ;;  %v6080_v5 = vadd.f32 %v5907_v20, %v3004_v17  ;;  %v6086_v23 = vadd.f32 %v5907_v20, %v3003_v14 }
 0x446   : > { %v4705_v34 = vpop.eup %4704  ;;  %v2941_v27 = vadd.f32 1.0, %v4703_v49  ;;  %4712 = verf.f32 %v2880_v0  ;;  %v3170_v6 = vmul.f32 %v6074_v3, %v6074_v3  ;;  %v2886_v42 = vmul.f32 0.70710677, %v6097_v18 }
 0x447   : > { %3081 = vadd.xlane.f32.xlu1 %v6017_v1  ;;  %v2879_v55 = vmul.f32 0.70710677, %v6070_v48  ;;  %v4707_v56 = vpop.eup %4706  ;;  %v2974_v35 = vmul.f32 %v2942_v50, %v2846_v22  ;;  %v2940_v46 = vadd.f32 1.0, %v4705_v34  ;;  %v3169_v31 = vmul.f32 %v6080_v5, %v6080_v5 }
 0x448   : > { %v2973_v2 = vmul.f32 %v2941_v27, %v2845_v59  ;;  %v2885_v17 = vmul.f32 0.70710677, %v6103_v25  ;;  %v6118_v21 = vadd.f32 %v2796_v10, %v5882_v54  ;;  %v2850_v22 = vmul.f32 0.5, %v6049_v60 }
 0x449   : > { %3079 = vadd.xlane.f32.xlu0 %v6026_v32  ;;  %4714 = verf.f32 %v2879_v55  ;;  %v2972_v29 = vmul.f32 %v2940_v46, %v2844_v15  ;;  %v3010_v30 = vmul.f32 %v5904_v40, %v2974_v35  ;;  %v2849_v35 = vmul.f32 0.5, %v6055_v4 }
 0x44a   : > { %v3009_v12 = vmul.f32 %v5904_v40, %v2973_v2  ;;  %4716 = verf.f32 %v2886_v42  ;;  %v2883_v55 = vmul.f32 0.70710677, %v6118_v21  ;;  %v2848_v15 = vmul.f32 0.5, %v6062_v19 }
 0x44b   : > { %3077 = vadd.xlane.f32.xlu1 %v6032_v52  ;;  %v6113_v24 = vadd.f32 %v5907_v20, %v3010_v30  ;;  %4718 = verf.f32 %v2885_v17  ;;  %v2847_v4 = vmul.f32 0.5, %v6070_v48 }
 0x44c   : > { %v6122_v26 = vadd.f32 %v5907_v20, %v3009_v12 }
 0x44d   : > { %3075 = vadd.xlane.f32.xlu0 %v6038_v7  ;;  %v3175_v60 = vmul.f32 %v6113_v24, %v6113_v24 }
 0x44f   : > { %3210 = vadd.xlane.f32.xlu1 %v3167_v37  ;;  %v2939_v37 = vadd.f32 1.0, %v4707_v56 }
 0x450   : > { %v4709_v51 = vpop.eup %4708 }
 0x451   : > { %3208 = vadd.xlane.f32.xlu0 %v3166_v43  ;;  %v2799_v43 = vpop.f32.mrf.mxu1  ;;  %v2971_v62 = vmul.f32 %v2939_v37, %v2843_v57  ;;  %v4711_v14 = vpop.eup %4710  ;;  %v2946_v49 = vadd.f32 1.0, %v4709_v51 }
 0x452   : > { %v6110_v38 = vadd.f32 %v2799_v43, %v5882_v54  ;;  %v2945_v27 = vadd.f32 1.0, %v4711_v14 }
 0x453   : > { %3206 = vadd.xlane.f32.xlu1 %v3165_v45  ;;  %v3168_v45 = vmul.f32 %v6086_v23, %v6086_v23  ;;  %v4301_v9 = vpop.f32.mrf.mxu1  ;;  %v3007_v53 = vmul.f32 %v5904_v40, %v2971_v62  ;;  %v4713_v34 = vpop.eup %4712  ;;  %v2978_v46 = vmul.f32 %v2946_v49, %v2850_v22 }
 0x454   : > { %v2884_v50 = vmul.f32 0.70710677, %v6110_v38  ;;  %v2977_v2 = vmul.f32 %v2945_v27, %v2849_v35  ;;  %v6151_v62 = vadd.f32 %v4301_v9, %v5882_v54 }
 0x455   : > { %3204 = vadd.xlane.f32.xlu0 %v3164_v33  ;;  %v3008_v33 = vmul.f32 %v5904_v40, %v2972_v29  ;;  %v2812_v10 = vpop.f32.mrf.mxu1  ;;  %v6134_v56 = vadd.f32 %v5907_v20, %v3007_v53  ;;  %v3014_v19 = vmul.f32 %v5904_v40, %v2978_v46 }
 0x456   : > { %v4715_v59 = vpop.eup %4714  ;;  %4720 = verf.f32 %v2884_v50  ;;  %v3013_v48 = vmul.f32 %v5904_v40, %v2977_v2  ;;  %v2889_v9 = vmul.f32 0.70710677, %v6151_v62  ;;  %v6166_v53 = vadd.f32 %v2812_v10, %v5882_v54 }
 0x457   : > { %3089 = vadd.xlane.f32.xlu1 %v6065_v58  ;;  %v6128_v0 = vadd.f32 %v5907_v20, %v3008_v33  ;;  %v4302_v36 = vpop.f32.mrf.mxu1  ;;  %v2943_v37 = vadd.f32 1.0, %v4715_v59  ;;  %4722 = verf.f32 %v2883_v55  ;;  %v6161_v33 = vadd.f32 %v5907_v20, %v3014_v19  ;;  %v4717_v17 = vpop.eup %4716 }
 0x458   : > { %v6145_v29 = vadd.f32 %v4302_v36, %v5882_v54  ;;  %v6170_v14 = vadd.f32 %v5907_v20, %v3013_v48  ;;  %v4719_v50 = vpop.eup %4718  ;;  %v2887_v59 = vmul.f32 0.70710677, %v6166_v53  ;;  %v2852_v36 = vmul.f32 0.5, %v6110_v38 }
 0x459   : > { %3087 = vadd.xlane.f32.xlu0 %v6074_v3  ;;  %v2815_v30 = vpop.f32.mrf.mxu1  ;;  %v2975_v43 = vmul.f32 %v2943_v37, %v2847_v4  ;;  %v2949_v10 = vadd.f32 1.0, %v4719_v50  ;;  %v2851_v4 = vmul.f32 0.5, %v6118_v21 }
 0x45a   : > { %v2890_v12 = vmul.f32 0.70710677, %v6145_v29  ;;  %v6158_v42 = vadd.f32 %v2815_v30, %v5882_v54  ;;  %v2854_v54 = vmul.f32 0.5, %v6097_v18  ;;  %v3179_v18 = vmul.f32 %v6161_v33, %v6161_v33 }
 0x45b   : > { %3085 = vadd.xlane.f32.xlu1 %v6080_v5  ;;  %v3011_v49 = vmul.f32 %v5904_v40, %v2975_v43 }
 0x45c   : > { %4724 = verf.f32 %v2890_v12  ;;  %v2888_v22 = vmul.f32 0.70710677, %v6158_v42 }
 0x45d   : > { %3083 = vadd.xlane.f32.xlu0 %v6086_v23  ;;  %4726 = verf.f32 %v2889_v9  ;;  %v6182_v35 = vadd.f32 %v5907_v20, %v3011_v49 }
 0x45e   : > { %4728 = verf.f32 %v2888_v22 }
 0x45f   : > { %3218 = vadd.xlane.f32.xlu1 %v3171_v39  ;;  %v2944_v39 = vadd.f32 1.0, %v4713_v34  ;;  %v2950_v34 = vadd.f32 1.0, %v4717_v17  ;;  %4730 = verf.f32 %v2887_v59  ;;  %v3176_v38 = vmul.f32 %v6182_v35, %v6182_v35 }
 0x461   : > { %3216 = vadd.xlane.f32.xlu0 %v3170_v6  ;;  %v3174_v6 = vmul.f32 %v6122_v26, %v6122_v26  ;;  %v2976_v57 = vmul.f32 %v2944_v39, %v2848_v15  ;;  %v2853_v39 = vmul.f32 0.5, %v6103_v25 }
 0x463   : > { %3214 = vadd.xlane.f32.xlu1 %v3169_v31  ;;  %v3173_v31 = vmul.f32 %v6128_v0, %v6128_v0  ;;  %v3012_v51 = vmul.f32 %v5904_v40, %v2976_v57  ;;  %v4721_v55 = vpop.eup %4720  ;;  %v2981_v2 = vmul.f32 %v2949_v10, %v2853_v39 }
 0x464   : > { %v4723_v46 = vpop.eup %4722  ;;  %v2948_v15 = vadd.f32 1.0, %v4721_v55 }
 0x465   : > { %3212 = vadd.xlane.f32.xlu0 %v3168_v45  ;;  %v3172_v45 = vmul.f32 %v6134_v56, %v6134_v56  ;;  %v6176_v27 = vadd.f32 %v5907_v20, %v3012_v51  ;;  %v2947_v37 = vadd.f32 1.0, %v4723_v46  ;;  %v3017_v30 = vmul.f32 %v5904_v40, %v2981_v2 }
 0x466   : > { %v2980_v25 = vmul.f32 %v2948_v15, %v2852_v36  ;;  %v2856_v15 = vmul.f32 0.5, %v6158_v42 }
 0x467   : > { %3097 = vadd.xlane.f32.xlu1 %v6113_v24  ;;  %v3177_v57 = vmul.f32 %v6176_v27, %v6176_v27  ;;  %v2979_v19 = vmul.f32 %v2947_v37, %v2851_v4  ;;  %v6204_v48 = vadd.f32 %v5907_v20, %v3017_v30 }
 0x468   : > { %v3016_v21 = vmul.f32 %v5904_v40, %v2980_v25 }
 0x469   : > { %3095 = vadd.xlane.f32.xlu0 %v6122_v26  ;;  %v3015_v12 = vmul.f32 %v5904_v40, %v2979_v19 }
 0x46a   : > { %v6209_v9 = vadd.f32 %v5907_v20, %v3016_v21 }
 0x46b   : > { %3093 = vadd.xlane.f32.xlu1 %v6128_v0  ;;  %v6214_v22 = vadd.f32 %v5907_v20, %v3015_v12 }
 0x46d   : > { %3091 = vadd.xlane.f32.xlu0 %v6134_v56 }
 0x46f   : > { %3226 = vadd.xlane.f32.xlu1 %v3175_v60  ;;  %v2982_v60 = vmul.f32 %v2950_v34, %v2854_v54  ;;  %v2858_v34 = vmul.f32 0.5, %v6145_v29  ;;  %v2857_v54 = vmul.f32 0.5, %v6151_v62  ;;  %v3182_v29 = vmul.f32 %v6204_v48, %v6204_v48 }
 0x470   : > { %v3181_v62 = vmul.f32 %v6209_v9, %v6209_v9 }
 0x471   : > { %3224 = vadd.xlane.f32.xlu0 %v3174_v6  ;;  %v3178_v6 = vmul.f32 %v6170_v14, %v6170_v14 }
 0x473   : > { %3222 = vadd.xlane.f32.xlu1 %v3173_v31  ;;  %v3018_v31 = vmul.f32 %v5904_v40, %v2982_v60 }
 0x475   : > { %3220 = vadd.xlane.f32.xlu0 %v3172_v45  ;;  %v6199_v43 = vadd.f32 %v5907_v20, %v3018_v31  ;;  %v4725_v45 = vpop.eup %4724 }
 0x476   : > { %v4727_v51 = vpop.eup %4726  ;;  %v2954_v17 = vadd.f32 1.0, %v4725_v45 }
 0x477   : > { %3105 = vadd.xlane.f32.xlu1 %v6161_v33  ;;  %v4729_v49 = vpop.eup %4728  ;;  %v2953_v50 = vadd.f32 1.0, %v4727_v51  ;;  %v3183_v46 = vmul.f32 %v6199_v43, %v6199_v43 }
 0x478   : > { %v4731_v55 = vpop.eup %4730  ;;  %v2986_v10 = vmul.f32 %v2954_v17, %v2858_v34  ;;  %v2952_v59 = vadd.f32 1.0, %v4729_v49 }
 0x479   : > { %3103 = vadd.xlane.f32.xlu0 %v6170_v14  ;;  %v2985_v39 = vmul.f32 %v2953_v50, %v2857_v54  ;;  %v2951_v60 = vadd.f32 1.0, %v4731_v55 }
 0x47a   : > { %v2984_v36 = vmul.f32 %v2952_v59, %v2856_v15  ;;  %v3022_v2 = vmul.f32 %v5904_v40, %v2986_v10 }
 0x47b   : > { %3101 = vadd.xlane.f32.xlu1 %v6176_v27  ;;  %v3021_v42 = vmul.f32 %v5904_v40, %v2985_v39 }
 0x47c   : > { %v6231_v4 = vadd.f32 %v5907_v20, %v3022_v2 }
 0x47d   : > { %3099 = vadd.xlane.f32.xlu0 %v6182_v35  ;;  %v6236_v25 = vadd.f32 %v5907_v20, %v3021_v42 }
 0x47f   : > { %3234 = vadd.xlane.f32.xlu1 %v3179_v18  ;;  %v2855_v18 = vmul.f32 0.5, %v6166_v53  ;;  %v3020_v53 = vmul.f32 %v5904_v40, %v2984_v36  ;;  %v3186_v21 = vmul.f32 %v6236_v25, %v6236_v25 }
 0x481   : > { %3232 = vadd.xlane.f32.xlu0 %v3178_v6  ;;  %v2983_v37 = vmul.f32 %v2951_v60, %v2855_v18  ;;  %v3180_v6 = vmul.f32 %v6214_v22, %v6214_v22  ;;  %v6241_v31 = vadd.f32 %v5907_v20, %v3020_v53 }
 0x483   : > { %3230 = vadd.xlane.f32.xlu1 %v3177_v57  ;;  %v3019_v57 = vmul.f32 %v5904_v40, %v2983_v37  ;;  %v3187_v40 = vmul.f32 %v6231_v4, %v6231_v4 }
 0x485   : > { %3228 = vadd.xlane.f32.xlu0 %v3176_v38  ;;  %v6245_v19 = vadd.f32 %v5907_v20, %v3019_v57  ;;  %v3185_v38 = vmul.f32 %v6241_v31, %v6241_v31 }
 0x487   : > { %3113 = vadd.xlane.f32.xlu1 %v6199_v43  ;;  %v3184_v30 = vmul.f32 %v6245_v19, %v6245_v19 }
 0x489   : > { %3111 = vadd.xlane.f32.xlu0 %v6204_v48 }
 0x48b   : > { %3109 = vadd.xlane.f32.xlu1 %v6209_v9 }
 0x48d   : > { %3107 = vadd.xlane.f32.xlu0 %v6214_v22 }
 0x48f   : > { %3242 = vadd.xlane.f32.xlu1 %v3183_v46 }
 0x491   : > { %3240 = vadd.xlane.f32.xlu0 %v3182_v29 }
 0x493   : > { %3238 = vadd.xlane.f32.xlu1 %v3181_v62 }
 0x495   : > { %3236 = vadd.xlane.f32.xlu0 %v3180_v6 }
 0x497   : > { %3121 = vadd.xlane.f32.xlu1 %v6231_v4 }
 0x499   : > { %3119 = vadd.xlane.f32.xlu0 %v6236_v25 }
 0x49b   : > { %3117 = vadd.xlane.f32.xlu1 %v6241_v31 }
 0x49d   : > { %3115 = vadd.xlane.f32.xlu0 %v6245_v19 }
 0x49f   : > { %3246 = vadd.xlane.f32.xlu1 %v3185_v38 }
 0x4a1   : > { %3244 = vadd.xlane.f32.xlu0 %v3184_v30 }
 0x4a3   : > { %3250 = vadd.xlane.f32.xlu1 %v3187_v40 }
 0x4a5   : > { %3248 = vadd.xlane.f32.xlu0 %v3186_v21 }
 0x4b0   : > { %v3064_v20 = vpop.xlane.xlu1 %3063 }
 0x4b1   : > { %v3126_v12 = vmul.f32 0.0078125, %v3064_v20  ;;  %v3478_v20 = vsub.s32 6, %v6596_v63 }
 0x4b2   : > { %v3060_v45 = vpop.xlane.xlu0 %3059 }
 0x4b3   : > { %v3286_v50 = vmul.f32 %v3126_v12, %v3126_v12  ;;  %v6256_v34 = vmul.f32 0.0078125, %v3060_v45 }
 0x4b4   : > { %v3066_v51 = vpop.xlane.xlu1 %3065 }
 0x4b5   : > { %v3127_v17 = vmul.f32 0.0078125, %v3066_v51  ;;  %v3284_v60 = vmul.f32 %v6256_v34, %v6256_v34 }
 0x4b6   : > { %v3193_v49 = vpop.xlane.xlu0 %3192 }
 0x4b7   : > { %v3254_v55 = vmul.f32 0.0078125, %v3193_v49  ;;  %v3287_v10 = vmul.f32 %v3127_v17, %v3127_v17  ;;  %v3514_v49 = vsub.s32 7, %v6596_v63 }
 0x4b8   : > { %v3195_v54 = vpop.xlane.xlu1 %3194 }
 0x4b9   : > { %v3318_v59 = vsub.f32 %v3254_v55, %v3286_v50  ;;  %v3255_v46 = vmul.f32 0.0078125, %v3195_v54 }
 0x4ba   : > { %v3189_v39 = vpop.xlane.xlu0 %3188 }
 0x4bb   : > { %v3382_v15 = vadd.f32 1e-05, %v3318_v59  ;;  %v3319_v29 = vsub.f32 %v3255_v46, %v3287_v10  ;;  %v3252_v18 = vmul.f32 0.0078125, %v3189_v39  ;;  %v3350_v10 = vsub.f32 %v5921_v41, %v3126_v12 }
 0x4bc   : > { %v3191_v36 = vpop.xlane.xlu1 %3190  ;;  %v6272_v59 = vrot.slane %v5879_v11, %v3478_v20 }
 0x4bd   : > { %4732 = vrsqrt.f32 %v3382_v15  ;;  %v3383_v62 = vadd.f32 1e-05, %v3319_v29  ;;  %v3316_v2 = vsub.f32 %v3252_v18, %v3284_v60  ;;  %v3253_v57 = vmul.f32 0.0078125, %v3191_v36 }
 0x4be   : > { %v3062_v37 = vpop.xlane.xlu0 %3061  ;;  %v3351_v15 = vsub.f32 %v5937_v61, %v3127_v17  ;;  %v6278_v29 = vrot.slane %v5879_v11, %v3514_v49 }
 0x4bf   : > { %4734 = vrsqrt.f32 %v3383_v62  ;;  %v3380_v6 = vadd.f32 1e-05, %v3316_v2  ;;  %v6260_v42 = vmul.f32 0.0078125, %v3062_v37  ;;  %v3348_v37 = vsub.f32 %v5930_v28, %v6256_v34 }
 0x4c0   : > { %v3074_v53 = vpop.xlane.xlu1 %3073 }
 0x4c1   : > { %4736 = vrsqrt.f32 %v3380_v6  ;;  %v3285_v38 = vmul.f32 %v6260_v42, %v6260_v42  ;;  %v6265_v51 = vmul.f32 0.0078125, %v3074_v53 }
 0x4c2   : > { %v3072_v30 = vpop.xlane.xlu0 %3071 }
 0x4c3   : > { %v3317_v40 = vsub.f32 %v3253_v57, %v3285_v38  ;;  %v6268_v55 = vmul.f32 0.0078125, %v3072_v30  ;;  %v3291_v46 = vmul.f32 %v6265_v51, %v6265_v51 }
 0x4c4   : > { %v3070_v21 = vpop.xlane.xlu1 %3069 }
 0x4c5   : > { %v3381_v45 = vadd.f32 1e-05, %v3317_v40  ;;  %v6280_v63 = vmul.f32 0.0078125, %v3070_v21  ;;  %v3290_v41 = vmul.f32 %v6268_v55, %v6268_v55 }
 0x4c6   : > { %v3068_v50 = vpop.xlane.xlu0 %3067 }
 0x4c7   : > { %4738 = vrsqrt.f32 %v3381_v45  ;;  %v6287_v6 = vmul.f32 0.0078125, %v3068_v50  ;;  %v3289_v30 = vmul.f32 %v6280_v63, %v6280_v63 }
 0x4c8   : > { %v3203_v54 = vpop.xlane.xlu1 %3202 }
 0x4c9   : > { %v3259_v39 = vmul.f32 0.0078125, %v3203_v54  ;;  %v3288_v45 = vmul.f32 %v6287_v6, %v6287_v6 }
 0x4ca   : > { %v4733_v60 = vpop.eup %4732  ;;  %v3201_v18 = vpop.xlane.xlu0 %3200 }
 0x4cb   : > { %v3446_v36 = vmul.f32 %v4733_v60, %v3350_v10  ;;  %v3323_v12 = vsub.f32 %v3259_v39, %v3291_v46  ;;  %v3258_v62 = vmul.f32 0.0078125, %v3201_v18 }
 0x4cc   : > { %v4735_v2 = vpop.eup %4734  ;;  %v3199_v61 = vpop.xlane.xlu1 %3198 }
 0x4cd   : > { %v3482_v11 = vmul.f32 %v6272_v59, %v3446_v36  ;;  %v3447_v17 = vmul.f32 %v4735_v2, %v3351_v15  ;;  %v3387_v53 = vadd.f32 1e-05, %v3323_v12  ;;  %v3322_v57 = vsub.f32 %v3258_v62, %v3290_v41 }
 0x4ce   : > { %v4737_v38 = vpop.eup %4736  ;;  %v3257_v40 = vmul.f32 0.0078125, %v3199_v61  ;;  %v3197_v28 = vpop.xlane.xlu0 %3196  ;;  %v3349_v41 = vsub.f32 %v5947_v16, %v6260_v42 }
 0x4cf   : > { %v3518_v34 = vadd.f32 %v6278_v29, %v3482_v11  ;;  %v3483_v21 = vmul.f32 %v6272_v59, %v3447_v17  ;;  %v3444_v20 = vmul.f32 %v4737_v38, %v3348_v37  ;;  %4740 = vrsqrt.f32 %v3387_v53 }
 0x4d0   : > { %v3386_v49 = vadd.f32 1e-05, %v3322_v57  ;;  %v3321_v50 = vsub.f32 %v3257_v40, %v3289_v30  ;;  %v3256_v54 = vmul.f32 0.0078125, %v3197_v28  ;;  %v3082_v10 = vpop.xlane.xlu1 %3081  ;;  %v3355_v28 = vsub.f32 %v5969_v47, %v6265_v51 }
 0x4d1   : > { %3550 = vst [vmem:[%s6293_s30 + $0x10] sm:$0xff] %v3518_v34  ;;  %v3519_v46 = vadd.f32 %v6278_v29, %v3483_v21  ;;  %v3480_v39 = vmul.f32 %v6272_v59, %v3444_v20  ;;  %v6309_v61 = vmul.f32 0.0078125, %v3082_v10 }
 0x4d2   : > { %4742 = vrsqrt.f32 %v3386_v49  ;;  %v3385_v60 = vadd.f32 1e-05, %v3321_v50  ;;  %v3320_v15 = vsub.f32 %v3256_v54, %v3288_v45  ;;  %v3080_v18 = vpop.xlane.xlu0 %3079 }
 0x4d3   : > { %3551 = vst [vmem:[%s6293_s30 + $0x18] sm:$0xff] %v3519_v46  ;;  %v3516_v36 = vadd.f32 %v6278_v29, %v3480_v39  ;;  %v6312_v53 = vmul.f32 0.0078125, %v3080_v18  ;;  %v3295_v42 = vmul.f32 %v6309_v61, %v6309_v61 }
 0x4d4   : > { %v4739_v12 = vpop.eup %4738  ;;  %4744 = vrsqrt.f32 %v3385_v60  ;;  %v3384_v62 = vadd.f32 1e-05, %v3320_v15  ;;  %v3078_v2 = vpop.xlane.xlu1 %3077  ;;  %v3354_v15 = vsub.f32 %v5978_v8, %v6268_v55 }
 0x4d5   : > { %3548 = vst [vmem:[%s6293_s30] sm:$0xff] %v3516_v36  ;;  %v3445_v37 = vmul.f32 %v4739_v12, %v3349_v41  ;;  %v6314_v57 = vmul.f32 0.0078125, %v3078_v2  ;;  %v3294_v34 = vmul.f32 %v6312_v53, %v6312_v53  ;;  %v3353_v12 = vsub.f32 %v5984_v13, %v6280_v63 }
 0x4d6   : > { %4746 = vrsqrt.f32 %v3384_v62  ;;  %v3076_v11 = vpop.xlane.xlu0 %3075 }
 0x4d7   : > { %v3481_v17 = vmul.f32 %v6272_v59, %v3445_v37  ;;  %v3293_v49 = vmul.f32 %v6314_v57, %v6314_v57  ;;  %v6326_v50 = vmul.f32 0.0078125, %v3076_v11 }
 0x4d8   : > { %v3211_v38 = vpop.xlane.xlu1 %3210 }
 0x4d9   : > { %v3517_v16 = vadd.f32 %v6278_v29, %v3481_v17  ;;  %v3263_v30 = vmul.f32 0.0078125, %v3211_v38  ;;  %v3292_v2 = vmul.f32 %v6326_v50, %v6326_v50  ;;  %v3352_v38 = vsub.f32 %v5990_v44, %v6287_v6 }
 0x4da   : > { %v3209_v40 = vpop.xlane.xlu0 %3208 }
 0x4db   : > { %3549 = vst [vmem:[%s6293_s30 + $0x8] sm:$0xff] %v3517_v16  ;;  %v3327_v21 = vsub.f32 %v3263_v30, %v3295_v42  ;;  %v3262_v20 = vmul.f32 0.0078125, %v3209_v40 }
 0x4dc   : > { %v4741_v45 = vpop.eup %4740  ;;  %v3207_v54 = vpop.xlane.xlu1 %3206 }
 0x4dd   : > { %v3451_v10 = vmul.f32 %v4741_v45, %v3355_v28  ;;  %v3391_v46 = vadd.f32 1e-05, %v3327_v21  ;;  %v3326_v39 = vsub.f32 %v3262_v20, %v3294_v34  ;;  %v3261_v60 = vmul.f32 0.0078125, %v3207_v54 }
 0x4de   : > { %v3205_v47 = vpop.xlane.xlu0 %3204 }
 0x4df   : > { %v4743_v51 = vpop.eup %4742  ;;  %v3487_v18 = vmul.f32 %v6272_v59, %v3451_v10  ;;  %4748 = vrsqrt.f32 %v3391_v46  ;;  %v3390_v36 = vadd.f32 1e-05, %v3326_v39  ;;  %v3325_v41 = vsub.f32 %v3261_v60, %v3293_v49 }
 0x4e0   : > { %v3450_v62 = vmul.f32 %v4743_v51, %v3354_v15  ;;  %v3260_v37 = vmul.f32 0.0078125, %v3205_v47  ;;  %v3090_v11 = vpop.xlane.xlu1 %3089  ;;  %v3359_v51 = vsub.f32 %v6017_v1, %v6309_v61  ;;  %v3357_v1 = vsub.f32 %v6032_v52, %v6314_v57 }
 0x4e1   : > { %v4745_v17 = vpop.eup %4744  ;;  %v3523_v8 = vadd.f32 %v6278_v29, %v3487_v18  ;;  %4750 = vrsqrt.f32 %v3390_v36  ;;  %v3389_v55 = vadd.f32 1e-05, %v3325_v41  ;;  %v6342_v45 = vmul.f32 0.0078125, %v3090_v11 }
 0x4e2   : > { %v3486_v16 = vmul.f32 %v6272_v59, %v3450_v62  ;;  %v3449_v42 = vmul.f32 %v4745_v17, %v3353_v12  ;;  %v3324_v30 = vsub.f32 %v3260_v37, %v3292_v2  ;;  %v3088_v13 = vpop.xlane.xlu0 %3087  ;;  %v3358_v62 = vsub.f32 %v6026_v32, %v6312_v53 }
 0x4e3   : > { %v4747_v63 = vpop.eup %4746  ;;  %3555 = vst [vmem:[%s6293_s30 + $0x38] sm:$0xff] %v3523_v8  ;;  %4752 = vrsqrt.f32 %v3389_v55  ;;  %v6347_v54 = vmul.f32 0.0078125, %v3088_v13  ;;  %v3299_v39 = vmul.f32 %v6342_v45, %v6342_v45 }
 0x4e4   : > { %v3522_v40 = vadd.f32 %v6278_v29, %v3486_v16  ;;  %v3485_v28 = vmul.f32 %v6272_v59, %v3449_v42  ;;  %v3448_v34 = vmul.f32 %v4747_v63, %v3352_v38  ;;  %v3388_v21 = vadd.f32 1e-05, %v3324_v30  ;;  %v3086_v20 = vpop.xlane.xlu1 %3085 }
 0x4e5   : > { %v6354_v15 = vmul.f32 0.0078125, %v3086_v20  ;;  %v3298_v18 = vmul.f32 %v6347_v54, %v6347_v54 }
 0x4e6   : > { %3554 = vst [vmem:[%s6293_s30 + $0x30] sm:$0xff] %v3522_v40  ;;  %v3521_v44 = vadd.f32 %v6278_v29, %v3485_v28  ;;  %v3484_v6 = vmul.f32 %v6272_v59, %v3448_v34  ;;  %4754 = vrsqrt.f32 %v3388_v21  ;;  %v3084_v49 = vpop.xlane.xlu0 %3083  ;;  %v3356_v21 = vsub.f32 %v6038_v7, %v6326_v50 }
 0x4e7   : > { %v6362_v2 = vmul.f32 0.0078125, %v3084_v49  ;;  %v3297_v61 = vmul.f32 %v6354_v15, %v6354_v15 }
 0x4e8   : > { %3553 = vst [vmem:[%s6293_s30 + $0x28] sm:$0xff] %v3521_v44  ;;  %v3520_v10 = vadd.f32 %v6278_v29, %v3484_v6  ;;  %v3219_v46 = vpop.xlane.xlu1 %3218 }
 0x4e9   : > { %v3267_v60 = vmul.f32 0.0078125, %v3219_v46  ;;  %v3296_v13 = vmul.f32 %v6362_v2, %v6362_v2 }
 0x4ea   : > { %3552 = vst [vmem:[%s6293_s30 + $0x20] sm:$0xff] %v3520_v10  ;;  %v3217_v47 = vpop.xlane.xlu0 %3216 }
 0x4eb   : > { %v3331_v36 = vsub.f32 %v3267_v60, %v3299_v39  ;;  %v3266_v41 = vmul.f32 0.0078125, %v3217_v47 }
 0x4ec   : > { %v4749_v12 = vpop.eup %4748  ;;  %v3215_v37 = vpop.xlane.xlu1 %3214 }
 0x4ed   : > { %v3455_v11 = vmul.f32 %v4749_v12, %v3359_v51  ;;  %v3395_v17 = vadd.f32 1e-05, %v3331_v36  ;;  %v3330_v8 = vsub.f32 %v3266_v41, %v3298_v18  ;;  %v3265_v55 = vmul.f32 0.0078125, %v3215_v37 }
 0x4ee   : > { %v4751_v38 = vpop.eup %4750  ;;  %v3213_v16 = vpop.xlane.xlu0 %3212 }
 0x4ef   : > { %v3491_v42 = vmul.f32 %v6272_v59, %v3455_v11  ;;  %v3454_v30 = vmul.f32 %v4751_v38, %v3358_v62  ;;  %4756 = vrsqrt.f32 %v3395_v17  ;;  %v3394_v32 = vadd.f32 1e-05, %v3330_v8 }
 0x4f0   : > { %v4753_v53 = vpop.eup %4752  ;;  %v3329_v63 = vsub.f32 %v3265_v55, %v3297_v61  ;;  %v3264_v40 = vmul.f32 0.0078125, %v3213_v16  ;;  %v3098_v28 = vpop.xlane.xlu1 %3097  ;;  %v3363_v8 = vsub.f32 %v6065_v58, %v6342_v45  ;;  %v3362_v16 = vsub.f32 %v6074_v3, %v6347_v54 }
 0x4f1   : > { %v3527_v34 = vadd.f32 %v6278_v29, %v3491_v42  ;;  %v3490_v52 = vmul.f32 %v6272_v59, %v3454_v30  ;;  %v3453_v57 = vmul.f32 %v4753_v53, %v3357_v1  ;;  %4758 = vrsqrt.f32 %v3394_v32 }
 0x4f2   : > { %v3393_v20 = vadd.f32 1e-05, %v3329_v63  ;;  %v3328_v44 = vsub.f32 %v3264_v40, %v3296_v13  ;;  %v3096_v6 = vpop.xlane.xlu0 %3095  ;;  %v6380_v18 = vmul.f32 0.0078125, %v3098_v28  ;;  %v3361_v3 = vsub.f32 %v6080_v5, %v6354_v15 }
 0x4f3   : > { %v4755_v49 = vpop.eup %4754  ;;  %3559 = vst [vmem:[%s6293_s30 + $0x58] sm:$0xff] %v3527_v34  ;;  %v3526_v10 = vadd.f32 %v6278_v29, %v3490_v52  ;;  %v3489_v46 = vmul.f32 %v6272_v59, %v3453_v57  ;;  %v6384_v36 = vmul.f32 0.0078125, %v3096_v6 }
 0x4f4   : > { %v3452_v39 = vmul.f32 %v4755_v49, %v3356_v21  ;;  %4760 = vrsqrt.f32 %v3393_v20  ;;  %v3392_v60 = vadd.f32 1e-05, %v3328_v44  ;;  %v3094_v47 = vpop.xlane.xlu1 %3093  ;;  %v3303_v62 = vmul.f32 %v6380_v18, %v6380_v18 }
 0x4f5   : > { %3558 = vst [vmem:[%s6293_s30 + $0x50] sm:$0xff] %v3526_v10  ;;  %v3525_v51 = vadd.f32 %v6278_v29, %v3489_v46  ;;  %v6390_v11 = vmul.f32 0.0078125, %v3094_v47  ;;  %v3302_v55 = vmul.f32 %v6384_v36, %v6384_v36  ;;  %v3360_v10 = vsub.f32 %v6086_v23, %v6362_v2 }
 0x4f6   : > { %v3488_v7 = vmul.f32 %v6272_v59, %v3452_v39  ;;  %4762 = vrsqrt.f32 %v3392_v60  ;;  %v3092_v50 = vpop.xlane.xlu0 %3091 }
 0x4f7   : > { %3557 = vst [vmem:[%s6293_s30 + $0x48] sm:$0xff] %v3525_v51  ;;  %v6398_v42 = vmul.f32 0.0078125, %v3092_v50  ;;  %v3301_v58 = vmul.f32 %v6390_v11, %v6390_v11 }
 0x4f8   : > { %v3524_v41 = vadd.f32 %v6278_v29, %v3488_v7  ;;  %v3227_v12 = vpop.xlane.xlu1 %3226 }
 0x4f9   : > { %v3271_v37 = vmul.f32 0.0078125, %v3227_v12  ;;  %v3300_v54 = vmul.f32 %v6398_v42, %v6398_v42 }
 0x4fa   : > { %3556 = vst [vmem:[%s6293_s30 + $0x40] sm:$0xff] %v3524_v41  ;;  %v3225_v17 = vpop.xlane.xlu0 %3224 }
 0x4fb   : > { %v3335_v38 = vsub.f32 %v3271_v37, %v3303_v62  ;;  %v3270_v1 = vmul.f32 0.0078125, %v3225_v17 }
 0x4fc   : > { %v4757_v61 = vpop.eup %4756  ;;  %v3223_v30 = vpop.xlane.xlu1 %3222 }
 0x4fd   : > { %v3459_v32 = vmul.f32 %v4757_v61, %v3363_v8  ;;  %v3399_v53 = vadd.f32 1e-05, %v3335_v38  ;;  %v3334_v13 = vsub.f32 %v3270_v1, %v3302_v55  ;;  %v3269_v63 = vmul.f32 0.0078125, %v3223_v30 }
 0x4fe   : > { %v4759_v40 = vpop.eup %4758  ;;  %v3221_v45 = vpop.xlane.xlu0 %3220 }
 0x4ff   : > { %v3495_v28 = vmul.f32 %v6272_v59, %v3459_v32  ;;  %v3458_v34 = vmul.f32 %v4759_v40, %v3362_v16  ;;  %4764 = vrsqrt.f32 %v3399_v53  ;;  %v3398_v52 = vadd.f32 1e-05, %v3334_v13 }
 0x500   : > { %v3333_v57 = vsub.f32 %v3269_v63, %v3301_v58  ;;  %v3268_v21 = vmul.f32 0.0078125, %v3221_v45  ;;  %v3106_v20 = vpop.xlane.xlu1 %3105  ;;  %v3367_v16 = vsub.f32 %v6113_v24, %v6380_v18  ;;  %v3366_v63 = vsub.f32 %v6122_v26, %v6384_v36 }
 0x501   : > { %v4761_v44 = vpop.eup %4760  ;;  %v3531_v6 = vadd.f32 %v6278_v29, %v3495_v28  ;;  %v3494_v49 = vmul.f32 %v6272_v59, %v3458_v34  ;;  %4766 = vrsqrt.f32 %v3398_v52  ;;  %v6415_v12 = vmul.f32 0.0078125, %v3106_v20 }
 0x502   : > { %v3457_v46 = vmul.f32 %v4761_v44, %v3361_v3  ;;  %v3397_v39 = vadd.f32 1e-05, %v3333_v57  ;;  %v3332_v60 = vsub.f32 %v3268_v21, %v3300_v54  ;;  %v3104_v5 = vpop.xlane.xlu0 %3103  ;;  %v3365_v26 = vsub.f32 %v6128_v0, %v6390_v11 }
 0x503   : > { %v4763_v15 = vpop.eup %4762  ;;  %3563 = vst [vmem:[%s6293_s30 + $0x78] sm:$0xff] %v3531_v6  ;;  %v3530_v47 = vadd.f32 %v6278_v29, %v3494_v49  ;;  %v6419_v37 = vmul.f32 0.0078125, %v3104_v5  ;;  %v3307_v55 = vmul.f32 %v6415_v12, %v6415_v12 }
 0x504   : > { %v3493_v51 = vmul.f32 %v6272_v59, %v3457_v46  ;;  %v3456_v7 = vmul.f32 %v4763_v15, %v3360_v10  ;;  %4768 = vrsqrt.f32 %v3397_v39  ;;  %v3396_v50 = vadd.f32 1e-05, %v3332_v60  ;;  %v3102_v41 = vpop.xlane.xlu1 %3101 }
 0x505   : > { %3562 = vst [vmem:[%s6293_s30 + $0x70] sm:$0xff] %v3530_v47  ;;  %v6426_v1 = vmul.f32 0.0078125, %v3102_v41  ;;  %v3306_v30 = vmul.f32 %v6419_v37, %v6419_v37  ;;  %v3364_v39 = vsub.f32 %v6134_v56, %v6398_v42 }
 0x506   : > { %v3529_v23 = vadd.f32 %v6278_v29, %v3493_v51  ;;  %v3492_v2 = vmul.f32 %v6272_v59, %v3456_v7  ;;  %4770 = vrsqrt.f32 %v3396_v50  ;;  %v3100_v62 = vpop.xlane.xlu0 %3099 }
 0x507   : > { %v6434_v40 = vmul.f32 0.0078125, %v3100_v62  ;;  %v3305_v24 = vmul.f32 %v6426_v1, %v6426_v1 }
 0x508   : > { %3561 = vst [vmem:[%s6293_s30 + $0x68] sm:$0xff] %v3529_v23  ;;  %v3528_v17 = vadd.f32 %v6278_v29, %v3492_v2  ;;  %v3235_v8 = vpop.xlane.xlu1 %3234 }
 0x509   : > { %v3275_v38 = vmul.f32 0.0078125, %v3235_v8  ;;  %v3304_v36 = vmul.f32 %v6434_v40, %v6434_v40 }
 0x50a   : > { %3560 = vst [vmem:[%s6293_s30 + $0x60] sm:$0xff] %v3528_v17  ;;  %v3233_v61 = vpop.xlane.xlu0 %3232 }
 0x50b   : > { %v3339_v32 = vsub.f32 %v3275_v38, %v3307_v55  ;;  %v3274_v53 = vmul.f32 0.0078125, %v3233_v61 }
 0x50c   : > { %v4765_v13 = vpop.eup %4764  ;;  %v3231_v58 = vpop.xlane.xlu1 %3230 }
 0x50d   : > { %v3463_v45 = vmul.f32 %v4765_v13, %v3367_v16  ;;  %v3403_v28 = vadd.f32 1e-05, %v3339_v32  ;;  %v3338_v34 = vsub.f32 %v3274_v53, %v3306_v30  ;;  %v3273_v52 = vmul.f32 0.0078125, %v3231_v58 }
 0x50e   : > { %v4767_v3 = vpop.eup %4766  ;;  %v3229_v18 = vpop.xlane.xlu0 %3228  ;;  %v3371_v30 = vsub.f32 %v6161_v33, %v6415_v12  ;;  %v3370_v58 = vsub.f32 %v6170_v14, %v6419_v37  ;;  %v3369_v14 = vsub.f32 %v6176_v27, %v6426_v1 }
 0x50f   : > { %v3499_v54 = vmul.f32 %v6272_v59, %v3463_v45  ;;  %v3462_v57 = vmul.f32 %v4767_v3, %v3366_v63  ;;  %4772 = vrsqrt.f32 %v3403_v28  ;;  %v3402_v21 = vadd.f32 1e-05, %v3338_v34 }
 0x510   : > { %v3337_v20 = vsub.f32 %v3273_v52, %v3305_v24  ;;  %v3272_v44 = vmul.f32 0.0078125, %v3229_v18  ;;  %v3114_v6 = vpop.xlane.xlu1 %3113 }
 0x511   : > { %v4769_v49 = vpop.eup %4768  ;;  %v3535_v10 = vadd.f32 %v6278_v29, %v3499_v54  ;;  %v3498_v46 = vmul.f32 %v6272_v59, %v3462_v57  ;;  %4774 = vrsqrt.f32 %v3402_v21  ;;  %v6451_v23 = vmul.f32 0.0078125, %v3114_v6 }
 0x512   : > { %v3461_v60 = vmul.f32 %v4769_v49, %v3365_v26  ;;  %v3401_v5 = vadd.f32 1e-05, %v3337_v20  ;;  %v3336_v15 = vsub.f32 %v3272_v44, %v3304_v36  ;;  %v3112_v0 = vpop.xlane.xlu0 %3111 }
 0x513   : > { %v4771_v11 = vpop.eup %4770  ;;  %3567 = vst [vmem:[%s6293_s30 + $0x98] sm:$0xff] %v3535_v10  ;;  %v3534_v47 = vadd.f32 %v6278_v29, %v3498_v46  ;;  %v6455_v62 = vmul.f32 0.0078125, %v3112_v0  ;;  %v3311_v55 = vmul.f32 %v6451_v23, %v6451_v23  ;;  %v3368_v10 = vsub.f32 %v6182_v35, %v6434_v40 }
 0x514   : > { %v3497_v51 = vmul.f32 %v6272_v59, %v3461_v60  ;;  %v3460_v7 = vmul.f32 %v4771_v11, %v3364_v39  ;;  %4776 = vrsqrt.f32 %v3401_v5  ;;  %v3400_v50 = vadd.f32 1e-05, %v3336_v15  ;;  %v3110_v41 = vpop.xlane.xlu1 %3109 }
 0x515   : > { %3566 = vst [vmem:[%s6293_s30 + $0x90] sm:$0xff] %v3534_v47  ;;  %v6462_v61 = vmul.f32 0.0078125, %v3110_v41  ;;  %v3310_v32 = vmul.f32 %v6455_v62, %v6455_v62 }
 0x516   : > { %v3533_v56 = vadd.f32 %v6278_v29, %v3497_v51  ;;  %v3496_v42 = vmul.f32 %v6272_v59, %v3460_v7  ;;  %4778 = vrsqrt.f32 %v3400_v50  ;;  %v3108_v2 = vpop.xlane.xlu0 %3107 }
 0x517   : > { %v6470_v45 = vmul.f32 0.0078125, %v3108_v2  ;;  %v3309_v33 = vmul.f32 %v6462_v61, %v6462_v61 }
 0x518   : > { %3565 = vst [vmem:[%s6293_s30 + $0x88] sm:$0xff] %v3533_v56  ;;  %v3532_v17 = vadd.f32 %v6278_v29, %v3496_v42  ;;  %v3243_v8 = vpop.xlane.xlu1 %3242 }
 0x519   : > { %v3279_v38 = vmul.f32 0.0078125, %v3243_v8  ;;  %v3308_v37 = vmul.f32 %v6470_v45, %v6470_v45 }
 0x51a   : > { %3564 = vst [vmem:[%s6293_s30 + $0x80] sm:$0xff] %v3532_v17  ;;  %v3241_v16 = vpop.xlane.xlu0 %3240 }
 0x51b   : > { %v3343_v53 = vsub.f32 %v3279_v38, %v3311_v55  ;;  %v3278_v13 = vmul.f32 0.0078125, %v3241_v16  ;;  %v3375_v55 = vsub.f32 %v6199_v43, %v6451_v23  ;;  %v3373_v23 = vsub.f32 %v6209_v9, %v6462_v61 }
 0x51c   : > { %v4773_v63 = vpop.eup %4772  ;;  %v3239_v28 = vpop.xlane.xlu1 %3238 }
 0x51d   : > { %v3467_v34 = vmul.f32 %v4773_v63, %v3371_v30  ;;  %v3407_v52 = vadd.f32 1e-05, %v3343_v53  ;;  %v3342_v3 = vsub.f32 %v3278_v13, %v3310_v32  ;;  %v3277_v24 = vmul.f32 0.0078125, %v3239_v28 }
 0x51e   : > { %v4775_v18 = vpop.eup %4774  ;;  %v3237_v12 = vpop.xlane.xlu0 %3236  ;;  %v3374_v53 = vsub.f32 %v6204_v48, %v6455_v62 }
 0x51f   : > { %v3503_v54 = vmul.f32 %v6272_v59, %v3467_v34  ;;  %v3466_v57 = vmul.f32 %v4775_v18, %v3370_v58  ;;  %4780 = vrsqrt.f32 %v3407_v52  ;;  %v3406_v21 = vadd.f32 1e-05, %v3342_v3 }
 0x520   : > { %v3341_v26 = vsub.f32 %v3277_v24, %v3309_v33  ;;  %v3276_v36 = vmul.f32 0.0078125, %v3237_v12  ;;  %v3122_v20 = vpop.xlane.xlu1 %3121 }
 0x521   : > { %v4777_v44 = vpop.eup %4776  ;;  %v3539_v6 = vadd.f32 %v6278_v29, %v3503_v54  ;;  %v3502_v49 = vmul.f32 %v6272_v59, %v3466_v57  ;;  %4782 = vrsqrt.f32 %v3406_v21  ;;  %v3155_v17 = vmul.f32 0.0078125, %v3122_v20 }
 0x522   : > { %v3465_v46 = vmul.f32 %v4777_v44, %v3369_v14  ;;  %v3405_v39 = vadd.f32 1e-05, %v3341_v26  ;;  %v3340_v60 = vsub.f32 %v3276_v36, %v3308_v37  ;;  %v3120_v27 = vpop.xlane.xlu0 %3119  ;;  %v3372_v37 = vsub.f32 %v6214_v22, %v6470_v45 }
 0x523   : > { %v4779_v1 = vpop.eup %4778  ;;  %3571 = vst [vmem:[%s6293_s30 + $0xb8] sm:$0xff] %v3539_v6  ;;  %v3538_v5 = vadd.f32 %v6278_v29, %v3502_v49  ;;  %v3154_v13 = vmul.f32 0.0078125, %v3120_v27  ;;  %v3315_v24 = vmul.f32 %v3155_v17, %v3155_v17 }
 0x524   : > { %v3501_v15 = vmul.f32 %v6272_v59, %v3465_v46  ;;  %v3464_v0 = vmul.f32 %v4779_v1, %v3368_v10  ;;  %4784 = vrsqrt.f32 %v3405_v39  ;;  %v3404_v11 = vadd.f32 1e-05, %v3340_v60  ;;  %v3118_v47 = vpop.xlane.xlu1 %3117 }
 0x525   : > { %3570 = vst [vmem:[%s6293_s30 + $0xb0] sm:$0xff] %v3538_v5  ;;  %v6487_v51 = vmul.f32 0.0078125, %v3118_v47  ;;  %v3314_v54 = vmul.f32 %v3154_v13, %v3154_v13 }
 0x526   : > { %v3537_v35 = vadd.f32 %v6278_v29, %v3501_v15  ;;  %v3500_v40 = vmul.f32 %v6272_v59, %v3464_v0  ;;  %4786 = vrsqrt.f32 %v3404_v11  ;;  %v3116_v7 = vpop.xlane.xlu0 %3115  ;;  %v3379_v0 = vsub.f32 %v6231_v4, %v3155_v17 }
 0x527   : > { %v3152_v50 = vmul.f32 0.0078125, %v3116_v7  ;;  %v3313_v42 = vmul.f32 %v6487_v51, %v6487_v51  ;;  %v3377_v45 = vsub.f32 %v6241_v31, %v6487_v51  ;;  %v3378_v31 = vsub.f32 %v6236_v25, %v3154_v13 }
 0x528   : > { %3569 = vst [vmem:[%s6293_s30 + $0xa8] sm:$0xff] %v3537_v35  ;;  %v3536_v41 = vadd.f32 %v6278_v29, %v3500_v40  ;;  %v3247_v56 = vpop.xlane.xlu1 %3246 }
 0x529   : > { %v3281_v2 = vmul.f32 0.0078125, %v3247_v56  ;;  %v3312_v38 = vmul.f32 %v3152_v50, %v3152_v50  ;;  %v3376_v60 = vsub.f32 %v6245_v19, %v3152_v50 }
 0x52a   : > { %3568 = vst [vmem:[%s6293_s30 + $0xa0] sm:$0xff] %v3536_v41  ;;  %v3245_v8 = vpop.xlane.xlu0 %3244 }
 0x52b   : > { %v3345_v16 = vsub.f32 %v3281_v2, %v3313_v42  ;;  %v3280_v30 = vmul.f32 0.0078125, %v3245_v8 }
 0x52c   : > { %v4781_v32 = vpop.eup %4780  ;;  %v3251_v63 = vpop.xlane.xlu1 %3250 }
 0x52d   : > { %v3471_v58 = vmul.f32 %v4781_v32, %v3375_v55  ;;  %v3409_v28 = vadd.f32 1e-05, %v3345_v16  ;;  %v3344_v34 = vsub.f32 %v3280_v30, %v3312_v38  ;;  %v3283_v52 = vmul.f32 0.0078125, %v3251_v63 }
 0x52e   : > { %v4783_v3 = vpop.eup %4782  ;;  %v3249_v18 = vpop.xlane.xlu0 %3248 }
 0x52f   : > { %v3507_v33 = vmul.f32 %v6272_v59, %v3471_v58  ;;  %v3470_v12 = vmul.f32 %v4783_v3, %v3374_v53  ;;  %4788 = vrsqrt.f32 %v3409_v28  ;;  %v3408_v43 = vadd.f32 1e-05, %v3344_v34 }
 0x530   : > { %v3347_v48 = vsub.f32 %v3283_v52, %v3315_v24  ;;  %v3282_v62 = vmul.f32 0.0078125, %v3249_v18 }
 0x531   : > { %v4785_v57 = vpop.eup %4784  ;;  %v3543_v21 = vadd.f32 %v6278_v29, %v3507_v33  ;;  %v3506_v14 = vmul.f32 %v6272_v59, %v3470_v12  ;;  %4790 = vrsqrt.f32 %v3408_v43 }
 0x532   : > { %v3469_v26 = vmul.f32 %v4785_v57, %v3373_v23  ;;  %v3411_v36 = vadd.f32 1e-05, %v3347_v48  ;;  %v3346_v20 = vsub.f32 %v3282_v62, %v3314_v54 }
 0x533   : > { %v4787_v44 = vpop.eup %4786  ;;  %3575 = vst [vmem:[%s6293_s30 + $0xd8] sm:$0xff] %v3543_v21  ;;  %v3542_v9 = vadd.f32 %v6278_v29, %v3506_v14 }
 0x534   : > { %v3505_v61 = vmul.f32 %v6272_v59, %v3469_v26  ;;  %v3468_v6 = vmul.f32 %v4787_v44, %v3372_v37  ;;  %4792 = vrsqrt.f32 %v3411_v36  ;;  %v3410_v49 = vadd.f32 1e-05, %v3346_v20 }
 0x535   : > { %3574 = vst [vmem:[%s6293_s30 + $0xd0] sm:$0xff] %v3542_v9 }
 0x536   : > { %v3541_v10 = vadd.f32 %v6278_v29, %v3505_v61  ;;  %v3504_v46 = vmul.f32 %v6272_v59, %v3468_v6  ;;  %4794 = vrsqrt.f32 %v3410_v49 }
 0x538   : > { %3573 = vst [vmem:[%s6293_s30 + $0xc8] sm:$0xff] %v3541_v10  ;;  %v3540_v22 = vadd.f32 %v6278_v29, %v3504_v46 }
 0x53a   : > { %3572 = vst [vmem:[%s6293_s30 + $0xc0] sm:$0xff] %v3540_v22 }
 0x53c   : > { %v4789_v39 = vpop.eup %4788 }
 0x53d   : > { %v3473_v27 = vmul.f32 %v4789_v39, %v3377_v45 }
 0x53e   : > { %v4791_v1 = vpop.eup %4790 }
 0x53f   : > { %v3509_v5 = vmul.f32 %v6272_v59, %v3473_v27  ;;  %v3472_v15 = vmul.f32 %v4791_v1, %v3376_v60 }
 0x541   : > { %v4793_v11 = vpop.eup %4792  ;;  %v3545_v47 = vadd.f32 %v6278_v29, %v3509_v5  ;;  %v3508_v35 = vmul.f32 %v6272_v59, %v3472_v15 }
 0x542   : > { %v3475_v51 = vmul.f32 %v4793_v11, %v3379_v0 }
 0x543   : > { %v4795_v40 = vpop.eup %4794  ;;  %3577 = vst [vmem:[%s6293_s30 + $0xe8] sm:$0xff] %v3545_v47  ;;  %v3544_v19 = vadd.f32 %v6278_v29, %v3508_v35 }
 0x544   : > { %v3511_v7 = vmul.f32 %v6272_v59, %v3475_v51  ;;  %v3474_v50 = vmul.f32 %v4795_v40, %v3378_v31 }
 0x545   : > { %3576 = vst [vmem:[%s6293_s30 + $0xe0] sm:$0xff] %v3544_v19 }
 0x546   : > { %v3547_v41 = vadd.f32 %v6278_v29, %v3511_v7  ;;  %v3510_v4 = vmul.f32 %v6272_v59, %v3474_v50 }
 0x548   : > { %3579 = vst [vmem:[%s6293_s30 + $0xf8] sm:$0xff] %v3547_v41  ;;  %v3546_v56 = vadd.f32 %v6278_v29, %v3510_v4 }
 0x54a   : > { %3578 = vst [vmem:[%s6293_s30 + $0xf0] sm:$0xff] %v3546_v56 }
 0x54b PF: > { %s16_s21 = sadd.s32 1, %s4804_s21  }
 0x54c   : > { %p13_p4 = scmp.ge.s32.totalorder %s16_s21, 4  }
 0x54e   :  { %15 = sbr.rel (!%p13_p4) target bundleno = 1 (0x1), region = 74 }

</bundles_post_ra>
